<compile_context>
chip_gen: v7x
topology: tpu7x:2x2x1
jax: 0.10.0
libtpu: 0.0.40
codegen_flags: <defaults>
</compile_context>

<pallas_src>
import numpy as np
import jax
import jax.numpy as jnp
from jax import lax
from jax.experimental import pallas as pl
from jax.experimental.pallas import tpu as pltpu


# ----------------------------------------------------------------------------
# Pallas kernel
# ----------------------------------------------------------------------------
def _deepfm_kernel(idx_ref,     # (TB, F)   int32  offset-adjusted sparse indices (streamed)
                   xd_ref,      # (TB, Dd)  bf16   dense features (streamed)
                   table_ref,   # (Vp, 128) bf16   [emb_id | emb_side | lin_w], VMEM-resident
                   consts_ref,  # (8, 128)  f32    [0.5*rsq | 0.5*emb_mask | lin_mask | b1 | b2 | wo]
                   w1_ref,      # (Dd, 128) bf16   BN-folded, zero-padded to 128 lanes
                   w2_ref,      # (128,128) bf16   BN-folded, zero-padded
                   bias_ref,    # (1, 1)    f32    FeaturesLinear bias + final Linear bias (SMEM)
                   out_ref):    # (1, TB)   f32    lane-dense output block
    tb, n_fields = idx_ref.shape
    vp = table_ref.shape[0]

    # --- multi-hot field selector (replaces the XLA gather) -------------------
    # Fields map to disjoint row ranges (offsets already added), so the multi-hot
    # row weights are 0/1 and one matmul gives every per-lane field-sum at once.
    idx = idx_ref[...]
    iota_v = lax.broadcasted_iota(jnp.int32, (tb, vp), 1)
    mh = jnp.zeros((tb, vp), jnp.float32)
    for f in range(n_fields):                       # tiny static field count
        mh = mh + (iota_v == idx[:, f:f + 1]).astype(jnp.float32)

    c = consts_ref[...]
    rsq_half, half_emb, lin_sel = c[0:1, :], c[1:2, :], c[2:3, :]
    b1, b2, wo = c[3:4, :], c[4:5, :], c[5:6, :]

    # --- FactorizationMachine + FeaturesLinear --------------------------------
    # s[:, lane] = sum over fields of that lane; lane D+Ds carries linear weights.
    s = jnp.dot(mh.astype(jnp.bfloat16), table_ref[...],
                preferred_element_type=jnp.float32)               # (TB, 128)
    # 0.5 * square_of_sum (embedding lanes) + linear-term sum, in ONE lane reduce.
    fm_lin = jnp.sum(s * (half_emb * s + lin_sel), axis=1)        # (TB,)
    # 0.5 * sum_of_square from precomputed per-row squared norms (exact f32).
    sos_half = jnp.sum(mh * rsq_half, axis=1)                     # (TB,)

    # --- dense MLP (BatchNorm folded; eval-mode Dropout = identity) -----------
    h = jnp.dot(xd_ref[...], w1_ref[...], preferred_element_type=jnp.float32) + b1
    h = jnp.maximum(h, 0.0)
    h = jnp.dot(h.astype(jnp.bfloat16), w2_ref[...],
                preferred_element_type=jnp.float32) + b2
    h = jnp.maximum(h, 0.0)
    mlp = jnp.sum(h * wo, axis=1)                                 # (TB,)

    # --- combine + numerically stable sigmoid (EUP exp + EUP reciprocal) ------
    y = (fm_lin - sos_half + mlp + bias_ref[0, 0]).reshape(1, -1)  # (1, TB)
    z = jnp.exp(-jnp.abs(y))
    den = 1.0 + z
    r = pl.reciprocal(den, approx=True)
    r = r * (2.0 - den * r)            # Newton refinement: f32-accurate, no divide
    r = r * (2.0 - den * r)
    out_ref[...] = jnp.where(y >= 0.0, r, 1.0 - r)


# ----------------------------------------------------------------------------
# Wrapper: tile selection, padding, pallas_call
# ----------------------------------------------------------------------------
def _cdiv(a, b):
    return -(-a // b)


def _pick_batch_tile(batch, tb=None, max_tb=1024):
    """Batch tile: multiple of 256 (fills the v6e/v7x MXU M-dim), capped at 1024,
    with a grid of >= 2 steps so both v7x TensorCores are used (megacore)."""
    if tb is None:
        tb = min(max_tb, max(256, 256 * _cdiv(_cdiv(batch, 2), 256)))
    grid_n = max(2, _cdiv(batch, tb))
    return tb, grid_n


def deepfm_forward(idx, x_dense, table, consts, w1, w2, bias, *, tb=None):
    B, F_tot = idx.shape
    Dd = x_dense.shape[1]
    Vp, LW = table.shape
    assert consts.shape == (8, LW) and w1.shape == (Dd, LW) and w2.shape == (LW, LW)

    tb, grid_n = _pick_batch_tile(B, tb)
    b_pad = tb * grid_n
    if b_pad != B:
        idx = jnp.pad(idx, ((0, b_pad - B), (0, 0)))
        x_dense = jnp.pad(x_dense, ((0, b_pad - B), (0, 0)))

    cost = pl.CostEstimate(
        flops=int(2 * b_pad * (Vp * LW + Dd * LW + LW * LW) + 16 * b_pad * LW),
        transcendentals=int(2 * b_pad),
        bytes_accessed=int(idx.size * 4 + x_dense.size * 2 + b_pad * 4
                           + (table.size + w1.size + w2.size) * 2
                           + consts.size * 4 + 4),
    )

    out = pl.pallas_call(
        _deepfm_kernel,
        out_shape=jax.ShapeDtypeStruct((1, b_pad), jnp.float32),
        grid_spec=pltpu.PrefetchScalarGridSpec(
            num_scalar_prefetch=0,
            grid=(grid_n,),
            in_specs=[
                # streamed, double-buffered per batch tile
                pl.BlockSpec((tb, F_tot), lambda i: (i, 0)),
                pl.BlockSpec((tb, Dd), lambda i: (i, 0)),
                # VMEM-resident weights / constants (constant index maps)
                pl.BlockSpec((Vp, LW), lambda i: (0, 0)),
                pl.BlockSpec((8, LW), lambda i: (0, 0)),
                pl.BlockSpec((Dd, LW), lambda i: (0, 0)),
                pl.BlockSpec((LW, LW), lambda i: (0, 0)),
                # scalar bias in SMEM
                pl.BlockSpec(memory_space=pltpu.MemorySpace.SMEM),
            ],
            out_specs=pl.BlockSpec((1, tb), lambda i: (0, i)),
        ),
        compiler_params=pltpu.CompilerParams(
            dimension_semantics=("parallel",),
            vmem_limit_bytes=32 * 1024 * 1024,
        ),
        cost_estimate=cost,
    )(idx, x_dense, table, consts, w1, w2, bias)
    return out[0, :B]


# ----------------------------------------------------------------------------
# Parameter construction (shapes follow the PyTorch __init__)
# ----------------------------------------------------------------------------
def xavier_uniform(key, shape):
    fan_in, fan_out = shape
    bound = float(np.sqrt(6.0 / (fan_in + fan_out)))
    return jax.random.uniform(key, shape, jnp.float32, -bound, bound)


def linear_init(key, in_dim, out_dim):
    kw, kb = jax.random.split(key)
    bound = 1.0 / float(np.sqrt(in_dim))
    w = jax.random.uniform(kw, (in_dim, out_dim), jnp.float32, -bound, bound)
    b = jax.random.uniform(kb, (out_dim,), jnp.float32, -bound, bound)
    return w, b


def fold_batchnorm(w, b, gamma, beta, mean, var, eps=1e-5):
    """Fold eval-mode BatchNorm1d (running stats) into the preceding Linear:
    BN(xW + b) == x(W*s) + ((b - mean)*s + beta)."""
    scale = gamma / jnp.sqrt(var + eps)
    return w * scale[None, :], (b - mean) * scale + beta


def build_params(key, sparse_id_dims, sparse_side_dims, dense_dim,
                 embed_dim, embed_dim_side, mlp_dims, lane_pad=128):
    D, Ds = embed_dim, embed_dim_side
    n_emb = D + Ds                       # embedding lanes 0..n_emb-1
    LIN = n_emb                          # linear-weight lane
    n_id, n_side = sum(sparse_id_dims), sum(sparse_side_dims)
    V = n_id + n_side
    Vp = lane_pad                        # padded vocab rows (multi-hot lane dim)
    # TODO(synk): for vocabularies that do not fit VMEM, fall back to an XLA gather
    # that feeds a lane-padded (B, 128) bf16 slab instead of the in-kernel multi-hot.
    assert V <= Vp and n_emb + 1 <= lane_pad
    keys = jax.random.split(key, 6)

    # FeaturesEmbedding tables (xavier_uniform, as in the module)
    emb_id = xavier_uniform(keys[0], (n_id, D))
    emb_side = xavier_uniform(keys[1], (n_side, Ds))
    # FeaturesLinear: Embedding(sum(all_dims), 1) (default N(0,1)) + zero bias
    lin_w = jax.random.normal(keys[2], (V, 1), jnp.float32)
    lin_bias = jnp.zeros((), jnp.float32)

    # Combined [emb_id | emb_side | lin_w] table, lane- and row-padded, bf16.
    table = jnp.zeros((Vp, lane_pad), jnp.float32)
    table = table.at[:n_id, :D].set(emb_id)
    table = table.at[n_id:V, D:n_emb].set(emb_side)
    table = table.at[:V, LIN].set(lin_w[:, 0])
    table_bf = table.astype(jnp.bfloat16)

    # Per-row sum of squared embedding values (from the quantized table, in f32).
    tq = table_bf.astype(jnp.float32)
    rsq = jnp.sum(tq[:, :n_emb] ** 2, axis=1)                    # (Vp,)

    off_id = np.array((0, *np.cumsum(sparse_id_dims)[:-1]), dtype=np.int32)
    off_side = np.array((0, *np.cumsum(sparse_side_dims)[:-1]), dtype=np.int32)
    offsets = jnp.asarray(np.concatenate([off_id, n_id + off_side]).astype(np.int32))

    # Dense MLP: (Linear -> BatchNorm1d -> ReLU -> Dropout) x2 -> Linear(., 1)
    H1, H2 = mlp_dims
    w1, b1 = linear_init(keys[3], dense_dim, H1)
    w2, b2 = linear_init(keys[4], H1, H2)
    wo, bo = linear_init(keys[5], H2, 1)
    bn1 = dict(gamma=jnp.ones(H1), beta=jnp.zeros(H1), mean=jnp.zeros(H1), var=jnp.ones(H1))
    bn2 = dict(gamma=jnp.ones(H2), beta=jnp.zeros(H2), mean=jnp.zeros(H2), var=jnp.ones(H2))
    w1f, b1f = fold_batchnorm(w1, b1, **bn1)
    w2f, b2f = fold_batchnorm(w2, b2, **bn2)

    H = lane_pad
    w1p = jnp.zeros((dense_dim, H), jnp.float32).at[:, :H1].set(w1f).astype(jnp.bfloat16)
    w2p = jnp.zeros((H, H), jnp.float32).at[:H1, :H2].set(w2f).astype(jnp.bfloat16)

    # One consolidated (8, 128) f32 constants tile.
    consts = jnp.zeros((8, H), jnp.float32)
    consts = consts.at[0, :Vp].set(0.5 * rsq)        # 0.5 * per-row squared norm
    consts = consts.at[1, :n_emb].set(0.5)           # 0.5 on embedding lanes
    consts = consts.at[2, LIN].set(1.0)              # select the linear-weight lane
    consts = consts.at[3, :H1].set(b1f)
    consts = consts.at[4, :H2].set(b2f)
    consts = consts.at[5, :H2].set(wo[:, 0])

    bias_total = (lin_bias + bo[0]).reshape(1, 1)    # FeaturesLinear + final Linear bias

    ref = dict(D=D, Ds=Ds,
               w1=w1f.astype(jnp.bfloat16), b1=b1f,
               w2=w2f.astype(jnp.bfloat16), b2=b2f,
               wo=wo[:, 0], bo=bo[0], lin_bias=lin_bias)

    return dict(table=table_bf, offsets=offsets, consts=consts,
                w1=w1p, w2=w2p, bias=bias_total, ref=ref)


# ----------------------------------------------------------------------------
# Model apply (thin XLA glue + Pallas kernel) and pure-JAX reference
# ----------------------------------------------------------------------------
def model_apply(params, xx, num_fields, num_fields_side, tb=None):
    F_tot = num_fields + num_fields_side
    idx = xx[:, :F_tot].astype(jnp.int32) + params['offsets'][None, :]
    # dense features are small integers -> exact in bf16; streamed at half the bytes
    x_dense = xx[:, F_tot:].astype(jnp.bfloat16)
    return deepfm_forward(idx, x_dense, params['table'], params['consts'],
                          params['w1'], params['w2'], params['bias'], tb=tb)


def model_reference(params, xx, num_fields, num_fields_side):
    """Pure-JAX reference following the original module structure."""
    r = params['ref']
    D, Ds = r['D'], r['Ds']
    LIN = D + Ds
    F_tot = num_fields + num_fields_side
    x_sp = xx[:, :F_tot].astype(jnp.int32) + params['offsets'][None, :]
    x_dense = xx[:, F_tot:].astype(jnp.bfloat16)

    rows = params['table'][x_sp].astype(jnp.float32)             # (B, F_tot, 128)

    # FeaturesLinear
    lin = jnp.sum(rows[:, :, LIN], axis=1) + r['lin_bias']
    # FactorizationMachine over the list [embed_x_id, embed_x_side]
    e_id = rows[:, :num_fields, :D]
    e_side = rows[:, num_fields:, D:LIN]

    def fm_part(e):
        return jnp.sum(e, axis=1) ** 2 - jnp.sum(e ** 2, axis=1)

    ix = jnp.concatenate([fm_part(e_id), fm_part(e_side)], axis=1)
    fm = 0.5 * jnp.sum(ix, axis=1)

    # MLP (BN folded, eval-mode dropout = identity)
    h = jnp.dot(x_dense, r['w1'], preferred_element_type=jnp.float32) + r['b1'][None, :]
    h = jnp.maximum(h, 0.0)
    h = jnp.dot(h.astype(jnp.bfloat16), r['w2'],
                preferred_element_type=jnp.float32) + r['b2'][None, :]
    h = jnp.maximum(h, 0.0)
    mlp = jnp.dot(h, r['wo']) + r['bo']

    y = lin + fm + mlp
    z = jnp.exp(-jnp.abs(y))
    return jnp.where(y >= 0.0, 1.0 / (1.0 + z), z / (1.0 + z))


# ----------------------------------------------------------------------------
if __name__ == "__main__":
    sparse_id_dims = [13, 27, 31]     # 3 id fields
    sparse_side_dims = [7, 11]        # 2 side fields
    dense_dim = 8
    embed_dim = 16
    embed_dim_side = 8
    mlp_dims = (32, 16)
    B = 200                           # padded to 2 x 256 rows inside the wrapper

    key = jax.random.PRNGKey(0)
    kp, kid, kside, kdense = jax.random.split(key, 4)
    params = build_params(kp, sparse_id_dims, sparse_side_dims, dense_dim,
                          embed_dim, embed_dim_side, mlp_dims)

    # xx = [sparse_id | sparse_side | dense]
    x_id = jnp.stack([jax.random.randint(jax.random.fold_in(kid, i), (B,), 0, d)
                      for i, d in enumerate(sparse_id_dims)], axis=1)
    x_side = jnp.stack([jax.random.randint(jax.random.fold_in(kside, i), (B,), 0, d)
                        for i, d in enumerate(sparse_side_dims)], axis=1)
    x_dense = jax.random.randint(kdense, (B, dense_dim), 0, 5)
    xx = jnp.concatenate([x_id, x_side, x_dense], axis=1).astype(jnp.int32)

    out = model_apply(params, xx, len(sparse_id_dims), len(sparse_side_dims))
    out = jax.block_until_ready(out)
    assert out.shape == (B,)

    ref = model_reference(params, xx, len(sparse_id_dims), len(sparse_side_dims))
    np.testing.assert_allclose(np.asarray(out), np.asarray(ref), rtol=1e-4, atol=1e-4)
    print("KERNEL_OK")
</pallas_src>

<mosaic_0001>
module attributes {stable_mosaic.version = 11 : i64} {
  func.func @_deepfm_kernel(%arg0: i32, %arg1: memref<256x5xi32, #tpu.memory_space<vmem>>, %arg2: memref<256x8xbf16, #tpu.memory_space<vmem>>, %arg3: memref<128x128xbf16, #tpu.memory_space<vmem>>, %arg4: memref<8x128xf32, #tpu.memory_space<vmem>>, %arg5: memref<8x128xbf16, #tpu.memory_space<vmem>>, %arg6: memref<128x128xbf16, #tpu.memory_space<vmem>>, %arg7: memref<1x1xf32, #tpu.memory_space<smem>>, %arg8: memref<1x256xf32, #tpu.memory_space<vmem>>) attributes {dimension_semantics = [#tpu.dimension_semantics<parallel>], iteration_bounds = array<i64: 2>, scalar_prefetch = 0 : i64, scratch_operands = 0 : i64, tpu.core_type = #tpu.core_type<tc>, window_params = [{transform_indices = @transform_0, window_bounds = array<i64: 256, 5>}, {transform_indices = @transform_1, window_bounds = array<i64: 256, 8>}, {pipeline_mode = #tpu.pipeline_mode<synchronous>, transform_indices = @transform_2, window_bounds = array<i64: 128, 128>}, {pipeline_mode = #tpu.pipeline_mode<synchronous>, transform_indices = @transform_3, window_bounds = array<i64: 8, 128>}, {pipeline_mode = #tpu.pipeline_mode<synchronous>, transform_indices = @transform_4, window_bounds = array<i64: 8, 128>}, {pipeline_mode = #tpu.pipeline_mode<synchronous>, transform_indices = @transform_5, window_bounds = array<i64: 128, 128>}, {transform_indices = @transform_6, window_bounds = array<i64: 1, 1>}, {transform_indices = @transform_7, window_bounds = array<i64: 1, 256>}]} {
    %c0 = arith.constant 0 : index
    %c0_0 = arith.constant 0 : index
    %0 = vector.load %arg1[%c0, %c0_0] : memref<256x5xi32, #tpu.memory_space<vmem>>, vector<256x5xi32>
    %1 = tpu.iota {dimensions = array<i32: 1>} : vector<256x128xi32>
    %cst = arith.constant 0.000000e+00 : f32
    %2 = vector.broadcast %cst : f32 to vector<256x128xf32>
    %3 = vector.extract_strided_slice %0 {offsets = [0, 0], sizes = [256, 1], strides = [1, 1]} : vector<256x5xi32> to vector<256x1xi32>
    %4 = vector.broadcast %3 : vector<256x1xi32> to vector<256x128xi32>
    %5 = arith.cmpi eq, %1, %4 : vector<256x128xi32>
    %6 = arith.extui %5 : vector<256x128xi1> to vector<256x128xi32>
    %7 = arith.sitofp %6 : vector<256x128xi32> to vector<256x128xf32>
    %8 = arith.addf %2, %7 : vector<256x128xf32>
    %9 = vector.extract_strided_slice %0 {offsets = [0, 1], sizes = [256, 1], strides = [1, 1]} : vector<256x5xi32> to vector<256x1xi32>
    %10 = vector.broadcast %9 : vector<256x1xi32> to vector<256x128xi32>
    %11 = arith.cmpi eq, %1, %10 : vector<256x128xi32>
    %12 = arith.extui %11 : vector<256x128xi1> to vector<256x128xi32>
    %13 = arith.sitofp %12 : vector<256x128xi32> to vector<256x128xf32>
    %14 = arith.addf %8, %13 : vector<256x128xf32>
    %15 = vector.extract_strided_slice %0 {offsets = [0, 2], sizes = [256, 1], strides = [1, 1]} : vector<256x5xi32> to vector<256x1xi32>
    %16 = vector.broadcast %15 : vector<256x1xi32> to vector<256x128xi32>
    %17 = arith.cmpi eq, %1, %16 : vector<256x128xi32>
    %18 = arith.extui %17 : vector<256x128xi1> to vector<256x128xi32>
    %19 = arith.sitofp %18 : vector<256x128xi32> to vector<256x128xf32>
    %20 = arith.addf %14, %19 : vector<256x128xf32>
    %21 = vector.extract_strided_slice %0 {offsets = [0, 3], sizes = [256, 1], strides = [1, 1]} : vector<256x5xi32> to vector<256x1xi32>
    %22 = vector.broadcast %21 : vector<256x1xi32> to vector<256x128xi32>
    %23 = arith.cmpi eq, %1, %22 : vector<256x128xi32>
    %24 = arith.extui %23 : vector<256x128xi1> to vector<256x128xi32>
    %25 = arith.sitofp %24 : vector<256x128xi32> to vector<256x128xf32>
    %26 = arith.addf %20, %25 : vector<256x128xf32>
    %27 = vector.extract_strided_slice %0 {offsets = [0, 4], sizes = [256, 1], strides = [1, 1]} : vector<256x5xi32> to vector<256x1xi32>
    %28 = vector.broadcast %27 : vector<256x1xi32> to vector<256x128xi32>
    %29 = arith.cmpi eq, %1, %28 : vector<256x128xi32>
    %30 = arith.extui %29 : vector<256x128xi1> to vector<256x128xi32>
    %31 = arith.sitofp %30 : vector<256x128xi32> to vector<256x128xf32>
    %32 = arith.addf %26, %31 : vector<256x128xf32>
    %c0_1 = arith.constant 0 : index
    %c0_2 = arith.constant 0 : index
    %33 = vector.load %arg4[%c0_1, %c0_2] : memref<8x128xf32, #tpu.memory_space<vmem>>, vector<8x128xf32>
    %34 = vector.extract_strided_slice %33 {offsets = [0, 0], sizes = [1, 128], strides = [1, 1]} : vector<8x128xf32> to vector<1x128xf32>
    %35 = vector.extract_strided_slice %33 {offsets = [1, 0], sizes = [1, 128], strides = [1, 1]} : vector<8x128xf32> to vector<1x128xf32>
    %36 = vector.extract_strided_slice %33 {offsets = [2, 0], sizes = [1, 128], strides = [1, 1]} : vector<8x128xf32> to vector<1x128xf32>
    %37 = vector.extract_strided_slice %33 {offsets = [3, 0], sizes = [1, 128], strides = [1, 1]} : vector<8x128xf32> to vector<1x128xf32>
    %38 = vector.extract_strided_slice %33 {offsets = [4, 0], sizes = [1, 128], strides = [1, 1]} : vector<8x128xf32> to vector<1x128xf32>
    %39 = vector.extract_strided_slice %33 {offsets = [5, 0], sizes = [1, 128], strides = [1, 1]} : vector<8x128xf32> to vector<1x128xf32>
    %40 = arith.truncf %32 : vector<256x128xf32> to vector<256x128xbf16>
    %c0_3 = arith.constant 0 : index
    %c0_4 = arith.constant 0 : index
    %41 = vector.load %arg3[%c0_3, %c0_4] : memref<128x128xbf16, #tpu.memory_space<vmem>>, vector<128x128xbf16>
    %cst_5 = arith.constant dense<0.000000e+00> : vector<256x128xf32>
    %42 = tpu.matmul %40, %41, %cst_5 {dimension_numbers = #tpu.dot_dimension_numbers<[1], [0], [0], [1], [0, 0, 1, 1], [], []>} : vector<256x128xbf16>, vector<128x128xbf16>, vector<256x128xf32> -> vector<256x128xf32>
    %43 = vector.broadcast %35 : vector<1x128xf32> to vector<256x128xf32>
    %44 = arith.mulf %43, %42 : vector<256x128xf32>
    %45 = vector.broadcast %36 : vector<1x128xf32> to vector<256x128xf32>
    %46 = arith.addf %44, %45 : vector<256x128xf32>
    %47 = arith.mulf %42, %46 : vector<256x128xf32>
    %cst_6 = arith.constant dense<0.000000e+00> : vector<256xf32>
    %48 = vector.multi_reduction <add>, %47, %cst_6 [1] : vector<256x128xf32> to vector<256xf32>
    %49 = vector.broadcast %34 : vector<1x128xf32> to vector<256x128xf32>
    %50 = arith.mulf %32, %49 : vector<256x128xf32>
    %cst_7 = arith.constant dense<0.000000e+00> : vector<256xf32>
    %51 = vector.multi_reduction <add>, %50, %cst_7 [1] : vector<256x128xf32> to vector<256xf32>
    %c0_8 = arith.constant 0 : index
    %c0_9 = arith.constant 0 : index
    %52 = vector.load %arg2[%c0_8, %c0_9] : memref<256x8xbf16, #tpu.memory_space<vmem>>, vector<256x8xbf16>
    %c0_10 = arith.constant 0 : index
    %c0_11 = arith.constant 0 : index
    %53 = vector.load %arg5[%c0_10, %c0_11] : memref<8x128xbf16, #tpu.memory_space<vmem>>, vector<8x128xbf16>
    %cst_12 = arith.constant dense<0.000000e+00> : vector<256x128xf32>
    %54 = tpu.matmul %52, %53, %cst_12 {dimension_numbers = #tpu.dot_dimension_numbers<[1], [0], [0], [1], [0, 0, 1, 1], [], []>} : vector<256x8xbf16>, vector<8x128xbf16>, vector<256x128xf32> -> vector<256x128xf32>
    %55 = vector.broadcast %37 : vector<1x128xf32> to vector<256x128xf32>
    %56 = arith.addf %54, %55 : vector<256x128xf32>
    %cst_13 = arith.constant 0.000000e+00 : f32
    %57 = vector.broadcast %cst_13 : f32 to vector<256x128xf32>
    %58 = arith.maximumf %56, %57 : vector<256x128xf32>
    %59 = arith.truncf %58 : vector<256x128xf32> to vector<256x128xbf16>
    %c0_14 = arith.constant 0 : index
    %c0_15 = arith.constant 0 : index
    %60 = vector.load %arg6[%c0_14, %c0_15] : memref<128x128xbf16, #tpu.memory_space<vmem>>, vector<128x128xbf16>
    %cst_16 = arith.constant dense<0.000000e+00> : vector<256x128xf32>
    %61 = tpu.matmul %59, %60, %cst_16 {dimension_numbers = #tpu.dot_dimension_numbers<[1], [0], [0], [1], [0, 0, 1, 1], [], []>} : vector<256x128xbf16>, vector<128x128xbf16>, vector<256x128xf32> -> vector<256x128xf32>
    %62 = vector.broadcast %38 : vector<1x128xf32> to vector<256x128xf32>
    %63 = arith.addf %61, %62 : vector<256x128xf32>
    %cst_17 = arith.constant 0.000000e+00 : f32
    %64 = vector.broadcast %cst_17 : f32 to vector<256x128xf32>
    %65 = arith.maximumf %63, %64 : vector<256x128xf32>
    %66 = vector.broadcast %39 : vector<1x128xf32> to vector<256x128xf32>
    %67 = arith.mulf %65, %66 : vector<256x128xf32>
    %cst_18 = arith.constant dense<0.000000e+00> : vector<256xf32>
    %68 = vector.multi_reduction <add>, %67, %cst_18 [1] : vector<256x128xf32> to vector<256xf32>
    %69 = arith.subf %48, %51 : vector<256xf32>
    %70 = arith.addf %69, %68 : vector<256xf32>
    %c0_19 = arith.constant 0 : index
    %c0_20 = arith.constant 0 : index
    %71 = memref.load %arg7[%c0_19, %c0_20] : memref<1x1xf32, #tpu.memory_space<smem>>
    %72 = vector.broadcast %71 : f32 to vector<256xf32>
    %73 = arith.addf %70, %72 : vector<256xf32>
    %74 = vector.shape_cast %73 : vector<256xf32> to vector<1x256xf32>
    %75 = math.absf %74 : vector<1x256xf32>
    %cst_21 = arith.constant 0.000000e+00 : f32
    %76 = vector.broadcast %cst_21 : f32 to vector<1x256xf32>
    %77 = arith.subf %76, %75 : vector<1x256xf32>
    %78 = math.exp %77 : vector<1x256xf32>
    %cst_22 = arith.constant 1.000000e+00 : f32
    %79 = vector.broadcast %cst_22 : f32 to vector<1x256xf32>
    %80 = arith.addf %79, %78 : vector<1x256xf32>
    %81 = tpu.reciprocal %80 {approx = true} : vector<1x256xf32> -> vector<1x256xf32>
    %82 = arith.mulf %80, %81 : vector<1x256xf32>
    %cst_23 = arith.constant 2.000000e+00 : f32
    %83 = vector.broadcast %cst_23 : f32 to vector<1x256xf32>
    %84 = arith.subf %83, %82 : vector<1x256xf32>
    %85 = arith.mulf %81, %84 : vector<1x256xf32>
    %86 = arith.mulf %80, %85 : vector<1x256xf32>
    %cst_24 = arith.constant 2.000000e+00 : f32
    %87 = vector.broadcast %cst_24 : f32 to vector<1x256xf32>
    %88 = arith.subf %87, %86 : vector<1x256xf32>
    %89 = arith.mulf %85, %88 : vector<1x256xf32>
    %cst_25 = arith.constant 0.000000e+00 : f32
    %90 = vector.broadcast %cst_25 : f32 to vector<1x256xf32>
    %91 = arith.cmpf oge, %74, %90 : vector<1x256xf32>
    %cst_26 = arith.constant 1.000000e+00 : f32
    %92 = vector.broadcast %cst_26 : f32 to vector<1x256xf32>
    %93 = arith.subf %92, %89 : vector<1x256xf32>
    %94 = arith.select %91, %89, %93 : vector<1x256xi1>, vector<1x256xf32>
    %c0_27 = arith.constant 0 : index
    %c0_28 = arith.constant 0 : index
    %95 = vector.load %arg8[%c0_27, %c0_28] : memref<1x256xf32, #tpu.memory_space<vmem>>, vector<1x256xf32>
    tpu.vector_store %arg8[%c0_27, %c0_28], %94 {strides = array<i32>} : memref<1x256xf32, #tpu.memory_space<vmem>>, vector<1x256xf32>,
    return
  }
  func.func @transform_0(%arg0: i32) -> (i32, i32) {
    %c0_i32 = arith.constant 0 : i32
    %c0_i32_0 = arith.constant 0 : i32
    return %arg0, %c0_i32 : i32, i32
  }
  func.func @transform_1(%arg0: i32) -> (i32, i32) {
    %c0_i32 = arith.constant 0 : i32
    %c0_i32_0 = arith.constant 0 : i32
    return %arg0, %c0_i32 : i32, i32
  }
  func.func @transform_2(%arg0: i32) -> (i32, i32) {
    %c0_i32 = arith.constant 0 : i32
    %c0_i32_0 = arith.constant 0 : i32
    %c0_i32_1 = arith.constant 0 : i32
    return %c0_i32, %c0_i32_0 : i32, i32
  }
  func.func @transform_3(%arg0: i32) -> (i32, i32) {
    %c0_i32 = arith.constant 0 : i32
    %c0_i32_0 = arith.constant 0 : i32
    %c0_i32_1 = arith.constant 0 : i32
    return %c0_i32, %c0_i32_0 : i32, i32
  }
  func.func @transform_4(%arg0: i32) -> (i32, i32) {
    %c0_i32 = arith.constant 0 : i32
    %c0_i32_0 = arith.constant 0 : i32
    %c0_i32_1 = arith.constant 0 : i32
    return %c0_i32, %c0_i32_0 : i32, i32
  }
  func.func @transform_5(%arg0: i32) -> (i32, i32) {
    %c0_i32 = arith.constant 0 : i32
    %c0_i32_0 = arith.constant 0 : i32
    %c0_i32_1 = arith.constant 0 : i32
    return %c0_i32, %c0_i32_0 : i32, i32
  }
  func.func @transform_6(%arg0: i32) -> (i32, i32) {
    %c0_i32 = arith.constant 0 : i32
    %c0_i32_0 = arith.constant 0 : i32
    %c0_i32_1 = arith.constant 0 : i32
    return %c0_i32, %c0_i32_0 : i32, i32
  }
  func.func @transform_7(%arg0: i32) -> (i32, i32) {
    %c0_i32 = arith.constant 0 : i32
    %c0_i32_0 = arith.constant 0 : i32
    return %c0_i32, %arg0 : i32, i32
  }
}

</mosaic_0001>

<bundles_post_ra>
// kernel: tpu_custom_call.1
= control target key start
LH: loop header
LB: loop body
LE: loop exit
PB: predicated region body
PF: predicated region fallthrough
CT: control target
= control target key end

     0   :  { %s10218_s0 = inlined_call_operand.vmem [shape: s32[512,5], index: 0, kind: input, shape index: {}]   ;;  %s10219_s1 = inlined_call_operand.vmem [shape: bf16[512,8], index: 1, kind: input, shape index: {}]   ;;  %s10220_s2 = inlined_call_operand.vmem [shape: bf16[128,128], index: 2, kind: input, shape index: {}]   ;;  %s10221_s3 = inlined_call_operand.vmem [shape: f32[8,128], index: 3, kind: input, shape index: {}]   ;;  %s10222_s4 = inlined_call_operand.vmem [shape: bf16[8,128], index: 4, kind: input, shape index: {}]   ;;  %s10223_s5 = inlined_call_operand.vmem [shape: bf16[128,128], index: 5, kind: input, shape index: {}]   ;;  %s10224_s6 = inlined_call_operand.<no memory space> [shape: f32[1,1], index: 6, kind: input, shape index: {}]   ;;  %s10225_s7 = inlined_call_operand.hbm [shape: f32[1,512], index: 7, kind: output, shape index: {}]  }
   0x1   :  { %12 = sst [smem:[#allocation2]] %s10224_s6 }
   0x2   :  { %13 = vsyncpa [#allocation4], 0 }
   0x3   :  { %15 = vsyncpa [#allocation4 + $0x1], 0  ;;  %s7092_s26 = smov 0   ;;  %s7094_s27 = smov 0  }
   0x4   :  { %s7096_s28 = smov 0   ;;  %s7098_s29 = smov 0  }
   0x5 LB: > { %s6300_s6 = sadd.s32 4294967295, %s7039_s29   ;;  %s6301_s30 = sadd.s32 4294967294, %s7039_s29   ;;  %s7039_s29 = sphi %s7098_s29, %s10557_s29   ;;  %s7035_s28 = sphi %s7096_s28, %s10556_s28   ;;  %s7031_s27 = sphi %s7094_s27, %s10555_s27   ;;  %s7027_s26 = sphi %s7092_s26, %s10554_s26  }
   0x6   : > { %s7115_s8 = sadd.s32 1, %s7039_s29   ;;  %s185_s9 = sadd.s32 1, %s7035_s28 }
   0x7   : > { %s182_s10 = ssub.s32 %s7039_s29, %s7115_s8  ;;  %p195_p0 = scmp.ne.s32.totalorder %s7035_s28, %s7031_s27 }
   0x8   : > { %p183_p1 = scmp.eq.s32.totalorder %s182_s10, 0  ;;  %p196_p2 = scmp.eq.s32.totalorder %s6300_s6, 1 }
   0x9   : > { %p201_p3 = scmp.ne.s32.totalorder %s7031_s27, %s7027_s26  ;;  %p202_p4 = scmp.eq.s32.totalorder %s6301_s30, 1 }
   0xa   : > { %s7125_s11 = scalar_select %p183_p1, %s7035_s28, %s185_s9  }
   0xb   : > { %p7127_p5 = por %p196_p2, %p195_p0  ;;  %p7131_p6 = por %p202_p4, %p201_p3 }
   0xc   : > { %p6304_p7 = scmp.ge.s32.totalorder %s7039_s29, 1  ;;  %p253_p8 = scmp.lt.s32.totalorder %s7039_s29, 3 }
   0xe   : > { %p254_p9 = pnand %p6304_p7, %p253_p8 }
  0x10   : > { %257 = sbr.rel (%p254_p9) target bundleno = 1648 (0x670), region = 48 }
  0x17   : > { %s7137_s14 = sshll.u32 %s6300_s6, 5  ;;  %v10226_v0 = vmov 0   ;;  %v10234_v33 = vmov 1   ;;  %v10228_v34 = vmov 4   ;;  %v10230_v35 = vmov 2   ;;  %v6810_v59 = vld [vmem:[%s10220_s2] sm:$0xff]  }
  0x18   : > { %6770 = vset.pattern.permute.xlu1 %v10226_v0  ;;  %6769 = vset.pattern.permute.xlu0 %v10226_v0  ;;  %p291_p10 = scmp.lt.s32.totalorder %s7137_s14, 63  ;;  %v10232_v36 = vmov 3   ;;  %v6811_v62 = vld [vmem:[%s10220_s2 + $0x8] sm:$0xff]   ;;  %s287_s17 = sand.u32 1, %s7031_s27  }
  0x19   : > { %6589 = vmatprep.subr.bf16.mxu0 %v6810_v59  ;;  %s6305_s18 = sshll.u32 %s287_s17, 1  ;;  %s10174_s24 = scalar_lea.hbm %s10225_s7, %s7137_s14 }
  0x1a   : > { %s7143_s15 = scalar_select %p291_p10, %s7137_s14, 63  ;;  %6590 = vmatpush3.bf16.msra.mxu0 %v6810_v59 }
  0x1b   : > { %6591 = vmatprep.subr.bf16.mxu0 %v6811_v62  ;;  %s289_s20 = scalar_lea.vmem [#allocation3], %s6305_s18  ;;  %s7048_s6 = smov [#allocation3]  }
  0x1c   : > { %s6307_s16 = sshll.u32 %s7143_s15, 3  ;;  %s6230_s21 = sshll.u32 %s289_s20, 4  ;;  %s10176_s21 = int_to_ptr.vmem [resolvable:$true] %s6230_s21 }
  0x1d   : > { %s7149_s19 = scalar_lea.vmem %s10218_s0, %s6307_s16  ;;  %s2772_s16 = sld [smem:[#allocation2]] }
  0x1e   : > { %v7152_v1 = vld [vmem:[%s7149_s19 + $0x10] sm:$0xff]  ;;  %v7155_v2 = vld [vmem:[%s7149_s19] sm:$0xff]  ;;  %v7160_v3 = vld [vmem:[%s7149_s19 + $0x18] sm:$0xff]  ;;  %6592 = vmatpush3.bf16.msra.mxu0 %v6811_v62  ;;  %s6977_s25 = scalar_lea.vmem %s10176_s21, 32 }
  0x1f   : > { %345 = vperm.xlu1 %6770, %v7152_v1   ;;  %339 = vperm.xlu0 %6769, %v7155_v2   ;;  %v7163_v4 = vld [vmem:[%s7149_s19 + $0x8] sm:$0xff]  ;;  %v7171_v6 = vld [vmem:[%s7149_s19 + $0x20] sm:$0xff]  ;;  %v7176_v7 = vld [vmem:[%s7149_s19 + $0x38] sm:$0xff]  ;;  %p6978_p11 = scmp.ne.s32.totalorder %s10176_s21, %s6977_s25 }
  0x20   : > { %v7168_v5 = vld [vmem:[%s7149_s19 + $0x28] sm:$0xff]  ;;  %v7179_v8 = vld [vmem:[%s7149_s19 + $0x30] sm:$0xff]  ;;  %v7185_v10 = vld [vmem:[%s7149_s19 + $0x40] sm:$0xff] }
  0x21   : > { %v7182_v9 = vld [vmem:[%s7149_s19 + $0x48] sm:$0xff]  ;;  %v7192_v11 = vld [vmem:[%s7149_s19 + $0x58] sm:$0xff]  ;;  %v7195_v12 = vld [vmem:[%s7149_s19 + $0x50] sm:$0xff]  ;;  %p6979_p12 = pnand %p6978_p11, %p7127_p5 }
  0x22   : > { %v7200_v13 = vld [vmem:[%s7149_s19 + $0x68] sm:$0xff]  ;;  %v7203_v14 = vld [vmem:[%s7149_s19 + $0x60] sm:$0xff]  ;;  %v7208_v15 = vld [vmem:[%s7149_s19 + $0x78] sm:$0xff] }
  0x23   : > { %348 = vperm.xlu1 %6770, %v7160_v3   ;;  %342 = vperm.xlu0 %6769, %v7163_v4   ;;  %v7211_v16 = vld [vmem:[%s7149_s19 + $0x70] sm:$0xff]  ;;  %v7216_v17 = vld [vmem:[%s7149_s19 + $0x88] sm:$0xff]  ;;  %v7219_v18 = vld [vmem:[%s7149_s19 + $0x80] sm:$0xff]  ;;  %p6980_p13 = pneg %p6979_p12 }
  0x24   : > { %v7224_v19 = vld [vmem:[%s7149_s19 + $0x98] sm:$0xff]  ;;  %v7227_v20 = vld [vmem:[%s7149_s19 + $0x90] sm:$0xff]  ;;  %v7232_v21 = vld [vmem:[%s7149_s19 + $0xa8] sm:$0xff] }
  0x25   : > { %v7235_v22 = vld [vmem:[%s7149_s19 + $0xa0] sm:$0xff]  ;;  %v7240_v23 = vld [vmem:[%s7149_s19 + $0xb8] sm:$0xff]  ;;  %v7243_v24 = vld [vmem:[%s7149_s19 + $0xb0] sm:$0xff] }
  0x26   : > { %v7248_v25 = vld [vmem:[%s7149_s19 + $0xc8] sm:$0xff]  ;;  %v7251_v26 = vld [vmem:[%s7149_s19 + $0xc0] sm:$0xff]  ;;  %v7256_v27 = vld [vmem:[%s7149_s19 + $0xd8] sm:$0xff] }
  0x27   : > { %354 = vperm.xlu1 %6770, %v7168_v5   ;;  %351 = vperm.xlu0 %6769, %v7171_v6   ;;  %10323 = vst [vmem:[#allocation6_spill] sm:$0xff] %v7251_v26  ;;  %10324 = vst [vmem:[#allocation7_spill] sm:$0xff] %v7256_v27  ;;  %v7259_v28 = vld [vmem:[%s7149_s19 + $0xd0] sm:$0xff]  ;;  %v7264_v29 = vld [vmem:[%s7149_s19 + $0xe8] sm:$0xff] }
  0x28   : > { %v7267_v30 = vld [vmem:[%s7149_s19 + $0xe0] sm:$0xff]  ;;  %v7272_v31 = vld [vmem:[%s7149_s19 + $0xf8] sm:$0xff]  ;;  %v334_v32 = vld [vmem:[%s7149_s19 + $0xf0] sm:$0xff] }
  0x29   : > { %v6814_v62 = vld [vmem:[%s10220_s2 + $0x20] sm:$0xff]  }
  0x2b   : > { %360 = vperm.xlu1 %6770, %v7176_v7   ;;  %357 = vperm.xlu0 %6769, %v7179_v8  }
  0x2f   : > { %366 = vperm.xlu1 %6770, %v7182_v9   ;;  %363 = vperm.xlu0 %6769, %v7185_v10  }
  0x33   : > { %372 = vperm.xlu1 %6770, %v7192_v11   ;;  %369 = vperm.xlu0 %6769, %v7195_v12  }
  0x37   : > { %378 = vperm.xlu1 %6770, %v7200_v13   ;;  %375 = vperm.xlu0 %6769, %v7203_v14  }
  0x3b   : > { %384 = vperm.xlu1 %6770, %v7208_v15   ;;  %381 = vperm.xlu0 %6769, %v7211_v16  }
  0x3f   : > { %390 = vperm.xlu1 %6770, %v7216_v17   ;;  %387 = vperm.xlu0 %6769, %v7219_v18  }
  0x43   : > { %396 = vperm.xlu1 %6770, %v7224_v19   ;;  %393 = vperm.xlu0 %6769, %v7227_v20  }
  0x47   : > { %402 = vperm.xlu1 %6770, %v7232_v21   ;;  %399 = vperm.xlu0 %6769, %v7235_v22  }
  0x4b   : > { %408 = vperm.xlu1 %6770, %v7240_v23   ;;  %405 = vperm.xlu0 %6769, %v7243_v24  }
  0x4f   : > { %414 = vperm.xlu1 %6770, %v7248_v25   ;;  %411 = vperm.xlu0 %6769, %v7251_v26  }
  0x53   : > { %420 = vperm.xlu1 %6770, %v7256_v27   ;;  %417 = vperm.xlu0 %6769, %v7259_v28  }
  0x57   : > { %426 = vperm.xlu1 %6770, %v7264_v29   ;;  %423 = vperm.xlu0 %6769, %v7267_v30  }
  0x5b   : > { %432 = vperm.xlu1 %6770, %v7272_v31   ;;  %429 = vperm.xlu0 %6769, %v334_v32  }
  0x5f   : > { %6771 = vset.pattern.permute.xlu1 %v10234_v33  ;;  %6775 = vset.pattern.permute.xlu0 %v10228_v34 }
  0x60   : > { %566 = vperm.xlu1 %6771, %v7163_v4   ;;  %1238 = vperm.xlu0 %6775, %v7163_v4  }
  0x64   : > { %569 = vperm.xlu1 %6771, %v7152_v1   ;;  %1250 = vperm.xlu0 %6775, %v7168_v5  }
  0x68   : > { %6772 = vset.pattern.permute.xlu1 %v10230_v35  ;;  %1262 = vperm.xlu0 %6775, %v7182_v9  }
  0x69   : > { %787 = vperm.xlu1 %6772, %v7155_v2  }
  0x6c   : > { %1274 = vperm.xlu0 %6775, %v7200_v13  }
  0x6d   : > { %793 = vperm.xlu1 %6772, %v7152_v1  }
  0x70   : > { %1286 = vperm.xlu0 %6775, %v7216_v17  }
  0x71   : > { %796 = vperm.xlu1 %6772, %v7160_v3  }
  0x74   : > { %1298 = vperm.xlu0 %6775, %v7232_v21  }
  0x75   : > { %6773 = vset.pattern.permute.xlu1 %v10232_v36 }
  0x76   : > { %1014 = vperm.xlu1 %6773, %v7163_v4  }
  0x78   : > { %1310 = vperm.xlu0 %6775, %v7248_v25  }
  0x7a   : > { %1017 = vperm.xlu1 %6773, %v7152_v1  }
  0x7c   : > { %6800 = vset.pattern.permute.xlu0 %v10234_v33 }
  0x7d   : > { %563 = vperm.xlu0 %6800, %v7155_v2  }
  0x7e   : > { %6774 = vset.pattern.permute.xlu1 %v10228_v34 }
  0x7f   : > { %1235 = vperm.xlu1 %6774, %v7155_v2  }
  0x81   : > { %572 = vperm.xlu0 %6800, %v7160_v3  }
  0x83   : > { %1241 = vperm.xlu1 %6774, %v7152_v1  }
  0x85   : > { %575 = vperm.xlu0 %6800, %v7171_v6  }
  0x87   : > { %1244 = vperm.xlu1 %6774, %v7160_v3  }
  0x89   : > { %584 = vperm.xlu0 %6800, %v7176_v7  }
  0x8b   : > { %6776 = vset.pattern.permute.xlu1 %v10234_v33 }
  0x8c   : > { %578 = vperm.xlu1 %6776, %v7168_v5  }
  0x8d   : > { %587 = vperm.xlu0 %6800, %v7185_v10  }
  0x90   : > { %581 = vperm.xlu1 %6776, %v7179_v8  }
  0x91   : > { %596 = vperm.xlu0 %6800, %v7192_v11  }
  0x94   : > { %6777 = vset.pattern.permute.xlu1 %v10230_v35 }
  0x95   : > { %799 = vperm.xlu1 %6777, %v7171_v6   ;;  %599 = vperm.xlu0 %6800, %v7203_v14  }
  0x99   : > { %805 = vperm.xlu1 %6777, %v7179_v8   ;;  %608 = vperm.xlu0 %6800, %v7208_v15  }
  0x9d   : > { %808 = vperm.xlu1 %6777, %v7176_v7   ;;  %611 = vperm.xlu0 %6800, %v7219_v18  }
  0x9e   : > { %v7315_v37 = vpop.permute.xlu1 %345  ;;  %v7317_v38 = vpop.permute.xlu0 %339 }
  0xa1   : > { %6778 = vset.pattern.permute.xlu1 %v10232_v36  ;;  %620 = vperm.xlu0 %6800, %v7224_v19  }
  0xa2   : > { %v7321_v39 = vpop.permute.xlu1 %348  ;;  %1026 = vperm.xlu1 %6778, %v7168_v5   ;;  %v7324_v40 = vpop.permute.xlu0 %342 }
  0xa5   : > { %623 = vperm.xlu0 %6800, %v7235_v22  }
  0xa6   : > { %v7327_v41 = vpop.permute.xlu1 %354  ;;  %1029 = vperm.xlu1 %6778, %v7179_v8   ;;  %v7330_v42 = vpop.permute.xlu0 %351 }
  0xa9   : > { %632 = vperm.xlu0 %6800, %v7240_v23  }
  0xaa   : > { %v7333_v43 = vpop.permute.xlu1 %360  ;;  %6779 = vset.pattern.permute.xlu1 %v10228_v34  ;;  %v7336_v44 = vpop.permute.xlu0 %357 }
  0xab   : > { %1247 = vperm.xlu1 %6779, %v7171_v6  }
  0xad   : > { %635 = vperm.xlu0 %6800, %v7251_v26  }
  0xae   : > { %v7340_v45 = vpop.permute.xlu1 %366  ;;  %v7342_v46 = vpop.permute.xlu0 %363 }
  0xaf   : > { %1253 = vperm.xlu1 %6779, %v7179_v8  }
  0xb1   : > { %644 = vperm.xlu0 %6800, %v7256_v27  }
  0xb2   : > { %v7346_v47 = vpop.permute.xlu1 %372  ;;  %v7348_v48 = vpop.permute.xlu0 %369 }
  0xb3   : > { %1256 = vperm.xlu1 %6779, %v7176_v7  }
  0xb5   : > { %647 = vperm.xlu0 %6800, %v7267_v30  }
  0xb6   : > { %v7352_v49 = vpop.permute.xlu1 %378  ;;  %v7354_v50 = vpop.permute.xlu0 %375 }
  0xb7   : > { %10325 = vst [vmem:[#allocation8_spill] sm:$0xff] %v7352_v49  ;;  %10326 = vst [vmem:[#allocation9_spill] sm:$0xff] %v7354_v50  ;;  %6780 = vset.pattern.permute.xlu1 %v10234_v33 }
  0xb8   : > { %590 = vperm.xlu1 %6780, %v7182_v9  }
  0xb9   : > { %656 = vperm.xlu0 %6800, %v7272_v31  }
  0xba   : > { %v7359_v51 = vpop.permute.xlu1 %384  ;;  %v7361_v52 = vpop.permute.xlu0 %381 }
  0xbb   : > { %10327 = vst [vmem:[#allocation10_spill] sm:$0xff] %v7359_v51  ;;  %10328 = vst [vmem:[#allocation11_spill] sm:$0xff] %v7361_v52  ;;  %v10358_v51 = vmov 0  }
  0xbc   : > { %593 = vperm.xlu1 %6780, %v7195_v12  }
  0xbd   : > { %6802 = vset.pattern.permute.xlu0 %v10230_v35 }
  0xbe   : > { %v7365_v53 = vpop.permute.xlu1 %390  ;;  %790 = vperm.xlu0 %6802, %v7163_v4   ;;  %v7368_v54 = vpop.permute.xlu0 %387  ;;  %v6812_v4 = vld [vmem:[%s10220_s2 + $0x10] sm:$0xff]  }
  0xbf   : > { %10329 = vst [vmem:[#allocation12_spill] sm:$0xff] %v7365_v53  ;;  %10330 = vst [vmem:[#allocation13_spill] sm:$0xff] %v7368_v54  ;;  %6593 = vmatprep.subr.bf16.mxu0 %v6812_v4 }
  0xc0   : > { %6781 = vset.pattern.permute.xlu1 %v10230_v35  ;;  %6594 = vmatpush3.bf16.msra.mxu0 %v6812_v4 }
  0xc1   : > { %811 = vperm.xlu1 %6781, %v7185_v10  }
  0xc2   : > { %v7372_v55 = vpop.permute.xlu1 %396  ;;  %802 = vperm.xlu0 %6802, %v7168_v5   ;;  %v7375_v56 = vpop.permute.xlu0 %393 }
  0xc3   : > { %10331 = vst [vmem:[#allocation14_spill] sm:$0xff] %v7372_v55  ;;  %10332 = vst [vmem:[#allocation15_spill] sm:$0xff] %v7375_v56 }
  0xc5   : > { %817 = vperm.xlu1 %6781, %v7195_v12  }
  0xc6   : > { %v7378_v57 = vpop.permute.xlu1 %402  ;;  %814 = vperm.xlu0 %6802, %v7182_v9   ;;  %v7381_v58 = vpop.permute.xlu0 %399 }
  0xc7   : > { %10333 = vst [vmem:[#allocation16_spill] sm:$0xff] %v7378_v57  ;;  %10334 = vst [vmem:[#allocation17_spill] sm:$0xff] %v7381_v58 }
  0xc9   : > { %820 = vperm.xlu1 %6781, %v7192_v11  }
  0xca   : > { %v7387_v60 = vpop.permute.xlu1 %408  ;;  %826 = vperm.xlu0 %6802, %v7200_v13   ;;  %v7390_v61 = vpop.permute.xlu0 %405 }
  0xcb   : > { %10335 = vst [vmem:[#allocation18_spill] sm:$0xff] %v7387_v60  ;;  %10336 = vst [vmem:[#allocation19_spill] sm:$0xff] %v7390_v61 }
  0xcd   : > { %6782 = vset.pattern.permute.xlu1 %v10232_v36 }
  0xce   : > { %v7396_v63 = vpop.permute.xlu1 %414  ;;  %1038 = vperm.xlu1 %6782, %v7182_v9   ;;  %838 = vperm.xlu0 %6802, %v7216_v17   ;;  %v7400_v1 = vpop.permute.xlu0 %411  ;;  %v6813_v9 = vld [vmem:[%s10220_s2 + $0x18] sm:$0xff]  }
  0xcf   : > { %10337 = vst [vmem:[#allocation20_spill] sm:$0xff] %v7396_v63  ;;  %10338 = vst [vmem:[#allocation21_spill] sm:$0xff] %v7400_v1  ;;  %6595 = vmatprep.subr.bf16.mxu0 %v6813_v9  ;;  %v10351_v1 = vmov 4  }
  0xd0   : > { %6596 = vmatpush3.bf16.msra.mxu0 %v6813_v9 }
  0xd1   : > { %6597 = vmatprep.subr.bf16.mxu0 %v6814_v62 }
  0xd2   : > { %v7405_v5 = vpop.permute.xlu1 %420  ;;  %1041 = vperm.xlu1 %6782, %v7195_v12   ;;  %850 = vperm.xlu0 %6802, %v7232_v21   ;;  %v7409_v8 = vpop.permute.xlu0 %417 }
  0xd3   : > { %10339 = vst [vmem:[#allocation22_spill] sm:$0xff] %v7405_v5  ;;  %10340 = vst [vmem:[#allocation23_spill] sm:$0xff] %v7409_v8 }
  0xd4   : > { %6598 = vmatpush3.bf16.msra.mxu0 %v6814_v62 }
  0xd6   : > { %v7414_v32 = vpop.permute.xlu1 %426  ;;  %6783 = vset.pattern.permute.xlu1 %v10228_v34  ;;  %862 = vperm.xlu0 %6802, %v7248_v25   ;;  %v7418_v59 = vpop.permute.xlu0 %423  ;;  %v6815_v34 = vld [vmem:[%s10220_s2 + $0x28] sm:$0xff]  }
  0xd7   : > { %10341 = vst [vmem:[#allocation24_spill] sm:$0xff] %v7414_v32  ;;  %10342 = vst [vmem:[#allocation25_spill] sm:$0xff] %v7418_v59  ;;  %1259 = vperm.xlu1 %6783, %v7185_v10   ;;  %6599 = vmatprep.subr.bf16.mxu0 %v6815_v34  ;;  %v10350_v32 = vmov 3  }
  0xd8   : > { %6600 = vmatpush3.bf16.msra.mxu0 %v6815_v34 }
  0xda   : > { %v7424_v4 = vpop.permute.xlu1 %432  ;;  %874 = vperm.xlu0 %6802, %v7264_v29   ;;  %v7427_v0 = vpop.permute.xlu0 %429 }
  0xdb   : > { %10343 = vst [vmem:[#allocation26_spill] sm:$0xff] %v7424_v4  ;;  %10344 = vst [vmem:[#allocation27_spill] sm:$0xff] %v7427_v0  ;;  %1265 = vperm.xlu1 %6783, %v7195_v12   ;;  %v6816_v12 = vld [vmem:[%s10220_s2 + $0x30] sm:$0xff]   ;;  %v10346_v0 = vmov 2  }
  0xdc   : > { %6601 = vmatprep.subr.bf16.mxu0 %v6816_v12 }
  0xdd   : > { %6602 = vmatpush3.bf16.msra.mxu0 %v6816_v12 }
  0xde   : > { %6804 = vset.pattern.permute.xlu0 %v10232_v36 }
  0xdf   : > { %v7434_v9 = vpop.permute.xlu1 %566  ;;  %1268 = vperm.xlu1 %6783, %v7192_v11   ;;  %1011 = vperm.xlu0 %6804, %v7155_v2   ;;  %v7438_v35 = vpop.permute.xlu0 %1238  ;;  %v6817_v2 = vld [vmem:[%s10220_s2 + $0x38] sm:$0xff]  }
  0xe0   : > { %6603 = vmatprep.subr.bf16.mxu0 %v6817_v2 }
  0xe1   : > { %6604 = vmatpush3.bf16.msra.mxu0 %v6817_v2 }
  0xe3   : > { %v7443_v62 = vpop.permute.xlu1 %569  ;;  %6784 = vset.pattern.permute.xlu1 %v10234_v33  ;;  %1020 = vperm.xlu0 %6804, %v7160_v3   ;;  %v7447_v36 = vpop.permute.xlu0 %1250 }
  0xe4   : > { %602 = vperm.xlu1 %6784, %v7200_v13  }
  0xe7   : > { %1023 = vperm.xlu0 %6804, %v7171_v6   ;;  %v7454_v34 = vpop.permute.xlu0 %1262 }
  0xe8   : > { %605 = vperm.xlu1 %6784, %v7211_v16   ;;  %v7457_v33 = vpop.permute.xlu1 %787 }
  0xeb   : > { %1032 = vperm.xlu0 %6804, %v7176_v7   ;;  %v7460_v3 = vpop.permute.xlu0 %1274 }
  0xec   : > { %10345 = vst [vmem:[#allocation28_spill] sm:$0xff] %v7460_v3  ;;  %6785 = vset.pattern.permute.xlu1 %v10346_v0  ;;  %v7463_v12 = vpop.permute.xlu1 %793 }
  0xed   : > { %823 = vperm.xlu1 %6785, %v7203_v14  }
  0xef   : > { %1035 = vperm.xlu0 %6804, %v7185_v10   ;;  %v7467_v6 = vpop.permute.xlu0 %1286 }
  0xf0   : > { %10347 = vst [vmem:[#allocation29_spill] sm:$0xff] %v7467_v6  ;;  %v7469_v4 = vpop.permute.xlu1 %796 }
  0xf1   : > { %829 = vperm.xlu1 %6785, %v7211_v16  }
  0xf3   : > { %1044 = vperm.xlu0 %6804, %v7192_v11   ;;  %v7473_v2 = vpop.permute.xlu0 %1298 }
  0xf4   : > { %10348 = vst [vmem:[#allocation30_spill] sm:$0xff] %v7473_v2 }
  0xf5   : > { %832 = vperm.xlu1 %6785, %v7208_v15   ;;  %v7476_v7 = vpop.permute.xlu1 %1014 }
  0xf7   : > { %1047 = vperm.xlu0 %6804, %v7203_v14   ;;  %v7479_v59 = vpop.permute.xlu0 %1310 }
  0xf8   : > { %10349 = vst [vmem:[#allocation31_spill] sm:$0xff] %v7479_v59 }
  0xf9   : > { %6786 = vset.pattern.permute.xlu1 %v10350_v32  ;;  %v7482_v10 = vpop.permute.xlu1 %1017 }
  0xfa   : > { %1050 = vperm.xlu1 %6786, %v7200_v13  }
  0xfb   : > { %1056 = vperm.xlu0 %6804, %v7208_v15  }
  0xfc   : > { %v7486_v8 = vpop.permute.xlu0 %563 }
  0xfe   : > { %1053 = vperm.xlu1 %6786, %v7211_v16   ;;  %v7489_v11 = vpop.permute.xlu1 %1235 }
  0xff   : > { %1059 = vperm.xlu0 %6804, %v7219_v18  }
 0x100   : > { %v7492_v5 = vpop.permute.xlu0 %572 }
 0x102   : > { %6787 = vset.pattern.permute.xlu1 %v10351_v1  ;;  %v7495_v59 = vpop.permute.xlu1 %1241 }
 0x103   : > { %1271 = vperm.xlu1 %6787, %v7203_v14   ;;  %1068 = vperm.xlu0 %6804, %v7224_v19   ;;  %v10352_v14 = vmov 1  }
 0x104   : > { %v7499_v13 = vpop.permute.xlu0 %575 }
 0x106   : > { %v7501_v63 = vpop.permute.xlu1 %1244 }
 0x107   : > { %1277 = vperm.xlu1 %6787, %v7211_v16   ;;  %1071 = vperm.xlu0 %6804, %v7235_v22  }
 0x108   : > { %v7505_v61 = vpop.permute.xlu0 %584 }
 0x10b   : > { %1280 = vperm.xlu1 %6787, %v7208_v15   ;;  %v7508_v2 = vpop.permute.xlu1 %578  ;;  %1080 = vperm.xlu0 %6804, %v7240_v23  }
 0x10c   : > { %v7511_v60 = vpop.permute.xlu0 %587 }
 0x10f   : > { %6788 = vset.pattern.permute.xlu1 %v10352_v14  ;;  %v7514_v58 = vpop.permute.xlu1 %581  ;;  %1083 = vperm.xlu0 %6804, %v7251_v26  }
 0x110   : > { %614 = vperm.xlu1 %6788, %v7216_v17   ;;  %v7518_v16 = vpop.permute.xlu0 %596 }
 0x113   : > { %1092 = vperm.xlu0 %6804, %v7256_v27  }
 0x114   : > { %617 = vperm.xlu1 %6788, %v7227_v20   ;;  %v7522_v15 = vpop.permute.xlu1 %799  ;;  %v7524_v57 = vpop.permute.xlu0 %599 }
 0x115   : > { %10353 = vst [vmem:[#allocation32_spill] sm:$0xff] %v7524_v57 }
 0x117   : > { %1095 = vperm.xlu0 %6804, %v7267_v30  }
 0x118   : > { %6789 = vset.pattern.permute.xlu1 %v10346_v0  ;;  %v7528_v56 = vpop.permute.xlu1 %805  ;;  %v7530_v6 = vpop.permute.xlu0 %608 }
 0x119   : > { %10354 = vst [vmem:[#allocation33_spill] sm:$0xff] %v7530_v6  ;;  %835 = vperm.xlu1 %6789, %v7219_v18  }
 0x11b   : > { %1104 = vperm.xlu0 %6804, %v7272_v31  }
 0x11c   : > { %v7534_v55 = vpop.permute.xlu1 %808  ;;  %v7536_v54 = vpop.permute.xlu0 %611 }
 0x11d   : > { %10355 = vst [vmem:[#allocation34_spill] sm:$0xff] %v7536_v54  ;;  %841 = vperm.xlu1 %6789, %v7227_v20  }
 0x11f   : > { %6807 = vset.pattern.permute.xlu0 %v10351_v1 }
 0x120   : > { %v7540_v53 = vpop.permute.xlu0 %620  ;;  %1322 = vperm.xlu0 %6807, %v7264_v29  }
 0x121   : > { %10356 = vst [vmem:[#allocation35_spill] sm:$0xff] %v7540_v53  ;;  %844 = vperm.xlu1 %6789, %v7224_v19   ;;  %v7544_v30 = vpop.permute.xlu1 %1026 }
 0x124   : > { %v7546_v52 = vpop.permute.xlu0 %623  ;;  %6809 = vset.pattern.permute.xlu0 %v10358_v51 }
 0x125   : > { %10357 = vst [vmem:[#allocation36_spill] sm:$0xff] %v7546_v52  ;;  %6790 = vset.pattern.permute.xlu1 %v10350_v32  ;;  %v7550_v31 = vpop.permute.xlu1 %1029 }
 0x126   : > { %1062 = vperm.xlu1 %6790, %v7216_v17  }
 0x128   : > { %v7553_v54 = vpop.permute.xlu0 %632 }
 0x129   : > { %10359 = vst [vmem:[#allocation37_spill] sm:$0xff] %v7553_v54 }
 0x12a   : > { %1065 = vperm.xlu1 %6790, %v7227_v20   ;;  %v7556_v53 = vpop.permute.xlu1 %1247 }
 0x12c   : > { %v7558_v29 = vpop.permute.xlu0 %635 }
 0x12d   : > { %10360 = vst [vmem:[#allocation38_spill] sm:$0xff] %v7558_v29 }
 0x12e   : > { %6791 = vset.pattern.permute.xlu1 %v10351_v1  ;;  %v7561_v6 = vpop.permute.xlu1 %1253 }
 0x12f   : > { %1283 = vperm.xlu1 %6791, %v7219_v18  }
 0x130   : > { %v7564_v52 = vpop.permute.xlu0 %644 }
 0x131   : > { %10361 = vst [vmem:[#allocation39_spill] sm:$0xff] %v7564_v52 }
 0x132   : > { %v7566_v51 = vpop.permute.xlu1 %1256 }
 0x133   : > { %1289 = vperm.xlu1 %6791, %v7227_v20   ;;  %v10242_v20 = vlaneseq }
 0x134   : > { %v7569_v17 = vpop.permute.xlu0 %647 }
 0x135   : > { %10362 = vst [vmem:[#allocation40_spill] sm:$0xff] %v7569_v17 }
 0x137   : > { %1292 = vperm.xlu1 %6791, %v7224_v19   ;;  %v7572_v54 = vpop.permute.xlu1 %590 }
 0x138   : > { %v7574_v3 = vpop.permute.xlu0 %656 }
 0x139   : > { %10363 = vst [vmem:[#allocation41_spill] sm:$0xff] %v7574_v3  ;;  %v7591_v3 = vand.u32 127, %v10242_v20  ;;  %v7046_v20 = vmov 0.0  }
 0x13b   : > { %6792 = vset.pattern.permute.xlu1 %v10352_v14  ;;  %v7577_v29 = vpop.permute.xlu1 %593  ;;  %10364 = vst [vmem:[#allocation42_spill] sm:$0xff] %v7591_v3  ;;  %vm436_vm0 = vcmp.eq.s32.totalorder %v7591_v3, %v7315_v37  ;;  %vm434_vm1 = vcmp.eq.s32.totalorder %v7591_v3, %v7317_v38  ;;  %vm437_vm2 = vcmp.eq.s32.totalorder %v7591_v3, %v7321_v39 }
 0x13c   : > { %626 = vperm.xlu1 %6792, %v7232_v21   ;;  %vm435_vm3 = vcmp.eq.s32.totalorder %v7591_v3, %v7324_v40  ;;  %vm439_vm4 = vcmp.eq.s32.totalorder %v7591_v3, %v7327_v41  ;;  %v6312_v49 = vsel %vm436_vm0, 1.0, %v7046_v20  ;;  %v6310_v37 = vsel %vm434_vm1, 1.0, %v7046_v20 }
 0x13d   : > { %v7580_v18 = vpop.permute.xlu0 %790  ;;  %vm438_vm5 = vcmp.eq.s32.totalorder %v7591_v3, %v7330_v42  ;;  %v6313_v38 = vsel %vm437_vm2, 1.0, %v7046_v20  ;;  %vm441_vm6 = vcmp.eq.s32.totalorder %v7591_v3, %v7333_v43  ;;  %vm440_vm7 = vcmp.eq.s32.totalorder %v7591_v3, %v7336_v44 }
 0x13e   : > { %vm659_vm8 = vcmp.eq.s32.totalorder %v7591_v3, %v7434_v9  ;;  %v6311_v41 = vsel %vm435_vm3, 1.0, %v7046_v20  ;;  %v7629_v42 = vsel %vm439_vm4, 1.0, %v7046_v20  ;;  %vm443_vm9 = vcmp.eq.s32.totalorder %v7591_v3, %v7340_v45 }
 0x13f   : > { %vm660_vm10 = vcmp.eq.s32.totalorder %v7591_v3, %v7443_v62  ;;  %v7636_v43 = vsel %vm438_vm5, 1.0, %v7046_v20  ;;  %vm442_vm11 = vcmp.eq.s32.totalorder %v7591_v3, %v7342_v46  ;;  %vm445_vm12 = vcmp.eq.s32.totalorder %v7591_v3, %v7346_v47 }
 0x140   : > { %629 = vperm.xlu1 %6792, %v7243_v24   ;;  %v7583_v52 = vpop.permute.xlu1 %811  ;;  %vm444_vm13 = vcmp.eq.s32.totalorder %v7591_v3, %v7348_v48  ;;  %v7645_v44 = vsel %vm441_vm6, 1.0, %v7046_v20  ;;  %v7648_v45 = vsel %vm440_vm7, 1.0, %v7046_v20  ;;  %v6343_v9 = vsel %vm659_vm8, 1.0, %v7046_v20 }
 0x141   : > { %v7585_v17 = vpop.permute.xlu0 %802  ;;  %vm1331_vm14 = vcmp.eq.s32.totalorder %v7591_v3, %v7438_v35  ;;  %v7654_v62 = vsel %vm443_vm9, 1.0, %v7046_v20  ;;  %v6344_v46 = vsel %vm660_vm10, 1.0, %v7046_v20  ;;  %vm884_vm15 = vcmp.eq.s32.totalorder %v7591_v3, %v7463_v12 }
 0x142   : > { %vm658_vm0 = vcmp.eq.s32.totalorder %v7591_v3, %v7486_v8  ;;  %v7670_v35 = vsel %vm445_vm12, 1.0, %v7046_v20  ;;  %vm661_vm1 = vcmp.eq.s32.totalorder %v7591_v3, %v7492_v5  ;;  %v755_v26 = vadd.f32 %v6343_v9, %v6311_v41 }
 0x143   : > { %vm1335_vm2 = vcmp.eq.s32.totalorder %v7591_v3, %v7447_v36  ;;  %vm1108_vm3 = vcmp.eq.s32.totalorder %v7591_v3, %v7482_v10  ;;  %vm882_vm4 = vcmp.eq.s32.totalorder %v7591_v3, %v7457_v33  ;;  %v6376_v5 = vsel %vm884_vm15, 1.0, %v7046_v20 }
 0x144   : > { %6793 = vset.pattern.permute.xlu1 %v10346_v0  ;;  %v7588_v19 = vpop.permute.xlu1 %817  ;;  %vm885_vm5 = vcmp.eq.s32.totalorder %v7591_v3, %v7469_v4  ;;  %vm1107_vm6 = vcmp.eq.s32.totalorder %v7591_v3, %v7476_v7  ;;  %vm883_vm7 = vcmp.eq.s32.totalorder %v7591_v3, %v7580_v18  ;;  %v6408_v12 = vsel %vm1108_vm3, 1.0, %v7046_v20 }
 0x145   : > { %847 = vperm.xlu1 %6793, %v7235_v22   ;;  %v7594_v27 = vpop.permute.xlu0 %814  ;;  %vm1330_vm8 = vcmp.eq.s32.totalorder %v7591_v3, %v7489_v11  ;;  %vm1332_vm9 = vcmp.eq.s32.totalorder %v7591_v3, %v7495_v59  ;;  %vm662_vm10 = vcmp.eq.s32.totalorder %v7591_v3, %v7499_v13  ;;  %v7718_v4 = vsel %vm1335_vm2, 1.0, %v7046_v20 }
 0x146   : > { %v6374_v7 = vsel %vm882_vm4, 1.0, %v7046_v20  ;;  %v6377_v18 = vsel %vm885_vm5, 1.0, %v7046_v20  ;;  %v6407_v59 = vsel %vm1107_vm6, 1.0, %v7046_v20  ;;  %v6375_v13 = vsel %vm883_vm7, 1.0, %v7046_v20 }
 0x147   : > { %v6346_v36 = vsel %vm662_vm10, 1.0, %v7046_v20  ;;  %vm665_vm12 = vcmp.eq.s32.totalorder %v7591_v3, %v7505_v61  ;;  %vm664_vm15 = vcmp.eq.s32.totalorder %v7591_v3, %v7514_v58  ;;  %vm888_vm2 = vcmp.eq.s32.totalorder %v7591_v3, %v7528_v56 }
 0x148   : > { %v7596_v57 = vpop.permute.xlu1 %820  ;;  %vm889_vm3 = vcmp.eq.s32.totalorder %v7591_v3, %v7534_v55  ;;  %vm1112_vm4 = vcmp.eq.s32.totalorder %v7591_v3, %v7550_v31  ;;  %vm669_vm6 = vcmp.eq.s32.totalorder %v7591_v3, %v7518_v16  ;;  %vm1111_vm7 = vcmp.eq.s32.totalorder %v7591_v3, %v7544_v30 }
 0x149   : > { %853 = vperm.xlu1 %6793, %v7243_v24   ;;  %v7603_v50 = vpop.permute.xlu0 %826  ;;  %vm1334_vm10 = vcmp.eq.s32.totalorder %v7591_v3, %v7556_v53 }
 0x14a   : > { %10365 = vst [vmem:[#allocation43_spill] sm:$0xff] %v7603_v50  ;;  %v7673_v50 = vsel %vm444_vm13, 1.0, %v7046_v20  ;;  %vm663_vm13 = vcmp.eq.s32.totalorder %v7591_v3, %v7508_v2  ;;  %v758_v2 = vadd.f32 %v6346_v36, %v7636_v43 }
 0x14b   : > { %v6347_v58 = vsel %vm663_vm13, 1.0, %v7046_v20  ;;  %vm891_vm13 = vcmp.eq.s32.totalorder %v7591_v3, %v7594_v27 }
 0x14c   : > { %v759_v56 = vadd.f32 %v6347_v58, %v7629_v42 }
 0x14d   : > { %856 = vperm.xlu1 %6793, %v7240_v23   ;;  %v7623_v39 = vpop.permute.xlu1 %1038  ;;  %v7625_v40 = vpop.permute.xlu0 %838 }
 0x14e   : > { %10366 = vst [vmem:[#allocation44_spill] sm:$0xff] %v7625_v40  ;;  %v7667_v40 = vsel %vm442_vm11, 1.0, %v7046_v20  ;;  %vm1333_vm11 = vcmp.eq.s32.totalorder %v7591_v3, %v7501_v63  ;;  %v979_v63 = vadd.f32 %v6375_v13, %v755_v26  ;;  %v6348_v26 = vsel %vm664_vm15, 1.0, %v7046_v20 }
 0x151   : > { %6794 = vset.pattern.permute.xlu1 %v10350_v32  ;;  %v7662_v47 = vpop.permute.xlu1 %1041  ;;  %v7664_v48 = vpop.permute.xlu0 %850  ;;  %v7679_v32 = vsel %vm1331_vm14, 1.0, %v7046_v20  ;;  %vm666_vm14 = vcmp.eq.s32.totalorder %v7591_v3, %v7511_v60 }
 0x152   : > { %10367 = vst [vmem:[#allocation45_spill] sm:$0xff] %v7664_v48  ;;  %1074 = vperm.xlu1 %6794, %v7232_v21   ;;  %v756_v48 = vadd.f32 %v6344_v46, %v6312_v49  ;;  %v6342_v21 = vsel %vm658_vm0, 1.0, %v7046_v20  ;;  %v6345_v49 = vsel %vm661_vm1, 1.0, %v7046_v20  ;;  %v6438_v46 = vsel %vm1330_vm8, 1.0, %v7046_v20 }
 0x153   : > { %v754_v11 = vadd.f32 %v6342_v21, %v6310_v37  ;;  %v757_v41 = vadd.f32 %v6345_v49, %v6313_v38  ;;  %vm886_vm0 = vcmp.eq.s32.totalorder %v7591_v3, %v7522_v15  ;;  %vm887_vm1 = vcmp.eq.s32.totalorder %v7591_v3, %v7585_v17 }
 0x154   : > { %v980_v10 = vadd.f32 %v6376_v5, %v756_v48  ;;  %v6441_v48 = vsel %vm1333_vm11, 1.0, %v7046_v20  ;;  %v6349_v5 = vsel %vm665_vm12, 1.0, %v7046_v20  ;;  %v6350_v15 = vsel %vm666_vm14, 1.0, %v7046_v20 }
 0x155   : > { %v7702_v33 = vpop.permute.xlu0 %862  ;;  %v978_v61 = vadd.f32 %v6374_v7, %v754_v11  ;;  %v981_v60 = vadd.f32 %v6377_v18, %v757_v41  ;;  %v6379_v21 = vsel %vm887_vm1, 1.0, %v7046_v20  ;;  %v1203_v49 = vadd.f32 %v6407_v59, %v979_v63 }
 0x156   : > { %10368 = vst [vmem:[#allocation46_spill] sm:$0xff] %v7702_v33  ;;  %1077 = vperm.xlu1 %6794, %v7243_v24   ;;  %v7712_v8 = vpop.permute.xlu1 %1259  ;;  %v1204_v9 = vadd.f32 %v6408_v12, %v980_v10  ;;  %v6440_v33 = vsel %vm1332_vm9, 1.0, %v7046_v20  ;;  %v7770_v12 = vadd.f32 %v6350_v15, %v7667_v40  ;;  %v760_v7 = vadd.f32 %v6348_v26, %v7648_v45 }
 0x157   : > { %v6380_v10 = vsel %vm888_vm2, 1.0, %v7046_v20  ;;  %v6381_v11 = vsel %vm889_vm3, 1.0, %v7046_v20  ;;  %v6412_v40 = vsel %vm1112_vm4, 1.0, %v7046_v20  ;;  %v983_v42 = vadd.f32 %v6379_v21, %v759_v56 }
 0x158   : > { %v7745_v38 = vadd.f32 %v6440_v33, %v1204_v9  ;;  %v761_v33 = vadd.f32 %v6349_v5, %v7645_v44  ;;  %vm667_vm8 = vcmp.eq.s32.totalorder %v7591_v3, %v7572_v54  ;;  %v7793_v30 = vadd.f32 %v7679_v32, %v1203_v49 }
 0x159   : > { %v7727_v0 = vpop.permute.xlu0 %874  ;;  %v984_v41 = vadd.f32 %v6380_v10, %v760_v7  ;;  %vm1339_vm11 = vcmp.eq.s32.totalorder %v7591_v3, %v7454_v34  ;;  %v6411_v9 = vsel %vm1111_vm7, 1.0, %v7046_v20  ;;  %vm1336_vm12 = vcmp.eq.s32.totalorder %v7591_v3, %v7561_v6 }
 0x15a   : > { %6795 = vset.pattern.permute.xlu1 %v10351_v1  ;;  %v7738_v37 = vpop.permute.xlu1 %1265  ;;  %v985_v13 = vadd.f32 %v6381_v11, %v761_v33  ;;  %v6351_v53 = vsel %vm667_vm8, 1.0, %v7046_v20  ;;  %v1207_v36 = vadd.f32 %v6411_v9, %v983_v42  ;;  %vm890_vm14 = vcmp.eq.s32.totalorder %v7591_v3, %v7583_v52 }
 0x15b   : > { %1295 = vperm.xlu1 %6795, %v7235_v22   ;;  %v6378_v22 = vsel %vm886_vm0, 1.0, %v7046_v20  ;;  %v6444_v54 = vsel %vm1336_vm12, 1.0, %v7046_v20  ;;  %vm1337_vm0 = vcmp.eq.s32.totalorder %v7591_v3, %v7566_v51  ;;  %vm1115_vm1 = vcmp.eq.s32.totalorder %v7591_v3, %v7623_v39 }
 0x15c   : > { %v982_v18 = vadd.f32 %v6378_v22, %v758_v2  ;;  %vm668_vm2 = vcmp.eq.s32.totalorder %v7591_v3, %v7577_v29  ;;  %v6382_v39 = vsel %vm890_vm14, 1.0, %v7046_v20  ;;  %vm892_vm3 = vcmp.eq.s32.totalorder %v7591_v3, %v7588_v19 }
 0x15d   : > { %vm893_vm4 = vcmp.eq.s32.totalorder %v7591_v3, %v7596_v57  ;;  %v6415_v26 = vsel %vm1115_vm1, 1.0, %v7046_v20  ;;  %v6353_v52 = vsel %vm669_vm6, 1.0, %v7046_v20  ;;  %v6445_v33 = vsel %vm1337_vm0, 1.0, %v7046_v20 }
 0x15e   : > { %v7760_v17 = vpop.permute.xlu1 %1268  ;;  %v1012_v43 = vpop.permute.xlu0 %1011  ;;  %v6352_v16 = vsel %vm668_vm2, 1.0, %v7046_v20  ;;  %v986_v7 = vadd.f32 %v6382_v39, %v7770_v12  ;;  %v6384_v10 = vsel %vm892_vm3, 1.0, %v7046_v20  ;;  %v6385_v51 = vsel %vm893_vm4, 1.0, %v7046_v20 }
 0x15f   : > { %vm1106_vm5 = vcmp.eq.s32.totalorder %v7591_v3, %v1012_v43  ;;  %1301 = vperm.xlu1 %6795, %v7243_v24   ;;  %vm1116_vm6 = vcmp.eq.s32.totalorder %v7591_v3, %v7662_v47  ;;  %vm1338_vm7 = vcmp.eq.s32.totalorder %v7591_v3, %v7712_v8  ;;  %v6447_v19 = vsel %vm1339_vm11, 1.0, %v7046_v20 }
 0x160   : > { %v6406_v55 = vsel %vm1106_vm5, 1.0, %v7046_v20  ;;  %v765_v57 = vadd.f32 %v6353_v52, %v7670_v35  ;;  %v764_v12 = vadd.f32 %v6352_v16, %v7673_v50  ;;  %v6416_v50 = vsel %vm1116_vm6, 1.0, %v7046_v20 }
 0x161   : > { %v1202_v24 = vadd.f32 %v6406_v55, %v978_v61  ;;  %v6442_v61 = vsel %vm1334_vm10, 1.0, %v7046_v20  ;;  %v6446_v35 = vsel %vm1338_vm7, 1.0, %v7046_v20  ;;  %vm1341_vm10 = vcmp.eq.s32.totalorder %v7591_v3, %v7760_v17 }
 0x162   : > { %v1021_v44 = vpop.permute.xlu0 %1020  ;;  %v10376_v16 = vmov 3  }
 0x163   : > { %vm1109_vm9 = vcmp.eq.s32.totalorder %v7591_v3, %v1021_v44  ;;  %1304 = vperm.xlu1 %6795, %v7240_v23   ;;  %v7788_v45 = vpop.permute.xlu1 %602  ;;  %v7790_v59 = vadd.f32 %v6438_v46, %v1202_v24  ;;  %v1208_v46 = vadd.f32 %v6412_v40, %v984_v41  ;;  %v10369_v40 = vmov 2   ;;  %v10370_v41 = vld [vmem:[#allocation6_spill] sm:$0xff] }
 0x164   : > { %v6409_v31 = vsel %vm1109_vm9, 1.0, %v7046_v20  ;;  %vm1340_vm9 = vcmp.eq.s32.totalorder %v7591_v3, %v7738_v37  ;;  %vm671_vm12 = vcmp.eq.s32.totalorder %v7591_v3, %v7788_v45  ;;  %v10373_v45 = vld [vmem:[#allocation32_spill] sm:$0xff] }
 0x165   : > { %v1205_v23 = vadd.f32 %v6409_v31, %v981_v60  ;;  %v1459_v32 = vpack.c.bf16 %v7793_v30, %v7790_v59  ;;  %v763_v60 = vadd.f32 %v6351_v53, %v7654_v62  ;;  %v7840_v62 = vadd.f32 %v7718_v4, %v1207_v36 }
 0x166   : > { %v1024_v63 = vpop.permute.xlu0 %1023  ;;  %v7852_v43 = vadd.f32 %v6444_v54, %v1208_v46  ;;  %v989_v31 = vadd.f32 %v6385_v51, %v765_v57  ;;  %v6449_v36 = vsel %vm1341_vm10, 1.0, %v7046_v20  ;;  %v10377_v51 = vld [vmem:[#allocation28_spill] sm:$0xff] }
 0x167   : > { %v7814_v6 = vadd.f32 %v6441_v48, %v1205_v23  ;;  %vm1110_vm15 = vcmp.eq.s32.totalorder %v7591_v3, %v1024_v63  ;;  %6796 = vset.pattern.permute.xlu1 %v10352_v14  ;;  %v7818_v2 = vpop.permute.xlu1 %605  ;;  %6605 = vmatprep.mubr.bf16.mxu0 %v1459_v32  ;;  %v6383_v48 = vsel %vm891_vm13, 1.0, %v7046_v20  ;;  %v6448_v32 = vsel %vm1340_vm9, 1.0, %v7046_v20  ;;  %v10371_v63 = vld [vmem:[#allocation8_spill] sm:$0xff] }
 0x168   : > { %v6410_v27 = vsel %vm1110_vm15, 1.0, %v7046_v20  ;;  %638 = vperm.xlu1 %6796, %v7248_v25   ;;  %v987_v21 = vadd.f32 %v6383_v48, %v763_v60  ;;  %vm447_vm13 = vcmp.eq.s32.totalorder %v7591_v3, %v10371_v63  ;;  %v10372_v60 = vld [vmem:[#allocation9_spill] sm:$0xff]  ;;  %vm670_vm15 = vcmp.eq.s32.totalorder %v7591_v3, %v10373_v45  ;;  %v10374_v48 = vld [vmem:[#allocation43_spill] sm:$0xff] }
 0x169   : > { %v1206_v5 = vadd.f32 %v6410_v27, %v982_v18  ;;  %v1460_v58 = vpack.c.bf16 %v7814_v6, %v7745_v38  ;;  %v6355_v27 = vsel %vm671_vm12, 1.0, %v7046_v20  ;;  %vm446_vm14 = vcmp.eq.s32.totalorder %v7591_v3, %v10372_v60  ;;  %v2000_v45 = vld [vmem:[%s10222_s4] sm:$0xf] }
 0x16a   : > { %v1033_v15 = vpop.permute.xlu0 %1032  ;;  %v1211_v11 = vadd.f32 %v6415_v26, %v987_v21  ;;  %vm895_vm0 = vcmp.eq.s32.totalorder %v7591_v3, %v10374_v48  ;;  %v6322_v21 = vsel %vm446_vm14, 1.0, %v7046_v20  ;;  %vm1343_vm4 = vcmp.eq.s32.totalorder %v7591_v3, %v10377_v51 }
 0x16b   : > { %v7845_v22 = vadd.f32 %v6442_v61, %v1206_v5  ;;  %vm1113_vm5 = vcmp.eq.s32.totalorder %v7591_v3, %v1033_v15  ;;  %6606 = vmatmul.mubr.bf16.vlgmr.msra.gmra.mrb[0].mxu0 %v1460_v58  ;;  %v10375_v5 = vld [vmem:[#allocation7_spill] sm:$0xff]  ;;  %v6323_v15 = vsel %vm447_vm13, 1.0, %v7046_v20  ;;  %vm672_vm6 = vcmp.eq.s32.totalorder %v7591_v3, %v7818_v2 }
 0x16c   : > { %v6413_v4 = vsel %vm1113_vm5, 1.0, %v7046_v20  ;;  %641 = vperm.xlu1 %6796, %v7259_v28   ;;  %v7856_v49 = vpop.permute.xlu1 %823  ;;  %v7907_v37 = vadd.f32 %v6447_v19, %v1211_v11  ;;  %v767_v52 = vadd.f32 %v6355_v27, %v6323_v15  ;;  %v6451_v2 = vsel %vm1343_vm4, 1.0, %v7046_v20 }
 0x16d   : > { %v1209_v56 = vadd.f32 %v6413_v4, %v985_v13  ;;  %v1461_v55 = vpack.c.bf16 %v7840_v62, %v7845_v22  ;;  %v988_v13 = vadd.f32 %v6384_v10, %v764_v12  ;;  %vm894_vm1 = vcmp.eq.s32.totalorder %v7591_v3, %v7856_v49  ;;  %v10379_v12 = vld [vmem:[#allocation10_spill] sm:$0xff] }
 0x16e   : > { %v1036_v24 = vpop.permute.xlu0 %1035  ;;  %v6354_v4 = vsel %vm670_vm15, 1.0, %v7046_v20  ;;  %vm449_vm7 = vcmp.eq.s32.totalorder %v7591_v3, %v10379_v12  ;;  %vm2134_vm15 = vcmask 1043456   ;;  %v10383_v12 = vld [vmem:[#allocation34_spill] sm:$0xff] }
 0x16f   : > { %v7881_v29 = vadd.f32 %v6445_v33, %v1209_v56  ;;  %vm1114_vm8 = vcmp.eq.s32.totalorder %v7591_v3, %v1036_v24  ;;  %6609 = vmatprep.mubr.bf16.mxu0 %v1461_v55  ;;  %v1212_v53 = vadd.f32 %v6416_v50, %v988_v13  ;;  %v6387_v33 = vsel %vm895_vm0, 1.0, %v7046_v20  ;;  %v10378_v24 = vld [vmem:[#allocation33_spill] sm:$0xff]  ;;  %6721 = vmatprep.subr.msk.bf16.mxu0 %vm2134_vm15, %v2000_v45 }
 0x170   : > { %v6414_v18 = vsel %vm1114_vm8, 1.0, %v7046_v20  ;;  %6797 = vset.pattern.permute.xlu1 %v10369_v40  ;;  %v7892_v42 = vpop.permute.xlu1 %829  ;;  %v6386_v55 = vsel %vm894_vm1, 1.0, %v7046_v20  ;;  %v766_v49 = vadd.f32 %v6354_v4, %v6322_v21  ;;  %v991_v10 = vadd.f32 %v6387_v33, %v767_v52  ;;  %6722 = vmatprep.subr.msk.bf16.mxu1 %vm2134_vm15, %v2000_v45  ;;  %v6972_v33 = vld [vmem:[%s7149_s19 + $0xd8] sm:$0xff] }
 0x171   : > { %v1210_v44 = vadd.f32 %v6414_v18, %v986_v7  ;;  %859 = vperm.xlu1 %6797, %v10370_v41   ;;  %v1462_v34 = vpack.c.bf16 %v7881_v29, %v7852_v43  ;;  %v7924_v61 = vadd.f32 %v6448_v32, %v1212_v53  ;;  %vm673_vm5 = vcmp.eq.s32.totalorder %v7591_v3, %v10378_v24  ;;  %v10380_v18 = vld [vmem:[#allocation11_spill] sm:$0xff]  ;;  %v6975_v24 = vld [vmem:[%s7149_s19 + $0xe0] sm:$0xff] }
 0x172   : > { %v1045_v9 = vpop.permute.xlu0 %1044  ;;  %v990_v19 = vadd.f32 %v6386_v55, %v766_v49  ;;  %vm448_vm8 = vcmp.eq.s32.totalorder %v7591_v3, %v10380_v18  ;;  %vm896_vm9 = vcmp.eq.s32.totalorder %v7591_v3, %v7892_v42  ;;  %v6356_v13 = vsel %vm672_vm6, 1.0, %v7046_v20  ;;  %v6973_v49 = vld [vmem:[%s7149_s19 + $0xe8] sm:$0xff] }
 0x173   : > { %v7911_v23 = vadd.f32 %v6446_v35, %v1210_v44  ;;  %vm1117_vm11 = vcmp.eq.s32.totalorder %v7591_v3, %v1045_v9  ;;  %6610 = vmatmul.mubr.bf16.gmra.mrb[4].mxu0 %v1462_v34  ;;  %v6357_v34 = vsel %vm673_vm5, 1.0, %v7046_v20  ;;  %v6325_v42 = vsel %vm449_vm7, 1.0, %v7046_v20 }
 0x174   : > { %v6417_v47 = vsel %vm1117_vm11, 1.0, %v7046_v20  ;;  %v833_v46 = vpop.permute.xlu1 %832  ;;  %v6324_v35 = vsel %vm448_vm8, 1.0, %v7046_v20  ;;  %v6388_v9 = vsel %vm896_vm9, 1.0, %v7046_v20  ;;  %vm674_vm4 = vcmp.eq.s32.totalorder %v7591_v3, %v10383_v12 }
 0x175   : > { %v1213_v8 = vadd.f32 %v6417_v47, %v989_v31  ;;  %865 = vperm.xlu1 %6797, %v7259_v28   ;;  %v1463_v17 = vpack.c.bf16 %v7907_v37, %v7911_v23  ;;  %vm897_vm10 = vcmp.eq.s32.totalorder %v7591_v3, %v833_v46  ;;  %v769_v46 = vadd.f32 %v6357_v34, %v6325_v42 }
 0x176   : > { %v1048_v26 = vpop.permute.xlu0 %1047  ;;  %v6389_v32 = vsel %vm897_vm10, 1.0, %v7046_v20  ;;  %v768_v53 = vadd.f32 %v6356_v13, %v6324_v35  ;;  %v6358_v34 = vsel %vm674_vm4, 1.0, %v7046_v20 }
 0x177   : > { %v7926_v54 = vadd.f32 %v6449_v36, %v1213_v8  ;;  %6613 = vmatprep.mubr.bf16.mxu0 %v1463_v17  ;;  %vm1118_vm3 = vcmp.eq.s32.totalorder %v7591_v3, %v1048_v26  ;;  %v6970_v8 = vld [vmem:[%s7149_s19 + $0xc0] sm:$0xff]  ;;  %v993_v60 = vadd.f32 %v6389_v32, %v769_v46  ;;  %v6971_v26 = vld [vmem:[%s7149_s19 + $0xd0] sm:$0xff] }
 0x178   : > { %v6418_v11 = vsel %vm1118_vm3, 1.0, %v7046_v20  ;;  %v992_v27 = vadd.f32 %v6388_v9, %v768_v53  ;;  %v10386_v53 = vld [vmem:[#allocation14_spill] sm:$0xff] }
 0x179   : > { %868 = vperm.xlu1 %6797, %v10375_v5   ;;  %v1051_v58 = vpop.permute.xlu1 %1050  ;;  %v1464_v39 = vpack.c.bf16 %v7926_v54, %v7924_v61  ;;  %v1214_v41 = vadd.f32 %v6418_v11, %v990_v19  ;;  %vm453_vm10 = vcmp.eq.s32.totalorder %v7591_v3, %v10386_v53 }
 0x17a   : > { %vm1119_vm2 = vcmp.eq.s32.totalorder %v7591_v3, %v1051_v58  ;;  %v2136_v58 = vsel %vm2134_vm15, %v2000_v45, 0  ;;  %v10388_v45 = vld [vmem:[#allocation15_spill] sm:$0xff] }
 0x17b   : > { %6614 = vmatmul.mubr.bf16.gmra.mrb[8].mxu0 %v1464_v39  ;;  %v6419_v7 = vsel %vm1119_vm2, 1.0, %v7046_v20  ;;  %6720 = vmatpush3.bf16.msra.mxu1 %v2136_v58 }
 0x17c   : > { %v1215_v57 = vadd.f32 %v6419_v7, %v991_v10  ;;  %6638 = vmatpush3.bf16.msra.mxu0 %v2136_v58  ;;  %v8010_v10 = vld [vmem:[%s7149_s19 + $0xf0] sm:$0xff] }
 0x17d   : > { %6798 = vset.pattern.permute.xlu1 %v10376_v16  ;;  %v1054_v56 = vpop.permute.xlu1 %1053 }
 0x17e   : > { %1086 = vperm.xlu1 %6798, %v7248_v25   ;;  %v1057_v25 = vpop.permute.xlu0 %1056  ;;  %v7970_v50 = vadd.f32 %v6451_v2, %v1215_v57  ;;  %vm1120_vm13 = vcmp.eq.s32.totalorder %v7591_v3, %v1054_v56  ;;  %v10382_v57 = vld [vmem:[#allocation13_spill] sm:$0xff] }
 0x17f   : > { %vm1121_vm12 = vcmp.eq.s32.totalorder %v7591_v3, %v1057_v25  ;;  %v6420_v63 = vsel %vm1120_vm13, 1.0, %v7046_v20  ;;  %vm450_vm3 = vcmp.eq.s32.totalorder %v7591_v3, %v10382_v57  ;;  %v8028_v25 = vld [vmem:[%s7149_s19 + $0xf8] sm:$0xff]  ;;  %s6309_s19 = sshll.u32 %s7143_s15, 2 }
 0x180   : > { %v6421_v36 = vsel %vm1121_vm12, 1.0, %v7046_v20  ;;  %v1216_v15 = vadd.f32 %v6420_v63, %v992_v27  ;;  %v6326_v2 = vsel %vm450_vm3, 1.0, %v7046_v20  ;;  %s8093_s30 = scalar_lea.vmem %s10219_s1, %s6309_s19  ;;  %s6216_s19 = scalar_lea.sflag [#allocation4], %s287_s17 }
 0x181   : > { %v1217_v39 = vadd.f32 %v6421_v36, %v993_v60  ;;  %v770_v9 = vadd.f32 %v6358_v34, %v6326_v2  ;;  %v10387_v36 = vld [vmem:[#allocation29_spill] sm:$0xff]  ;;  %v6329_v60 = vsel %vm453_vm10, 1.0, %v7046_v20 }
 0x182   : > { %1089 = vperm.xlu1 %6798, %v7259_v28   ;;  %v1272_v44 = vpop.permute.xlu1 %1271  ;;  %v1060_v13 = vpop.permute.xlu0 %1059 }
 0x183   : > { %vm1342_vm11 = vcmp.eq.s32.totalorder %v7591_v3, %v1272_v44  ;;  %vm1122_vm8 = vcmp.eq.s32.totalorder %v7591_v3, %v1060_v13 }
 0x184   : > { %v6450_v31 = vsel %vm1342_vm11, 1.0, %v7046_v20  ;;  %vm1347_vm11 = vcmp.eq.s32.totalorder %v7591_v3, %v10387_v36  ;;  %v6422_v63 = vsel %vm1122_vm8, 1.0, %v7046_v20 }
 0x185   : > { %v7974_v28 = vadd.f32 %v6450_v31, %v1214_v41  ;;  %v6455_v58 = vsel %vm1347_vm11, 1.0, %v7046_v20 }
 0x186   : > { %6799 = vset.pattern.permute.xlu1 %v10351_v1  ;;  %v1278_v47 = vpop.permute.xlu1 %1277 }
 0x187   : > { %vm1344_vm14 = vcmp.eq.s32.totalorder %v7591_v3, %v1278_v47  ;;  %1307 = vperm.xlu1 %6799, %v6970_v8   ;;  %v1465_v17 = vpack.c.bf16 %v7970_v50, %v7974_v28  ;;  %v10385_v47 = vld [vmem:[#allocation35_spill] sm:$0xff] }
 0x188   : > { %v6452_v48 = vsel %vm1344_vm14, 1.0, %v7046_v20  ;;  %vm677_vm9 = vcmp.eq.s32.totalorder %v7591_v3, %v10385_v47  ;;  %vm452_vm14 = vcmp.eq.s32.totalorder %v7591_v3, %v10388_v45  ;;  %v10391_v47 = vld [vmem:[#allocation17_spill] sm:$0xff] }
 0x189   : > { %6617 = vmatprep.mubr.bf16.mxu0 %v1465_v17  ;;  %v8000_v21 = vadd.f32 %v6452_v48, %v1216_v15  ;;  %v6361_v27 = vsel %vm677_vm9, 1.0, %v7046_v20  ;;  %v1069_v48 = vpop.permute.xlu0 %1068  ;;  %v6822_v45 = vld [vmem:[%s8093_s30 + $0x20] sm:$0xff]  }
 0x18a   : > { %v1281_v5 = vpop.permute.xlu1 %1280  ;;  %v773_v15 = vadd.f32 %v6361_v27, %v6329_v60 }
 0x18b   : > { %vm1345_vm0 = vcmp.eq.s32.totalorder %v7591_v3, %v1281_v5  ;;  %1313 = vperm.xlu1 %6799, %v6971_v26  }
 0x18c   : > { %v6453_v52 = vsel %vm1345_vm0, 1.0, %v7046_v20 }
 0x18d   : > { %v8002_v4 = vadd.f32 %v6453_v52, %v1217_v39 }
 0x18f   : > { %1316 = vperm.xlu1 %6799, %v6972_v33   ;;  %v615_v56 = vpop.permute.xlu1 %614  ;;  %v1466_v55 = vpack.c.bf16 %v8002_v4, %v8000_v21 }
 0x190   : > { %vm675_vm1 = vcmp.eq.s32.totalorder %v7591_v3, %v615_v56 }
 0x191   : > { %6618 = vmatmul.mubr.bf16.gmra.mrb[12].mxu0 %v1466_v55  ;;  %v6359_v18 = vsel %vm675_vm1, 1.0, %v7046_v20  ;;  %vm1125_vm1 = vcmp.eq.s32.totalorder %v7591_v3, %v1069_v48 }
 0x192   : > { %v6425_v57 = vsel %vm1125_vm1, 1.0, %v7046_v20 }
 0x193   : > { %6801 = vset.pattern.permute.xlu1 %v10352_v14  ;;  %v618_v7 = vpop.permute.xlu1 %617  ;;  %v10381_v14 = vld [vmem:[#allocation12_spill] sm:$0xff] }
 0x194   : > { %650 = vperm.xlu1 %6801, %v6973_v49   ;;  %vm451_vm2 = vcmp.eq.s32.totalorder %v7591_v3, %v10381_v14  ;;  %vm676_vm12 = vcmp.eq.s32.totalorder %v7591_v3, %v618_v7  ;;  %v6328_v7 = vsel %vm452_vm14, 1.0, %v7046_v20 }
 0x195   : > { %v6327_v41 = vsel %vm451_vm2, 1.0, %v7046_v20  ;;  %v6360_v26 = vsel %vm676_vm12, 1.0, %v7046_v20  ;;  %vm2085_vm12 = vcmask 64512  }
 0x196   : > { %v771_v31 = vadd.f32 %v6359_v18, %v6327_v41  ;;  %6647 = vmatprep.mubr.msk.bf16.mxu1 %vm2085_vm12, %v6822_v45 }
 0x198   : > { %653 = vperm.xlu1 %6801, %v8010_v10   ;;  %v836_v51 = vpop.permute.xlu1 %835 }
 0x199   : > { %vm898_vm6 = vcmp.eq.s32.totalorder %v7591_v3, %v836_v51 }
 0x19a   : > { %v6390_v35 = vsel %vm898_vm6, 1.0, %v7046_v20 }
 0x19b   : > { %v994_v8 = vadd.f32 %v6390_v35, %v770_v9  ;;  %v10389_v35 = vmov 0  }
 0x19c   : > { %6803 = vset.pattern.permute.xlu1 %v10369_v40  ;;  %v842_v11 = vpop.permute.xlu1 %841  ;;  %v10384_v40 = vld [vmem:[#allocation44_spill] sm:$0xff] }
 0x19d   : > { %871 = vperm.xlu1 %6803, %v6975_v24   ;;  %vm899_vm5 = vcmp.eq.s32.totalorder %v7591_v3, %v10384_v40  ;;  %v1218_v39 = vadd.f32 %v6422_v63, %v994_v8  ;;  %vm900_vm15 = vcmp.eq.s32.totalorder %v7591_v3, %v842_v11  ;;  %v772_v11 = vadd.f32 %v6360_v26, %v6328_v7  ;;  %v10393_v8 = vld [vmem:[#allocation45_spill] sm:$0xff] }
 0x19e   : > { %v6391_v42 = vsel %vm899_vm5, 1.0, %v7046_v20  ;;  %vm903_vm9 = vcmp.eq.s32.totalorder %v7591_v3, %v10393_v8  ;;  %v10394_v26 = vld [vmem:[#allocation37_spill] sm:$0xff] }
 0x19f   : > { %v995_v17 = vadd.f32 %v6391_v42, %v771_v31  ;;  %v6395_v48 = vsel %vm903_vm9, 1.0, %v7046_v20  ;;  %vm681_vm14 = vcmp.eq.s32.totalorder %v7591_v3, %v10394_v26 }
 0x1a0   : > { %v845_v19 = vpop.permute.xlu1 %844 }
 0x1a1   : > { %877 = vperm.xlu1 %6803, %v8010_v10   ;;  %vm901_vm13 = vcmp.eq.s32.totalorder %v7591_v3, %v845_v19 }
 0x1a2   : > { %v6393_v52 = vsel %vm901_vm13, 1.0, %v7046_v20 }
 0x1a3   : > { %v997_v19 = vadd.f32 %v6393_v52, %v773_v15 }
 0x1a5   : > { %880 = vperm.xlu1 %6803, %v8028_v25   ;;  %v1063_v44 = vpop.permute.xlu1 %1062 }
 0x1a6   : > { %vm1123_vm7 = vcmp.eq.s32.totalorder %v7591_v3, %v1063_v44 }
 0x1a7   : > { %v6423_v46 = vsel %vm1123_vm7, 1.0, %v7046_v20  ;;  %vm454_vm7 = vcmp.eq.s32.totalorder %v7591_v3, %v10391_v47 }
 0x1a8   : > { %v6330_v63 = vsel %vm454_vm7, 1.0, %v7046_v20 }
 0x1a9   : > { %6805 = vset.pattern.permute.xlu1 %v10376_v16  ;;  %v1066_v32 = vpop.permute.xlu1 %1065  ;;  %v1219_v16 = vadd.f32 %v6423_v46, %v995_v17  ;;  %v10392_v46 = vld [vmem:[#allocation36_spill] sm:$0xff] }
 0x1aa   : > { %1098 = vperm.xlu1 %6805, %v6973_v49   ;;  %vm1124_vm2 = vcmp.eq.s32.totalorder %v7591_v3, %v1066_v32  ;;  %v6392_v49 = vsel %vm900_vm15, 1.0, %v7046_v20  ;;  %v10390_v32 = vld [vmem:[#allocation16_spill] sm:$0xff]  ;;  %vm678_vm8 = vcmp.eq.s32.totalorder %v7591_v3, %v10392_v46 }
 0x1ab   : > { %v8061_v56 = vadd.f32 %v6455_v58, %v1219_v16  ;;  %v6424_v12 = vsel %vm1124_vm2, 1.0, %v7046_v20  ;;  %v996_v18 = vadd.f32 %v6392_v49, %v772_v11  ;;  %vm455_vm6 = vcmp.eq.s32.totalorder %v7591_v3, %v10390_v32  ;;  %v1072_v16 = vpop.permute.xlu0 %1071  ;;  %v6823_v58 = vld [vmem:[%s8093_s30 + $0x28] sm:$0xff]  }
 0x1ac   : > { %v6331_v36 = vsel %vm455_vm6, 1.0, %v7046_v20  ;;  %v6362_v27 = vsel %vm678_vm8, 1.0, %v7046_v20  ;;  %vm1126_vm13 = vcmp.eq.s32.totalorder %v7591_v3, %v1072_v16  ;;  %6648 = vmatmul.mubr.msk.bf16.vlgmr.msra.gmra.mrb[0].mxu1 %vm2085_vm12, %v6823_v58  ;;  %v6827_v58 = vld [vmem:[%s8093_s30 + $0x48] sm:$0xff]  }
 0x1ad   : > { %v1220_v41 = vadd.f32 %v6424_v12, %v996_v18  ;;  %v6426_v11 = vsel %vm1126_vm13, 1.0, %v7046_v20  ;;  %v10397_v12 = vld [vmem:[#allocation19_spill] sm:$0xff] }
 0x1ae   : > { %1101 = vperm.xlu1 %6805, %v8010_v10   ;;  %v1284_v5 = vpop.permute.xlu1 %1283 }
 0x1af   : > { %vm1346_vm0 = vcmp.eq.s32.totalorder %v7591_v3, %v1284_v5  ;;  %v1081_v18 = vpop.permute.xlu0 %1080 }
 0x1b0   : > { %v6454_v33 = vsel %vm1346_vm0, 1.0, %v7046_v20  ;;  %vm1129_vm6 = vcmp.eq.s32.totalorder %v7591_v3, %v1081_v18  ;;  %v10398_v18 = vld [vmem:[#allocation20_spill] sm:$0xff] }
 0x1b1   : > { %v8064_v55 = vadd.f32 %v6454_v33, %v1218_v39  ;;  %v774_v39 = vadd.f32 %v6362_v27, %v6330_v63  ;;  %v10395_v33 = vld [vmem:[#allocation18_spill] sm:$0xff] }
 0x1b2   : > { %6806 = vset.pattern.permute.xlu1 %v10351_v1  ;;  %v1290_v51 = vpop.permute.xlu1 %1289  ;;  %v1221_v1 = vadd.f32 %v6425_v57, %v997_v19  ;;  %vm457_vm15 = vcmp.eq.s32.totalorder %v7591_v3, %v10395_v33  ;;  %v6365_v19 = vsel %vm681_vm14, 1.0, %v7046_v20 }
 0x1b3   : > { %vm1348_vm3 = vcmp.eq.s32.totalorder %v7591_v3, %v1290_v51  ;;  %1319 = vperm.xlu1 %6806, %v6975_v24   ;;  %v1467_v14 = vpack.c.bf16 %v8061_v56, %v8064_v55  ;;  %v10396_v51 = vld [vmem:[#allocation30_spill] sm:$0xff]  ;;  %v6333_v57 = vsel %vm457_vm15, 1.0, %v7046_v20 }
 0x1b4   : > { %v6456_v40 = vsel %vm1348_vm3, 1.0, %v7046_v20  ;;  %vm1351_vm0 = vcmp.eq.s32.totalorder %v7591_v3, %v10396_v51  ;;  %vm456_vm3 = vcmp.eq.s32.totalorder %v7591_v3, %v10397_v12 }
 0x1b5   : > { %6621 = vmatprep.mubr.bf16.mxu0 %v1467_v14  ;;  %v8081_v2 = vadd.f32 %v6456_v40, %v1220_v41  ;;  %v6459_v41 = vsel %vm1351_vm0, 1.0, %v7046_v20 }
 0x1b6   : > { %v1293_v44 = vpop.permute.xlu1 %1292 }
 0x1b7   : > { %vm1349_vm4 = vcmp.eq.s32.totalorder %v7591_v3, %v1293_v44  ;;  %1325 = vperm.xlu1 %6806, %v8010_v10   ;;  %v6824_v44 = vld [vmem:[%s8093_s30 + $0x30] sm:$0xff]  }
 0x1b8   : > { %v6457_v24 = vsel %vm1349_vm4, 1.0, %v7046_v20  ;;  %6651 = vmatprep.mubr.msk.bf16.mxu1 %vm2085_vm12, %v6824_v44  ;;  %v10400_v44 = vld [vmem:[#allocation38_spill] sm:$0xff] }
 0x1b9   : > { %v8083_v34 = vadd.f32 %v6457_v24, %v1221_v1  ;;  %v6825_v1 = vld [vmem:[%s8093_s30 + $0x38] sm:$0xff]   ;;  %vm682_vm14 = vcmp.eq.s32.totalorder %v7591_v3, %v10400_v44 }
 0x1ba   : > { %6652 = vmatmul.mubr.msk.bf16.gmra.mrb[4].mxu1 %vm2085_vm12, %v6825_v1 }
 0x1bb   : > { %1328 = vperm.xlu1 %6806, %v8028_v25   ;;  %v627_v13 = vpop.permute.xlu1 %626  ;;  %v1468_v31 = vpack.c.bf16 %v8083_v34, %v8081_v2 }
 0x1bc   : > { %vm679_vm5 = vcmp.eq.s32.totalorder %v7591_v3, %v627_v13  ;;  %v777_v13 = vadd.f32 %v6365_v19, %v6333_v57  ;;  %v6832_v57 = vld [vmem:[%s8093_s30 + $0x70] sm:$0xff]  }
 0x1bd   : > { %6622 = vmatmul.mubr.bf16.gmra.mrb[16].mxu0 %v1468_v31  ;;  %v6363_v53 = vsel %vm679_vm5, 1.0, %v7046_v20 }
 0x1be   : > { %v775_v60 = vadd.f32 %v6363_v53, %v6331_v36 }
 0x1bf   : > { %v630_v42 = vpop.permute.xlu1 %629  ;;  %6808 = vset.pattern.permute.xlu1 %v10389_v35 }
 0x1c0   : > { %v999_v49 = vadd.f32 %v6395_v48, %v775_v60  ;;  %vm680_vm1 = vcmp.eq.s32.totalorder %v7591_v3, %v630_v42  ;;  %v6826_v48 = vld [vmem:[%s8093_s30 + $0x40] sm:$0xff]  }
 0x1c1   : > { %v6364_v31 = vsel %vm680_vm1, 1.0, %v7046_v20  ;;  %6655 = vmatprep.mubr.msk.bf16.mxu1 %vm2085_vm12, %v6826_v48 }
 0x1c2   : > { %6656 = vmatmul.mubr.msk.bf16.gmra.mrb[8].mxu1 %vm2085_vm12, %v6827_v58 }
 0x1c4   : > { %v848_v9 = vpop.permute.xlu1 %847 }
 0x1c5   : > { %vm902_vm10 = vcmp.eq.s32.totalorder %v7591_v3, %v848_v9 }
 0x1c6   : > { %v6394_v5 = vsel %vm902_vm10, 1.0, %v7046_v20 }
 0x1c7   : > { %v998_v7 = vadd.f32 %v6394_v5, %v774_v39 }
 0x1c8   : > { %v854_v10 = vpop.permute.xlu1 %853 }
 0x1c9   : > { %v1222_v24 = vadd.f32 %v6426_v11, %v998_v7  ;;  %vm904_vm4 = vcmp.eq.s32.totalorder %v7591_v3, %v854_v10  ;;  %v6332_v10 = vsel %vm456_vm3, 1.0, %v7046_v20  ;;  %v6828_v7 = vld [vmem:[%s8093_s30 + $0x50] sm:$0xff]   ;;  %v6830_v11 = vld [vmem:[%s8093_s30 + $0x60] sm:$0xff]  }
 0x1ca   : > { %v6396_v32 = vsel %vm904_vm4, 1.0, %v7046_v20  ;;  %v776_v46 = vadd.f32 %v6364_v31, %v6332_v10  ;;  %6659 = vmatprep.mubr.msk.bf16.mxu1 %vm2085_vm12, %v6828_v7 }
 0x1cc   : > { %v857_v25 = vpop.permute.xlu1 %856  ;;  %v1000_v63 = vadd.f32 %v6396_v32, %v776_v46  ;;  %v1084_v32 = vpop.permute.xlu0 %1083 }
 0x1cd   : > { %vm905_vm2 = vcmp.eq.s32.totalorder %v7591_v3, %v857_v25 }
 0x1ce   : > { %v6397_v42 = vsel %vm905_vm2, 1.0, %v7046_v20  ;;  %vm1130_vm2 = vcmp.eq.s32.totalorder %v7591_v3, %v1084_v32 }
 0x1cf   : > { %v1001_v53 = vadd.f32 %v6397_v42, %v777_v13  ;;  %v6366_v42 = vsel %vm682_vm14, 1.0, %v7046_v20 }
 0x1d1   : > { %v1075_v17 = vpop.permute.xlu1 %1074 }
 0x1d2   : > { %vm1127_vm11 = vcmp.eq.s32.totalorder %v7591_v3, %v1075_v17  ;;  %v6429_v17 = vsel %vm1129_vm6, 1.0, %v7046_v20 }
 0x1d3   : > { %v6427_v52 = vsel %vm1127_vm11, 1.0, %v7046_v20  ;;  %v1225_v60 = vadd.f32 %v6429_v17, %v1001_v53  ;;  %vm459_vm11 = vcmp.eq.s32.totalorder %v7591_v3, %v10398_v18 }
 0x1d4   : > { %v1223_v14 = vadd.f32 %v6427_v52, %v999_v49  ;;  %v6829_v49 = vld [vmem:[%s8093_s30 + $0x58] sm:$0xff]   ;;  %v6335_v13 = vsel %vm459_vm11, 1.0, %v7046_v20 }
 0x1d5   : > { %v1078_v15 = vpop.permute.xlu1 %1077  ;;  %6660 = vmatmul.mubr.msk.bf16.gmra.mrb[12].mxu1 %vm2085_vm12, %v6829_v49 }
 0x1d6   : > { %v8141_v9 = vadd.f32 %v6459_v41, %v1223_v14  ;;  %vm1128_vm7 = vcmp.eq.s32.totalorder %v7591_v3, %v1078_v15  ;;  %6663 = vmatprep.mubr.msk.bf16.mxu1 %vm2085_vm12, %v6830_v11  ;;  %v6831_v14 = vld [vmem:[%s8093_s30 + $0x68] sm:$0xff]  }
 0x1d7   : > { %v6428_v36 = vsel %vm1128_vm7, 1.0, %v7046_v20 }
 0x1d8   : > { %v1224_v45 = vadd.f32 %v6428_v36, %v1000_v63  ;;  %v10402_v36 = vld [vmem:[#allocation39_spill] sm:$0xff] }
 0x1d9   : > { %vm685_vm3 = vcmp.eq.s32.totalorder %v7591_v3, %v10402_v36 }
 0x1da   : > { %v1296_v40 = vpop.permute.xlu1 %1295  ;;  %v6369_v58 = vsel %vm685_vm3, 1.0, %v7046_v20 }
 0x1db   : > { %vm1350_vm5 = vcmp.eq.s32.totalorder %v7591_v3, %v1296_v40  ;;  %v10399_v40 = vld [vmem:[#allocation21_spill] sm:$0xff] }
 0x1dc   : > { %v6458_v35 = vsel %vm1350_vm5, 1.0, %v7046_v20  ;;  %vm458_vm13 = vcmp.eq.s32.totalorder %v7591_v3, %v10399_v40 }
 0x1dd   : > { %v8144_v25 = vadd.f32 %v6458_v35, %v1222_v24  ;;  %6664 = vmatmul.mubr.msk.bf16.gmra.mrb[16].mxu1 %vm2085_vm12, %v6831_v14  ;;  %v6833_v24 = vld [vmem:[%s8093_s30 + $0x78] sm:$0xff]   ;;  %v6334_v31 = vsel %vm458_vm13, 1.0, %v7046_v20  ;;  %v10401_v35 = vld [vmem:[#allocation46_spill] sm:$0xff] }
 0x1de   : > { %v1302_v47 = vpop.permute.xlu1 %1301  ;;  %6667 = vmatprep.mubr.msk.bf16.mxu1 %vm2085_vm12, %v6832_v57  ;;  %vm907_vm0 = vcmp.eq.s32.totalorder %v7591_v3, %v10401_v35  ;;  %v778_v46 = vadd.f32 %v6366_v42, %v6334_v31  ;;  %v1093_v57 = vpop.permute.xlu0 %1092 }
 0x1df   : > { %vm1352_vm8 = vcmp.eq.s32.totalorder %v7591_v3, %v1302_v47  ;;  %v1469_v8 = vpack.c.bf16 %v8141_v9, %v8144_v25  ;;  %vm1133_vm13 = vcmp.eq.s32.totalorder %v7591_v3, %v1093_v57 }
 0x1e0   : > { %v6460_v27 = vsel %vm1352_vm8, 1.0, %v7046_v20  ;;  %v6433_v42 = vsel %vm1133_vm13, 1.0, %v7046_v20 }
 0x1e1   : > { %6625 = vmatprep.mubr.bf16.mxu0 %v1469_v8  ;;  %v8162_v39 = vadd.f32 %v6460_v27, %v1224_v45  ;;  %v6399_v8 = vsel %vm907_vm0, 1.0, %v7046_v20  ;;  %v10404_v45 = vld [vmem:[#allocation31_spill] sm:$0xff] }
 0x1e2   : > { %v1305_v16 = vpop.permute.xlu1 %1304  ;;  %vm1355_vm5 = vcmp.eq.s32.totalorder %v7591_v3, %v10404_v45 }
 0x1e3   : > { %vm1353_vm9 = vcmp.eq.s32.totalorder %v7591_v3, %v1305_v16  ;;  %v10403_v16 = vld [vmem:[#allocation22_spill] sm:$0xff]  ;;  %v6463_v49 = vsel %vm1355_vm5, 1.0, %v7046_v20  ;;  %vm911_vm5 = vcmp.eq.s32.totalorder %v7591_v3, %v7727_v0 }
 0x1e4   : > { %v6461_v5 = vsel %vm1353_vm9, 1.0, %v7046_v20  ;;  %vm461_vm4 = vcmp.eq.s32.totalorder %v7591_v3, %v10403_v16  ;;  %v10410_v0 = vld [vmem:[#allocation26_spill] sm:$0xff] }
 0x1e5   : > { %v8164_v15 = vadd.f32 %v6461_v5, %v1225_v60  ;;  %6668 = vmatmul.mubr.msk.bf16.gmra.mrb[20].mxu1 %vm2085_vm12, %v6833_v24  ;;  %v6430_v60 = vsel %vm1130_vm2, 1.0, %v7046_v20  ;;  %v10405_v5 = vld [vmem:[#allocation23_spill] sm:$0xff] }
 0x1e6   : > { %vm460_vm8 = vcmp.eq.s32.totalorder %v7591_v3, %v10405_v5  ;;  %v10407_v5 = vld [vmem:[#allocation25_spill] sm:$0xff] }
 0x1e7   : > { %v639_v26 = vpop.permute.xlu1 %638  ;;  %v1470_v52 = vpack.c.bf16 %v8164_v15, %v8162_v39  ;;  %vm462_vm2 = vcmp.eq.s32.totalorder %v7591_v3, %v10407_v5 }
 0x1e8   : > { %vm683_vm10 = vcmp.eq.s32.totalorder %v7591_v3, %v639_v26 }
 0x1e9   : > { %6626 = vmatmul.mubr.bf16.gmra.mrb[20].mxu0 %v1470_v52  ;;  %v6367_v1 = vsel %vm683_vm10, 1.0, %v7046_v20  ;;  %v6337_v52 = vsel %vm461_vm4, 1.0, %v7046_v20 }
 0x1ea   : > { %v779_v10 = vadd.f32 %v6367_v1, %v6335_v13  ;;  %v781_v14 = vadd.f32 %v6369_v58, %v6337_v52  ;;  %v10408_v58 = vld [vmem:[#allocation40_spill] sm:$0xff] }
 0x1eb   : > { %v642_v33 = vpop.permute.xlu1 %641  ;;  %vm686_vm3 = vcmp.eq.s32.totalorder %v7591_v3, %v10408_v58 }
 0x1ec   : > { %v1003_v27 = vadd.f32 %v6399_v8, %v779_v10  ;;  %vm684_vm6 = vcmp.eq.s32.totalorder %v7591_v3, %v642_v33 }
 0x1ed   : > { %v6368_v33 = vsel %vm684_vm6, 1.0, %v7046_v20 }
 0x1f0   : > { %v860_v51 = vpop.permute.xlu1 %859 }
 0x1f1   : > { %vm906_vm15 = vcmp.eq.s32.totalorder %v7591_v3, %v860_v51 }
 0x1f2   : > { %v6398_v47 = vsel %vm906_vm15, 1.0, %v7046_v20 }
 0x1f3   : > { %v1002_v63 = vadd.f32 %v6398_v47, %v778_v46 }
 0x1f4   : > { %v866_v19 = vpop.permute.xlu1 %865 }
 0x1f5   : > { %vm908_vm9 = vcmp.eq.s32.totalorder %v7591_v3, %v866_v19  ;;  %v1226_v7 = vadd.f32 %v6430_v60, %v1002_v63  ;;  %v6336_v19 = vsel %vm460_vm8, 1.0, %v7046_v20  ;;  %v1096_v60 = vpop.permute.xlu0 %1095 }
 0x1f6   : > { %v6400_v40 = vsel %vm908_vm9, 1.0, %v7046_v20  ;;  %v780_v1 = vadd.f32 %v6368_v33, %v6336_v19  ;;  %v6338_v33 = vsel %vm462_vm2, 1.0, %v7046_v20  ;;  %vm1134_vm8 = vcmp.eq.s32.totalorder %v7591_v3, %v1096_v60 }
 0x1f8   : > { %v869_v12 = vpop.permute.xlu1 %868  ;;  %v1004_v31 = vadd.f32 %v6400_v40, %v780_v1  ;;  %v6403_v1 = vsel %vm911_vm5, 1.0, %v7046_v20 }
 0x1f9   : > { %vm909_vm7 = vcmp.eq.s32.totalorder %v7591_v3, %v869_v12 }
 0x1fa   : > { %v6401_v51 = vsel %vm909_vm7, 1.0, %v7046_v20 }
 0x1fd   : > { %v1087_v41 = vpop.permute.xlu1 %1086 }
 0x1fe   : > { %vm1131_vm1 = vcmp.eq.s32.totalorder %v7591_v3, %v1087_v41  ;;  %v1005_v41 = vadd.f32 %v6401_v51, %v781_v14  ;;  %v6370_v51 = vsel %vm686_vm3, 1.0, %v7046_v20 }
 0x1ff   : > { %v6431_v17 = vsel %vm1131_vm1, 1.0, %v7046_v20  ;;  %v782_v19 = vadd.f32 %v6370_v51, %v6338_v33 }
 0x200   : > { %v1227_v48 = vadd.f32 %v6431_v17, %v1003_v27  ;;  %v1229_v47 = vadd.f32 %v6433_v42, %v1005_v41 }
 0x201   : > { %v1090_v53 = vpop.permute.xlu1 %1089 }
 0x202   : > { %v8220_v12 = vadd.f32 %v6463_v49, %v1227_v48  ;;  %vm1132_vm11 = vcmp.eq.s32.totalorder %v7591_v3, %v1090_v53  ;;  %v10406_v48 = vld [vmem:[#allocation24_spill] sm:$0xff] }
 0x203   : > { %v6432_v13 = vsel %vm1132_vm11, 1.0, %v7046_v20  ;;  %vm463_vm1 = vcmp.eq.s32.totalorder %v7591_v3, %v10406_v48 }
 0x204   : > { %v1228_v32 = vadd.f32 %v6432_v13, %v1004_v31  ;;  %v6339_v49 = vsel %vm463_vm1, 1.0, %v7046_v20 }
 0x206   : > { %v1308_v26 = vpop.permute.xlu1 %1307 }
 0x207   : > { %vm1354_vm10 = vcmp.eq.s32.totalorder %v7591_v3, %v1308_v26  ;;  %v1105_v26 = vpop.permute.xlu0 %1104 }
 0x208   : > { %v6462_v11 = vsel %vm1354_vm10, 1.0, %v7046_v20  ;;  %vm465_vm10 = vcmp.eq.s32.totalorder %v7591_v3, %v10410_v0  ;;  %vm1137_vm2 = vcmp.eq.s32.totalorder %v7591_v3, %v1105_v26 }
 0x209   : > { %v8223_v18 = vadd.f32 %v6462_v11, %v1226_v7  ;;  %v6437_v26 = vsel %vm1137_vm2, 1.0, %v7046_v20 }
 0x20a   : > { %v1314_v44 = vpop.permute.xlu1 %1313 }
 0x20b   : > { %vm1356_vm14 = vcmp.eq.s32.totalorder %v7591_v3, %v1314_v44  ;;  %v1471_v24 = vpack.c.bf16 %v8220_v12, %v8223_v18  ;;  %v1323_v57 = vpop.permute.xlu0 %1322  ;;  %v10409_v44 = vld [vmem:[#allocation41_spill] sm:$0xff] }
 0x20c   : > { %v6464_v35 = vsel %vm1356_vm14, 1.0, %v7046_v20  ;;  %vm689_vm7 = vcmp.eq.s32.totalorder %v7591_v3, %v10409_v44  ;;  %vm1359_vm9 = vcmp.eq.s32.totalorder %v7591_v3, %v1323_v57 }
 0x20d   : > { %6629 = vmatprep.mubr.bf16.mxu0 %v1471_v24  ;;  %v8239_v53 = vadd.f32 %v6464_v35, %v1228_v32  ;;  %v6373_v42 = vsel %vm689_vm7, 1.0, %v7046_v20  ;;  %v6434_v35 = vsel %vm1134_vm8, 1.0, %v7046_v20 }
 0x20e   : > { %v1317_v10 = vpop.permute.xlu1 %1316 }
 0x20f   : > { %vm1357_vm15 = vcmp.eq.s32.totalorder %v7591_v3, %v1317_v10  ;;  %v6467_v10 = vsel %vm1359_vm9, 1.0, %v7046_v20 }
 0x210   : > { %v6465_v46 = vsel %vm1357_vm15, 1.0, %v7046_v20 }
 0x211   : > { %v8241_v8 = vadd.f32 %v6465_v46, %v1229_v47  ;;  %v10411_v47 = vld [vmem:[#allocation27_spill] sm:$0xff] }
 0x212   : > { %vm464_vm14 = vcmp.eq.s32.totalorder %v7591_v3, %v10411_v47 }
 0x213   : > { %v651_v17 = vpop.permute.xlu1 %650  ;;  %v1472_v36 = vpack.c.bf16 %v8241_v8, %v8239_v53 }
 0x214   : > { %vm687_vm0 = vcmp.eq.s32.totalorder %v7591_v3, %v651_v17  ;;  %v6341_v17 = vsel %vm465_vm10, 1.0, %v7046_v20 }
 0x215   : > { %6630 = vmatmul.mubr.bf16.gmra.mrb[24].mxu0 %v1472_v36  ;;  %v6371_v52 = vsel %vm687_vm0, 1.0, %v7046_v20  ;;  %v785_v60 = vadd.f32 %v6373_v42, %v6341_v17 }
 0x216   : > { %v783_v11 = vadd.f32 %v6371_v52, %v6339_v49  ;;  %v10414_v52 = vlaneseq }
 0x217   : > { %v654_v63 = vpop.permute.xlu1 %653 }
 0x218   : > { %v1007_v13 = vadd.f32 %v6403_v1, %v783_v11  ;;  %vm688_vm11 = vcmp.eq.s32.totalorder %v7591_v3, %v654_v63 }
 0x219   : > { %v6372_v36 = vsel %vm688_vm11, 1.0, %v7046_v20 }
 0x21c   : > { %v872_v27 = vpop.permute.xlu1 %871 }
 0x21d   : > { %vm910_vm4 = vcmp.eq.s32.totalorder %v7591_v3, %v872_v27 }
 0x21e   : > { %v6402_v14 = vsel %vm910_vm4, 1.0, %v7046_v20 }
 0x21f   : > { %v1006_v24 = vadd.f32 %v6402_v14, %v782_v19 }
 0x220   : > { %v878_v16 = vpop.permute.xlu1 %877 }
 0x221   : > { %vm912_vm15 = vcmp.eq.s32.totalorder %v7591_v3, %v878_v16  ;;  %v1230_v46 = vadd.f32 %v6434_v35, %v1006_v24  ;;  %v6340_v16 = vsel %vm464_vm14, 1.0, %v7046_v20  ;;  %v8309_v24 = vld [vmem:[%s10221_s3] sm:$0xff] }
 0x222   : > { %v6404_v5 = vsel %vm912_vm15, 1.0, %v7046_v20  ;;  %v784_v49 = vadd.f32 %v6372_v36, %v6340_v16 }
 0x224   : > { %v881_v45 = vpop.permute.xlu1 %880  ;;  %v1008_v57 = vadd.f32 %v6404_v5, %v784_v49 }
 0x225   : > { %vm913_vm13 = vcmp.eq.s32.totalorder %v7591_v3, %v881_v45 }
 0x226   : > { %v6405_v63 = vsel %vm913_vm13, 1.0, %v7046_v20 }
 0x227   : > { %v1009_v33 = vadd.f32 %v6405_v63, %v785_v60 }
 0x229   : > { %v1099_v7 = vpop.permute.xlu1 %1098 }
 0x22a   : > { %vm1135_vm6 = vcmp.eq.s32.totalorder %v7591_v3, %v1099_v7  ;;  %v8291_v7 = vshrl.u32 %v10414_v52, 7 }
 0x22b   : > { %v6435_v41 = vsel %vm1135_vm6, 1.0, %v7046_v20 }
 0x22c   : > { %v1231_v31 = vadd.f32 %v6435_v41, %v1007_v13  ;;  %10415 = vst [vmem:[#allocation9_spill] sm:$0xff] %v8291_v7  ;;  %v8298_v14 = vsub.s32 1, %v8291_v7  ;;  %v8303_v44 = vsub.s32 2, %v8291_v7  ;;  %v1233_v41 = vadd.f32 %v6437_v26, %v1009_v33  ;;  %v6819_v33 = vld [vmem:[%s8093_s30 + $0x8] sm:$0xff]  }
 0x22d   : > { %v1102_v40 = vpop.permute.xlu1 %1101 }
 0x22e   : > { %v8282_v45 = vadd.f32 %v6467_v10, %v1231_v31  ;;  %vm1136_vm1 = vcmp.eq.s32.totalorder %v7591_v3, %v1102_v40  ;;  %10416 = vst [vmem:[#allocation32_spill] sm:$0xff] %v8298_v14  ;;  %10417 = vst [vmem:[#allocation43_spill] sm:$0xff] %v8303_v44  ;;  %v8314_v0 = vrot.slane %v8309_v24, %v8298_v14 }
 0x22f   : > { %v6436_v11 = vsel %vm1136_vm1, 1.0, %v7046_v20  ;;  %v8322_v10 = vrot.slane %v8309_v24, %v8303_v44 }
 0x230   : > { %10412 = vst [vmem:[#allocation6_spill] sm:$0xff] %v8282_v45  ;;  %v1232_v1 = vadd.f32 %v6436_v11, %v1008_v57  ;;  %v6820_v57 = vld [vmem:[%s8093_s30 + $0x10] sm:$0xff]  }
 0x232   : > { %v1320_v32 = vpop.permute.xlu1 %1319 }
 0x233   : > { %vm1358_vm0 = vcmp.eq.s32.totalorder %v7591_v3, %v1320_v32  ;;  %v6818_v32 = vld [vmem:[%s8093_s30] sm:$0xff]  }
 0x234   : > { %v6466_v27 = vsel %vm1358_vm0, 1.0, %v7046_v20 }
 0x235   : > { %v8285_v48 = vadd.f32 %v6466_v27, %v1230_v46 }
 0x236   : > { %v1326_v58 = vpop.permute.xlu1 %1325 }
 0x237   : > { %10413 = vst [vmem:[#allocation8_spill] sm:$0xff] %v8285_v48  ;;  %vm1360_vm3 = vcmp.eq.s32.totalorder %v7591_v3, %v1326_v58  ;;  %v1473_v51 = vpack.c.bf16 %v8282_v45, %v8285_v48 }
 0x238   : > { %v6468_v19 = vsel %vm1360_vm3, 1.0, %v7046_v20 }
 0x239   : > { %6633 = vmatprep.mubr.bf16.mxu0 %v1473_v51  ;;  %v8316_v31 = vadd.f32 %v6468_v19, %v1232_v1 }
 0x23a   : > { %v1329_v40 = vpop.permute.xlu1 %1328 }
 0x23b   : > { %vm1361_vm4 = vcmp.eq.s32.totalorder %v7591_v3, %v1329_v40  ;;  %10418 = vst [vmem:[#allocation7_spill] sm:$0xff] %v8316_v31 }
 0x23c   : > { %v6469_v13 = vsel %vm1361_vm4, 1.0, %v7046_v20 }
 0x23d   : > { %v8318_v42 = vadd.f32 %v6469_v13, %v1233_v41 }
 0x23e   : > { %v6607_v35 = vpop.f32.mrb[0].mxu0 }
 0x23f   : > { %10419 = vst [vmem:[#allocation28_spill] sm:$0xff] %v8318_v42  ;;  %v1573_v47 = vpop.f32.mrb[1].mxu0  ;;  %v1474_v46 = vpack.c.bf16 %v8318_v42, %v8316_v31  ;;  %v1706_v20 = vmul.f32 %v6607_v35, %v8314_v0 }
 0x240   : > { %v1704_v17 = vmul.f32 %v8314_v0, %v1573_v47  ;;  %v6608_v36 = vpop.f32.mrb[2].mxu0 }
 0x241   : > { %v1576_v63 = vpop.f32.mrb[3].mxu0  ;;  %6634 = vmatmul.mubr.bf16.gmra.mrb[28].mxu0 %v1474_v46  ;;  %v1742_v16 = vadd.f32 %v8322_v10, %v1706_v20  ;;  %v1707_v58 = vmul.f32 %v6608_v36, %v8314_v0 }
 0x242   : > { %v1740_v27 = vadd.f32 %v8322_v10, %v1704_v17  ;;  %v1705_v60 = vmul.f32 %v8314_v0, %v1576_v63  ;;  %6639 = vmatprep.mubr.msk.bf16.mxu0 %vm2085_vm12, %v6818_v32 }
 0x243   : > { %v1774_v19 = vmul.f32 %v6607_v35, %v1742_v16  ;;  %v1743_v40 = vadd.f32 %v8322_v10, %v1707_v58 }
 0x244   : > { %v1772_v5 = vmul.f32 %v1740_v27, %v1573_v47  ;;  %v1741_v49 = vadd.f32 %v8322_v10, %v1705_v60  ;;  %v6821_v60 = vld [vmem:[%s8093_s30 + $0x18] sm:$0xff]   ;;  %s6981_s30 = sshll.u32 %s7048_s6, 4  ;;  %s6982_s30 = int_to_ptr.vmem [resolvable:$false] %s6981_s30 }
 0x245   : > { %v1775_v20 = vmul.f32 %v6608_v36, %v1743_v40  ;;  %s6983_s15 = scalar_lea.vmem %s6982_s30, 64  ;;  %p6984_p0 = scmp.lt.s32.totalorder %s10176_s21, %s6982_s30 }
 0x246   : > { %v1773_v51 = vmul.f32 %v1741_v49, %v1576_v63  ;;  %1804 = vadd.xlane.f32.xlu0 %v1772_v5  ;;  %v6611_v11 = vpop.f32.mrb[4].mxu0  ;;  %p6985_p1 = scmp.lt.s32.totalorder %s6983_s15, %s6977_s25 }
 0x247   : > { %v1589_v26 = vpop.f32.mrb[5].mxu0  ;;  %v1710_v1 = vmul.f32 %v6611_v11, %v8314_v0 }
 0x248   : > { %v1708_v41 = vmul.f32 %v8314_v0, %v1589_v26  ;;  %1806 = vadd.xlane.f32.xlu1 %v1773_v51  ;;  %v6612_v13 = vpop.f32.mrb[6].mxu0  ;;  %p6986_p2 = por %p6985_p1, %p6984_p0 }
 0x249   : > { %v1592_v32 = vpop.f32.mrb[7].mxu0  ;;  %6640 = vmatmul.mubr.msk.bf16.vlgmr.msra.gmra.mrb[32].mxu0 %vm2085_vm12, %v6819_v33  ;;  %v1711_v35 = vmul.f32 %v6612_v13, %v8314_v0  ;;  %v1746_v17 = vadd.f32 %v8322_v10, %v1710_v1 }
 0x24a   : > { %v1744_v47 = vadd.f32 %v8322_v10, %v1708_v41  ;;  %v1709_v46 = vmul.f32 %v8314_v0, %v1592_v32  ;;  %1808 = vadd.xlane.f32.xlu0 %v1774_v19  ;;  %6643 = vmatprep.mubr.msk.bf16.mxu0 %vm2085_vm12, %v6820_v57  ;;  %p6987_p3 = pnand %p6986_p2, %p6980_p13 }
 0x24b   : > { %v1747_v5 = vadd.f32 %v8322_v10, %v1711_v35  ;;  %v1778_v49 = vmul.f32 %v6611_v11, %v1746_v17 }
 0x24c   : > { %v1776_v63 = vmul.f32 %v1744_v47, %v1589_v26  ;;  %v1745_v27 = vadd.f32 %v8322_v10, %v1709_v46 }
 0x24d   : > { %v1779_v1 = vmul.f32 %v6612_v13, %v1747_v5 }
 0x24e   : > { %1810 = vadd.xlane.f32.xlu0 %v1775_v20  ;;  %1812 = vadd.xlane.f32.xlu1 %v1776_v63  ;;  %v6615_v16 = vpop.f32.mrb[8].mxu0  ;;  %v1777_v33 = vmul.f32 %v1745_v27, %v1592_v32 }
 0x24f   : > { %v1605_v58 = vpop.f32.mrb[9].mxu0  ;;  %v1714_v51 = vmul.f32 %v6615_v16, %v8314_v0 }
 0x250   : > { %v1712_v57 = vmul.f32 %v8314_v0, %v1605_v58  ;;  %v6616_v19 = vpop.f32.mrb[10].mxu0 }
 0x251   : > { %v1608_v36 = vpop.f32.mrb[11].mxu0  ;;  %6644 = vmatmul.mubr.msk.bf16.gmra.mrb[36].mxu0 %vm2085_vm12, %v6821_v60  ;;  %v1750_v41 = vadd.f32 %v8322_v10, %v1714_v51  ;;  %v1715_v11 = vmul.f32 %v6616_v19, %v8314_v0 }
 0x252   : > { %v1748_v26 = vadd.f32 %v8322_v10, %v1712_v57  ;;  %v1713_v40 = vmul.f32 %v8314_v0, %v1608_v36  ;;  %1816 = vadd.xlane.f32.xlu1 %v1778_v49  ;;  %1814 = vadd.xlane.f32.xlu0 %v1777_v33 }
 0x253   : > { %v1782_v46 = vmul.f32 %v6615_v16, %v1750_v41  ;;  %v1751_v35 = vadd.f32 %v8322_v10, %v1715_v11  ;;  %v6834_v41 = vld [vmem:[%s10223_s5] sm:$0xff]   ;;  %v6836_v11 = vld [vmem:[%s10223_s5 + $0x10] sm:$0xff]  }
 0x254   : > { %v1780_v47 = vmul.f32 %v1748_v26, %v1605_v58  ;;  %v1749_v32 = vadd.f32 %v8322_v10, %v1713_v40  ;;  %6671 = vmatprep.subr.bf16.mxu1 %v6834_v41 }
 0x255   : > { %v1783_v17 = vmul.f32 %v6616_v19, %v1751_v35  ;;  %6672 = vmatpush3.bf16.msra.mxu1 %v6834_v41  ;;  %v8399_v41 = vsub.s32 3, %v8291_v7 }
 0x256   : > { %1818 = vadd.xlane.f32.xlu0 %v1779_v1  ;;  %1820 = vadd.xlane.f32.xlu1 %v1780_v47  ;;  %v1781_v20 = vmul.f32 %v1749_v32, %v1608_v36  ;;  %v6835_v47 = vld [vmem:[%s10223_s5 + $0x8] sm:$0xff]   ;;  %v6837_v32 = vld [vmem:[%s10223_s5 + $0x18] sm:$0xff]  }
 0x257   : > { %6673 = vmatprep.subr.bf16.mxu1 %v6835_v47  ;;  %10420 = vst [vmem:[#allocation33_spill] sm:$0xff] %v8399_v41 }
 0x259   : > { %6674 = vmatpush3.bf16.msra.mxu1 %v6835_v47 }
 0x25a   : > { %1824 = vadd.xlane.f32.xlu1 %v1782_v46  ;;  %1822 = vadd.xlane.f32.xlu0 %v1781_v20  ;;  %v6838_v46 = vld [vmem:[%s10223_s5 + $0x20] sm:$0xff]  }
 0x25b   : > { %6675 = vmatprep.subr.bf16.mxu1 %v6836_v11 }
 0x25d   : > { %6676 = vmatpush3.bf16.msra.mxu1 %v6836_v11  ;;  %v8403_v11 = vrot.slane %v8309_v24, %v8399_v41 }
 0x25e   : > { %1826 = vadd.xlane.f32.xlu0 %v1783_v17  ;;  %6677 = vmatprep.subr.bf16.mxu1 %v6837_v32 }
 0x261   : > { %6678 = vmatpush3.bf16.msra.mxu1 %v6837_v32 }
 0x262   : > { %6679 = vmatprep.subr.bf16.mxu1 %v6838_v46 }
 0x264   : > { %v6619_v63 = vpop.f32.mrb[12].mxu0 }
 0x265   : > { %v1621_v27 = vpop.f32.mrb[13].mxu0  ;;  %v1718_v13 = vmul.f32 %v6619_v63, %v8314_v0  ;;  %6680 = vmatpush3.bf16.msra.mxu1 %v6838_v46 }
 0x266   : > { %v1716_v60 = vmul.f32 %v8314_v0, %v1621_v27  ;;  %v6620_v5 = vpop.f32.mrb[14].mxu0 }
 0x267   : > { %v1624_v58 = vpop.f32.mrb[15].mxu0  ;;  %v1719_v33 = vmul.f32 %v6620_v5, %v8314_v0  ;;  %v1754_v51 = vadd.f32 %v8322_v10, %v1718_v13 }
 0x268   : > { %v1752_v49 = vadd.f32 %v8322_v10, %v1716_v60  ;;  %v1717_v16 = vmul.f32 %v8314_v0, %v1624_v58 }
 0x269   : > { %v1755_v36 = vadd.f32 %v8322_v10, %v1719_v33  ;;  %v1786_v40 = vmul.f32 %v6619_v63, %v1754_v51 }
 0x26a   : > { %v1784_v57 = vmul.f32 %v1752_v49, %v1621_v27  ;;  %v1753_v19 = vadd.f32 %v8322_v10, %v1717_v16 }
 0x26b   : > { %v1787_v1 = vmul.f32 %v6620_v5, %v1755_v36 }
 0x26c   : > { %v1785_v26 = vmul.f32 %v1753_v19, %v1624_v58  ;;  %1828 = vadd.xlane.f32.xlu1 %v1784_v57  ;;  %v6839_v19 = vld [vmem:[%s10223_s5 + $0x28] sm:$0xff]  }
 0x26d   : > { %6681 = vmatprep.subr.bf16.mxu1 %v6839_v19 }
 0x26e   : > { %1830 = vadd.xlane.f32.xlu0 %v1785_v26  ;;  %6682 = vmatpush3.bf16.msra.mxu1 %v6839_v19 }
 0x270   : > { %1832 = vadd.xlane.f32.xlu1 %v1786_v40  ;;  %v6840_v40 = vld [vmem:[%s10223_s5 + $0x30] sm:$0xff]  }
 0x271   : > { %6683 = vmatprep.subr.bf16.mxu1 %v6840_v40 }
 0x272   : > { %1834 = vadd.xlane.f32.xlu0 %v1787_v1  ;;  %6684 = vmatpush3.bf16.msra.mxu1 %v6840_v40  ;;  %v6841_v1 = vld [vmem:[%s10223_s5 + $0x38] sm:$0xff]  }
 0x273   : > { %6685 = vmatprep.subr.bf16.mxu1 %v6841_v1 }
 0x276   : > { %6686 = vmatpush3.bf16.msra.mxu1 %v6841_v1 }
 0x27f   : > { %v6649_v47 = vpop.f32.mrb[0].mxu1 }
 0x280   : > { %v2204_v32 = vpop.f32.mrb[1].mxu1 }
 0x281   : > { %v6650_v46 = vpop.f32.mrb[2].mxu1 }
 0x290   : > { %v6623_v35 = vpop.f32.mrb[16].mxu0 }
 0x291   : > { %v1637_v20 = vpop.f32.mrb[17].mxu0  ;;  %v1722_v17 = vmul.f32 %v6623_v35, %v8314_v0 }
 0x292   : > { %v1720_v63 = vmul.f32 %v8314_v0, %v1637_v20  ;;  %v6624_v27 = vpop.f32.mrb[18].mxu0 }
 0x293   : > { %v1640_v13 = vpop.f32.mrb[19].mxu0  ;;  %v1723_v5 = vmul.f32 %v6624_v27, %v8314_v0  ;;  %v1758_v49 = vadd.f32 %v8322_v10, %v1722_v17  ;;  %v2216_v17 = vadd.f32 %v6650_v46, %v8403_v11 }
 0x294   : > { %v1756_v60 = vadd.f32 %v8322_v10, %v1720_v63  ;;  %v1721_v58 = vmul.f32 %v8314_v0, %v1640_v13  ;;  %v2207_v63 = vpop.f32.mrb[3].mxu1 }
 0x295   : > { %v1759_v51 = vadd.f32 %v8322_v10, %v1723_v5  ;;  %v1790_v36 = vmul.f32 %v6623_v35, %v1758_v49  ;;  %v2213_v35 = vadd.f32 %v6649_v47, %v8403_v11  ;;  %v2310_v5 = vmax.f32 %v2216_v17, 0.0 }
 0x296   : > { %v1788_v33 = vmul.f32 %v1756_v60, %v1637_v20  ;;  %v1757_v16 = vadd.f32 %v8322_v10, %v1721_v58  ;;  %v2205_v20 = vadd.f32 %v2204_v32, %v8403_v11 }
 0x297   : > { %v1791_v26 = vmul.f32 %v6624_v27, %v1759_v51  ;;  %v2208_v27 = vadd.f32 %v2207_v63, %v8403_v11 }
 0x298   : > { %v1789_v57 = vmul.f32 %v1757_v16, %v1640_v13  ;;  %1836 = vadd.xlane.f32.xlu1 %v1788_v33  ;;  %v2309_v13 = vmax.f32 %v2213_v35, 0.0  ;;  %v2307_v60 = vmax.f32 %v2205_v20, 0.0  ;;  %v6653_v16 = vpop.f32.mrb[4].mxu1 }
 0x299   : > { %v2308_v58 = vmax.f32 %v2208_v27, 0.0  ;;  %v2229_v51 = vadd.f32 %v6653_v16, %v8403_v11 }
 0x29a   : > { %1838 = vadd.xlane.f32.xlu0 %v1789_v57  ;;  %v8409_v49 = vpack.c.bf16 %v2310_v5, %v2309_v13  ;;  %v2220_v57 = vpop.f32.mrb[5].mxu1 }
 0x29b   : > { %v8411_v33 = vpack.c.bf16 %v2308_v58, %v2307_v60  ;;  %v2221_v19 = vadd.f32 %v2220_v57, %v8403_v11 }
 0x29c   : > { %1840 = vadd.xlane.f32.xlu1 %v1790_v36  ;;  %v6654_v36 = vpop.f32.mrb[6].mxu1 }
 0x29d   : > { %v2232_v40 = vadd.f32 %v6654_v36, %v8403_v11  ;;  %v2223_v1 = vpop.f32.mrb[7].mxu1  ;;  %v2311_v47 = vmax.f32 %v2221_v19, 0.0 }
 0x29e   : > { %1842 = vadd.xlane.f32.xlu0 %v1791_v26  ;;  %v2313_v26 = vmax.f32 %v2229_v51, 0.0  ;;  %v2224_v32 = vadd.f32 %v2223_v1, %v8403_v11  ;;  %v6657_v63 = vpop.f32.mrb[8].mxu1 }
 0x29f   : > { %v2314_v46 = vmax.f32 %v2232_v40, 0.0  ;;  %v2245_v27 = vadd.f32 %v6657_v63, %v8403_v11  ;;  %v2236_v13 = vpop.f32.mrb[9].mxu1 }
 0x2a0   : > { %v2312_v35 = vmax.f32 %v2224_v32, 0.0  ;;  %v2237_v60 = vadd.f32 %v2236_v13, %v8403_v11  ;;  %v6658_v5 = vpop.f32.mrb[10].mxu1 }
 0x2a1   : > { %v8417_v20 = vpack.c.bf16 %v2314_v46, %v2313_v26  ;;  %v2317_v16 = vmax.f32 %v2245_v27, 0.0  ;;  %v2248_v51 = vadd.f32 %v6658_v5, %v8403_v11  ;;  %v2239_v57 = vpop.f32.mrb[11].mxu1 }
 0x2a2   : > { %v8419_v17 = vpack.c.bf16 %v2312_v35, %v2311_v47  ;;  %v2315_v36 = vmax.f32 %v2237_v60, 0.0  ;;  %v2240_v40 = vadd.f32 %v2239_v57, %v8403_v11 }
 0x2a3   : > { %v2318_v32 = vmax.f32 %v2248_v51, 0.0 }
 0x2a4   : > { %v2316_v35 = vmax.f32 %v2240_v40, 0.0 }
 0x2a5   : > { %v8430_v5 = vpack.c.bf16 %v2318_v32, %v2317_v16 }
 0x2a6   : > { %v8432_v52 = vpack.c.bf16 %v2316_v35, %v2315_v36 }
 0x2a8   : > { %v6661_v40 = vpop.f32.mrb[12].mxu1 }
 0x2a9   : > { %v2252_v44 = vpop.f32.mrb[13].mxu1 }
 0x2aa   : > { %v2253_v16 = vadd.f32 %v2252_v44, %v8403_v11  ;;  %v6662_v32 = vpop.f32.mrb[14].mxu1 }
 0x2ab   : > { %v2264_v35 = vadd.f32 %v6662_v32, %v8403_v11 }
 0x2bc   : > { %v6627_v58 = vpop.f32.mrb[20].mxu0 }
 0x2bd   : > { %v1653_v19 = vpop.f32.mrb[21].mxu0  ;;  %v1726_v26 = vmul.f32 %v6627_v58, %v8314_v0 }
 0x2be   : > { %v1724_v1 = vmul.f32 %v8314_v0, %v1653_v19  ;;  %v6628_v47 = vpop.f32.mrb[22].mxu0 }
 0x2bf   : > { %v1656_v46 = vpop.f32.mrb[23].mxu0  ;;  %v1727_v13 = vmul.f32 %v6628_v47, %v8314_v0  ;;  %v1762_v60 = vadd.f32 %v8322_v10, %v1726_v26  ;;  %v2255_v26 = vpop.f32.mrb[15].mxu1 }
 0x2c0   : > { %v1760_v63 = vadd.f32 %v8322_v10, %v1724_v1  ;;  %v1725_v27 = vmul.f32 %v8314_v0, %v1656_v46  ;;  %v2261_v1 = vadd.f32 %v6661_v40, %v8403_v11 }
 0x2c1   : > { %v1763_v41 = vadd.f32 %v8322_v10, %v1727_v13  ;;  %v1794_v14 = vmul.f32 %v6627_v58, %v1762_v60  ;;  %v2256_v13 = vadd.f32 %v2255_v26, %v8403_v11  ;;  %v6665_v58 = vpop.f32.mrb[16].mxu1 }
 0x2c2   : > { %v1792_v57 = vmul.f32 %v1760_v63, %v1653_v19  ;;  %v1761_v3 = vadd.f32 %v8322_v10, %v1725_v27  ;;  %v2321_v36 = vmax.f32 %v2261_v1, 0.0  ;;  %v2319_v63 = vmax.f32 %v2253_v16, 0.0  ;;  %v2268_v60 = vpop.f32.mrb[17].mxu1 }
 0x2c3   : > { %v1795_v19 = vmul.f32 %v6628_v47, %v1763_v41  ;;  %v2277_v44 = vadd.f32 %v6665_v58, %v8403_v11  ;;  %v6666_v40 = vpop.f32.mrb[18].mxu1 }
 0x2c4   : > { %v1793_v51 = vmul.f32 %v1761_v3, %v1656_v46  ;;  %1844 = vadd.xlane.f32.xlu1 %v1792_v57  ;;  %v2322_v3 = vmax.f32 %v2264_v35, 0.0  ;;  %v2320_v46 = vmax.f32 %v2256_v13, 0.0  ;;  %v2271_v41 = vpop.f32.mrb[19].mxu1 }
 0x2c5   : > { %v2325_v1 = vmax.f32 %v2277_v44, 0.0  ;;  %v2272_v16 = vadd.f32 %v2271_v41, %v8403_v11 }
 0x2c6   : > { %1846 = vadd.xlane.f32.xlu0 %v1793_v51  ;;  %v8441_v27 = vpack.c.bf16 %v2322_v3, %v2321_v36  ;;  %v8443_v57 = vpack.c.bf16 %v2320_v46, %v2319_v63  ;;  %v2269_v51 = vadd.f32 %v2268_v60, %v8403_v11 }
 0x2c7   : > { %v2324_v35 = vmax.f32 %v2272_v16, 0.0 }
 0x2c8   : > { %1848 = vadd.xlane.f32.xlu1 %v1794_v14  ;;  %v2280_v14 = vadd.f32 %v6666_v40, %v8403_v11  ;;  %v2323_v47 = vmax.f32 %v2269_v51, 0.0 }
 0x2ca   : > { %1850 = vadd.xlane.f32.xlu0 %v1795_v19  ;;  %v2326_v32 = vmax.f32 %v2280_v14, 0.0  ;;  %v8451_v26 = vpack.c.bf16 %v2324_v35, %v2323_v47  ;;  %v6669_v19 = vpop.f32.mrb[20].mxu1 }
 0x2cb   : > { %v2293_v63 = vadd.f32 %v6669_v19, %v8403_v11  ;;  %v2284_v13 = vpop.f32.mrb[21].mxu1 }
 0x2cc   : > { %v8449_v36 = vpack.c.bf16 %v2326_v32, %v2325_v1  ;;  %v2285_v3 = vadd.f32 %v2284_v13, %v8403_v11  ;;  %v6670_v46 = vpop.f32.mrb[22].mxu1 }
 0x2cd   : > { %v2329_v58 = vmax.f32 %v2293_v63, 0.0  ;;  %v2296_v44 = vadd.f32 %v6670_v46, %v8403_v11  ;;  %v2287_v60 = vpop.f32.mrb[23].mxu1 }
 0x2ce   : > { %v2327_v51 = vmax.f32 %v2285_v3, 0.0  ;;  %v2288_v40 = vadd.f32 %v2287_v60, %v8403_v11 }
 0x2cf   : > { %v2330_v14 = vmax.f32 %v2296_v44, 0.0 }
 0x2d0   : > { %v2328_v41 = vmax.f32 %v2288_v40, 0.0 }
 0x2d1   : > { %v8457_v1 = vpack.c.bf16 %v2330_v14, %v2329_v58 }
 0x2d2   : > { %v8459_v47 = vpack.c.bf16 %v2328_v41, %v2327_v51 }
 0x2d3   : > { %10421 = vst [vmem:[#allocation10_spill] sm:$0xff] %v8457_v1 }
 0x2e8   : > { %v6631_v16 = vpop.f32.mrb[24].mxu0 }
 0x2e9   : > { %v1669_v32 = vpop.f32.mrb[25].mxu0  ;;  %v1730_v35 = vmul.f32 %v6631_v16, %v8314_v0 }
 0x2ea   : > { %v1728_v19 = vmul.f32 %v8314_v0, %v1669_v32  ;;  %v6632_v13 = vpop.f32.mrb[26].mxu0 }
 0x2eb   : > { %v1672_v63 = vpop.f32.mrb[27].mxu0  ;;  %v1731_v3 = vmul.f32 %v6632_v13, %v8314_v0  ;;  %v1766_v44 = vadd.f32 %v8322_v10, %v1730_v35 }
 0x2ec   : > { %v1764_v46 = vadd.f32 %v8322_v10, %v1728_v19  ;;  %v1729_v60 = vmul.f32 %v8314_v0, %v1672_v63 }
 0x2ed   : > { %v1767_v40 = vadd.f32 %v8322_v10, %v1731_v3  ;;  %v1798_v41 = vmul.f32 %v6631_v16, %v1766_v44 }
 0x2ee   : > { %v1796_v58 = vmul.f32 %v1764_v46, %v1669_v32  ;;  %v1765_v51 = vadd.f32 %v8322_v10, %v1729_v60 }
 0x2ef   : > { %v1799_v42 = vmul.f32 %v6632_v13, %v1767_v40 }
 0x2f0   : > { %v1797_v14 = vmul.f32 %v1765_v51, %v1672_v63  ;;  %1852 = vadd.xlane.f32.xlu1 %v1796_v58  ;;  %v8478_v58 = vsub.s32 0, %v8291_v7 }
 0x2f2   : > { %1854 = vadd.xlane.f32.xlu0 %v1797_v14  ;;  %10422 = vst [vmem:[#allocation11_spill] sm:$0xff] %v8478_v58 }
 0x2f4   : > { %1856 = vadd.xlane.f32.xlu1 %v1798_v41 }
 0x2f6   : > { %1858 = vadd.xlane.f32.xlu0 %v1799_v42 }
 0x314   : > { %v6635_v1 = vpop.f32.mrb[28].mxu0 }
 0x315   : > { %v1685_v19 = vpop.f32.mrb[29].mxu0  ;;  %v1734_v31 = vmul.f32 %v6635_v1, %v8314_v0 }
 0x316   : > { %v1732_v45 = vmul.f32 %v8314_v0, %v1685_v19  ;;  %v6636_v48 = vpop.f32.mrb[30].mxu0 }
 0x317   : > { %v1688_v35 = vpop.f32.mrb[31].mxu0  ;;  %v1735_v46 = vmul.f32 %v6636_v48, %v8314_v0  ;;  %v1770_v16 = vadd.f32 %v8322_v10, %v1734_v31 }
 0x318   : > { %v1768_v32 = vadd.f32 %v8322_v10, %v1732_v45  ;;  %v1733_v63 = vmul.f32 %v8314_v0, %v1688_v35 }
 0x319   : > { %v1771_v42 = vadd.f32 %v8322_v10, %v1735_v46  ;;  %v1802_v40 = vmul.f32 %v6635_v1, %v1770_v16 }
 0x31a   : > { %v1800_v3 = vmul.f32 %v1768_v32, %v1685_v19  ;;  %v1769_v13 = vadd.f32 %v8322_v10, %v1733_v63 }
 0x31b   : > { %v1803_v19 = vmul.f32 %v6636_v48, %v1771_v42 }
 0x31c   : > { %v1801_v60 = vmul.f32 %v1769_v13, %v1688_v35  ;;  %1860 = vadd.xlane.f32.xlu1 %v1800_v3  ;;  %v6641_v44 = vpop.f32.mrb[32].mxu0  ;;  %v8486_v35 = vrot.slane %v8309_v24, %v8478_v58 }
 0x31d   : > { %v2181_v51 = vadd.f32 %v6641_v44, %v8403_v11  ;;  %v2172_v45 = vpop.f32.mrb[33].mxu0 }
 0x31e   : > { %v2173_v14 = vadd.f32 %v2172_v45, %v8403_v11  ;;  %v6642_v0 = vpop.f32.mrb[34].mxu0  ;;  %1862 = vadd.xlane.f32.xlu0 %v1801_v60  ;;  %v1872_v1 = vmul.f32 %v8486_v35, %v7790_v59  ;;  %v1873_v48 = vmul.f32 %v8486_v35, %v7793_v30  ;;  %v1875_v30 = vmul.f32 %v8486_v35, %v7814_v6 }
 0x31f   : > { %v2184_v31 = vadd.f32 %v6642_v0, %v8403_v11  ;;  %v2175_v41 = vpop.f32.mrb[35].mxu0  ;;  %v2301_v32 = vmax.f32 %v2181_v51, 0.0  ;;  %v1879_v6 = vmul.f32 %v8486_v35, %v7881_v29  ;;  %v1884_v29 = vmul.f32 %v8486_v35, %v7974_v28 }
 0x320   : > { %v2176_v10 = vadd.f32 %v2175_v41, %v8403_v11  ;;  %1864 = vadd.xlane.f32.xlu1 %v1802_v40  ;;  %v2299_v63 = vmax.f32 %v2173_v14, 0.0  ;;  %v1874_v40 = vmul.f32 %v8486_v35, %v7745_v38  ;;  %v1890_v28 = vmul.f32 %v8486_v35, %v8081_v2 }
 0x321   : > { %v2302_v46 = vmax.f32 %v2184_v31, 0.0  ;;  %v1895_v2 = vmul.f32 %v8486_v35, %v8164_v15  ;;  %v10423_v15 = vld [vmem:[#allocation8_spill] sm:$0xff] }
 0x322   : > { %v2300_v3 = vmax.f32 %v2176_v10, 0.0  ;;  %1866 = vadd.xlane.f32.xlu0 %v1803_v19 }
 0x323   : > { %v2332_v16 = vpack.c.bf16 %v2302_v46, %v2301_v32  ;;  %v1876_v32 = vmul.f32 %v8486_v35, %v7845_v22  ;;  %v1880_v22 = vmul.f32 %v8486_v35, %v7911_v23  ;;  %v1886_v23 = vmul.f32 %v8486_v35, %v8000_v21 }
 0x324   : > { %v2331_v13 = vpack.c.bf16 %v2300_v3, %v2299_v63  ;;  %1904 = vadd.xlane.f32.xlu1 %v1872_v1  ;;  %v6645_v60 = vpop.f32.mrb[36].mxu0  ;;  %v1877_v63 = vmul.f32 %v8486_v35, %v7840_v62  ;;  %v1881_v62 = vmul.f32 %v8486_v35, %v7907_v37  ;;  %v1882_v3 = vmul.f32 %v8486_v35, %v7924_v61 }
 0x325   : > { %v2197_v42 = vadd.f32 %v6645_v60, %v8403_v11  ;;  %v2188_v44 = vpop.f32.mrb[37].mxu0  ;;  %v1885_v37 = vmul.f32 %v8486_v35, %v7970_v50  ;;  %v1887_v61 = vmul.f32 %v8486_v35, %v8002_v4  ;;  %v1889_v50 = vmul.f32 %v8486_v35, %v8061_v56 }
 0x326   : > { %v2189_v45 = vadd.f32 %v2188_v44, %v8403_v11  ;;  %v6646_v51 = vpop.f32.mrb[38].mxu0  ;;  %6687 = vmatprep.mubr.bf16.mxu1 %v2331_v13  ;;  %1906 = vadd.xlane.f32.xlu0 %v1873_v48  ;;  %v1891_v21 = vmul.f32 %v8486_v35, %v8083_v34  ;;  %v1892_v4 = vmul.f32 %v8486_v35, %v8144_v25 }
 0x327   : > { %v2200_v59 = vadd.f32 %v6646_v51, %v8403_v11  ;;  %v2191_v14 = vpop.f32.mrb[39].mxu0  ;;  %6688 = vmatmul.mubr.bf16.vlgmr.msra.gmra.mrb[24].mxu1 %v2332_v16  ;;  %v2305_v31 = vmax.f32 %v2197_v42, 0.0  ;;  %v1893_v56 = vmul.f32 %v8486_v35, %v8141_v9  ;;  %v1896_v34 = vmul.f32 %v8486_v35, %v8223_v18 }
 0x328   : > { %v2192_v0 = vadd.f32 %v2191_v14, %v8403_v11  ;;  %1908 = vadd.xlane.f32.xlu1 %v1874_v40  ;;  %v2303_v19 = vmax.f32 %v2189_v45, 0.0  ;;  %v1878_v11 = vmul.f32 %v8486_v35, %v7852_v43  ;;  %v1883_v43 = vmul.f32 %v8486_v35, %v7926_v54 }
 0x329   : > { %v2306_v41 = vmax.f32 %v2200_v59, 0.0  ;;  %v1888_v54 = vmul.f32 %v8486_v35, %v8064_v55  ;;  %v1894_v55 = vmul.f32 %v8486_v35, %v8162_v39  ;;  %v1897_v9 = vmul.f32 %v8486_v35, %v8220_v12  ;;  %v10424_v12 = vld [vmem:[#allocation6_spill] sm:$0xff] }
 0x32a   : > { %v2304_v10 = vmax.f32 %v2192_v0, 0.0  ;;  %1910 = vadd.xlane.f32.xlu0 %v1875_v30  ;;  %v1898_v25 = vmul.f32 %v8486_v35, %v8239_v53  ;;  %v1899_v39 = vmul.f32 %v8486_v35, %v8241_v8  ;;  %v1900_v18 = vmul.f32 %v8486_v35, %v10423_v15  ;;  %v10425_v53 = vld [vmem:[#allocation7_spill] sm:$0xff]  ;;  %v10427_v8 = vld [vmem:[#allocation28_spill] sm:$0xff] }
 0x32b   : > { %v2334_v46 = vpack.c.bf16 %v2306_v41, %v2305_v31 }
 0x32c   : > { %v2333_v38 = vpack.c.bf16 %v2304_v10, %v2303_v19  ;;  %1912 = vadd.xlane.f32.xlu1 %v1876_v32 }
 0x32e   : > { %6691 = vmatprep.mubr.bf16.mxu1 %v2333_v38  ;;  %1914 = vadd.xlane.f32.xlu0 %v1877_v63  ;;  %v8626_v63 = vpop.xlane.xlu1 %1806 }
 0x32f   : > { %6692 = vmatmul.mubr.bf16.gmra.mrb[28].mxu1 %v2334_v46 }
 0x330   : > { %1916 = vadd.xlane.f32.xlu1 %v1878_v11  ;;  %6695 = vmatprep.mubr.bf16.mxu1 %v8411_v33  ;;  %v1902_v33 = vmul.f32 %v8486_v35, %v10425_v53 }
 0x332   : > { %1918 = vadd.xlane.f32.xlu0 %v1879_v6  ;;  %v8630_v6 = vpop.xlane.xlu1 %1812 }
 0x334   : > { %1920 = vadd.xlane.f32.xlu1 %v1880_v22 }
 0x336   : > { %1922 = vadd.xlane.f32.xlu0 %v1881_v62 }
 0x337   : > { %6696 = vmatmul.mubr.bf16.gmra.mrb[32].mxu1 %v8409_v49  ;;  %v1901_v49 = vmul.f32 %v8486_v35, %v10424_v12 }
 0x338   : > { %1924 = vadd.xlane.f32.xlu1 %v1882_v3  ;;  %6699 = vmatprep.mubr.bf16.mxu1 %v8419_v17  ;;  %v1903_v17 = vmul.f32 %v8486_v35, %v10427_v8 }
 0x33a   : > { %1926 = vadd.xlane.f32.xlu0 %v1883_v43  ;;  %v8638_v43 = vpop.xlane.xlu1 %1816 }
 0x33c   : > { %1928 = vadd.xlane.f32.xlu1 %v1884_v29 }
 0x33e   : > { %1930 = vadd.xlane.f32.xlu0 %v1885_v37  ;;  %v8642_v37 = vpop.xlane.xlu1 %1820 }
 0x33f   : > { %6700 = vmatmul.mubr.bf16.gmra.mrb[36].mxu1 %v8417_v20  ;;  %v10426_v20 = vld [vmem:[#allocation10_spill] sm:$0xff] }
 0x340   : > { %1932 = vadd.xlane.f32.xlu1 %v1886_v23  ;;  %6703 = vmatprep.mubr.bf16.mxu1 %v8432_v52  ;;  %v8561_v52 = vpop.xlane.xlu0 %1804  ;;  %v8645_v23 = vsub.s32 4, %v8291_v7 }
 0x342   : > { %1934 = vadd.xlane.f32.xlu0 %v1887_v61  ;;  %10441 = vst [vmem:[#allocation18_spill] sm:$0xff] %v8645_v23  ;;  %v8649_v61 = vrot.slane %v8309_v24, %v8645_v23 }
 0x344   : > { %1936 = vadd.xlane.f32.xlu1 %v1888_v54  ;;  %v8652_v54 = vsub.s32 5, %v8291_v7 }
 0x346   : > { %1938 = vadd.xlane.f32.xlu0 %v1889_v50  ;;  %10442 = vst [vmem:[#allocation30_spill] sm:$0xff] %v8652_v54  ;;  %v8654_v50 = vpop.xlane.xlu1 %1824 }
 0x347   : > { %6704 = vmatmul.mubr.bf16.gmra.mrb[40].mxu1 %v8430_v5  ;;  %v8570_v5 = vpop.xlane.xlu0 %1808 }
 0x348   : > { %1940 = vadd.xlane.f32.xlu1 %v1890_v28  ;;  %6707 = vmatprep.mubr.bf16.mxu1 %v8443_v57 }
 0x34a   : > { %1942 = vadd.xlane.f32.xlu0 %v1891_v21 }
 0x34c   : > { %1944 = vadd.xlane.f32.xlu1 %v1892_v4  ;;  %v8659_v4 = vrot.slane %v8309_v24, %v8652_v54 }
 0x34e   : > { %1946 = vadd.xlane.f32.xlu0 %v1893_v56 }
 0x34f   : > { %6708 = vmatmul.mubr.bf16.gmra.mrb[44].mxu1 %v8441_v27  ;;  %v8572_v27 = vpop.xlane.xlu0 %1810 }
 0x350   : > { %1948 = vadd.xlane.f32.xlu1 %v1894_v55  ;;  %6711 = vmatprep.mubr.bf16.mxu1 %v8451_v26  ;;  %v8661_v55 = vpop.xlane.xlu1 %1828 }
 0x352   : > { %1950 = vadd.xlane.f32.xlu0 %v1895_v2 }
 0x353   : > { %v8574_v57 = vpop.xlane.xlu0 %1814 }
 0x354   : > { %1952 = vadd.xlane.f32.xlu1 %v1896_v34  ;;  %v8667_v53 = vpop.xlane.xlu1 %1832 }
 0x356   : > { %1954 = vadd.xlane.f32.xlu0 %v1897_v9 }
 0x357   : > { %6712 = vmatmul.mubr.bf16.gmra.mrb[48].mxu1 %v8449_v36  ;;  %v8576_v36 = vpop.xlane.xlu0 %1818 }
 0x358   : > { %1956 = vadd.xlane.f32.xlu1 %v1898_v25  ;;  %6715 = vmatprep.mubr.bf16.mxu1 %v8459_v47 }
 0x35a   : > { %1958 = vadd.xlane.f32.xlu0 %v1899_v39 }
 0x35b   : > { %v8578_v26 = vpop.xlane.xlu0 %1822 }
 0x35c   : > { %1960 = vadd.xlane.f32.xlu1 %v1900_v18 }
 0x35e   : > { %1962 = vadd.xlane.f32.xlu0 %v1901_v49 }
 0x35f   : > { %6716 = vmatmul.mubr.bf16.gmra.mrb[52].mxu1 %v10426_v20  ;;  %v8580_v47 = vpop.xlane.xlu0 %1826 }
 0x360   : > { %1964 = vadd.xlane.f32.xlu1 %v1902_v33 }
 0x362   : > { %1966 = vadd.xlane.f32.xlu0 %v1903_v17 }
 0x363   : > { %v8582_v1 = vpop.xlane.xlu0 %1830 }
 0x367   : > { %v8584_v16 = vpop.xlane.xlu0 %1834 }
 0x368   : > { %10428 = vst [vmem:[#allocation12_spill] sm:$0xff] %v8584_v16 }
 0x36b   : > { %v8586_v13 = vpop.xlane.xlu0 %1838 }
 0x36f   : > { %v8588_v35 = vpop.xlane.xlu0 %1842 }
 0x373   : > { %v8590_v60 = vpop.xlane.xlu0 %1846 }
 0x374   : > { %10429 = vst [vmem:[#allocation13_spill] sm:$0xff] %v8590_v60 }
 0x377   : > { %v8592_v48 = vpop.xlane.xlu0 %1850 }
 0x378   : > { %10430 = vst [vmem:[#allocation34_spill] sm:$0xff] %v8592_v48 }
 0x37f   : > { %v8594_v42 = vpop.xlane.xlu0 %1854 }
 0x380   : > { %10431 = vst [vmem:[#allocation44_spill] sm:$0xff] %v8594_v42 }
 0x383   : > { %v8596_v44 = vpop.xlane.xlu0 %1858 }
 0x384   : > { %10432 = vst [vmem:[#allocation35_spill] sm:$0xff] %v8596_v44 }
 0x3ab   : > { %v8598_v45 = vpop.xlane.xlu0 %1862 }
 0x3ac   : > { %10433 = vst [vmem:[#allocation14_spill] sm:$0xff] %v8598_v45 }
 0x3af   : > { %v8600_v51 = vpop.xlane.xlu0 %1866 }
 0x3b0   : > { %10434 = vst [vmem:[#allocation29_spill] sm:$0xff] %v8600_v51 }
 0x3b3   : > { %v8602_v40 = vpop.xlane.xlu0 %1906 }
 0x3b7   : > { %v8604_v59 = vpop.xlane.xlu0 %1910 }
 0x3bb   : > { %v8606_v14 = vpop.xlane.xlu0 %1914 }
 0x3bf   : > { %v8608_v0 = vpop.xlane.xlu0 %1918 }
 0x3c3   : > { %v8610_v30 = vpop.xlane.xlu0 %1922 }
 0x3c7   : > { %v8612_v31 = vpop.xlane.xlu0 %1926 }
 0x3cb   : > { %v8614_v41 = vpop.xlane.xlu0 %1930 }
 0x3cf   : > { %v8616_v19 = vpop.xlane.xlu0 %1934 }
 0x3d0   : > { %10435 = vst [vmem:[#allocation15_spill] sm:$0xff] %v8616_v19 }
 0x3d3   : > { %v8618_v10 = vpop.xlane.xlu0 %1938 }
 0x3d7   : > { %v8620_v32 = vpop.xlane.xlu0 %1942 }
 0x3db   : > { %v8622_v46 = vpop.xlane.xlu0 %1946 }
 0x3dc   : > { %10436 = vst [vmem:[#allocation16_spill] sm:$0xff] %v8622_v46 }
 0x3df   : > { %v8624_v38 = vpop.xlane.xlu0 %1950 }
 0x3e0   : > { %10437 = vst [vmem:[#allocation17_spill] sm:$0xff] %v8624_v38 }
 0x3e3   : > { %v8628_v11 = vpop.xlane.xlu0 %1954 }
 0x3e4   : > { %10438 = vst [vmem:[#allocation36_spill] sm:$0xff] %v8628_v11 }
 0x3e7   : > { %v8632_v22 = vpop.xlane.xlu0 %1958 }
 0x3e8   : > { %10439 = vst [vmem:[#allocation45_spill] sm:$0xff] %v8632_v22 }
 0x3eb   : > { %v8636_v3 = vpop.xlane.xlu0 %1962 }
 0x3ec   : > { %10440 = vst [vmem:[#allocation37_spill] sm:$0xff] %v8636_v3 }
 0x3fa   : > { %v6689_v28 = vpop.f32.mrb[24].mxu1 }
 0x3fb   : > { %v2458_v21 = vadd.f32 %v6689_v28, %v8649_v61  ;;  %v2449_v56 = vpop.f32.mrb[25].mxu1 }
 0x3fc   : > { %v2450_v2 = vadd.f32 %v2449_v56, %v8649_v61  ;;  %v6690_v34 = vpop.f32.mrb[26].mxu1 }
 0x3fd   : > { %v2578_v9 = vmax.f32 %v2458_v21, 0.0  ;;  %v2452_v25 = vpop.f32.mrb[27].mxu1  ;;  %v2461_v12 = vadd.f32 %v6690_v34, %v8649_v61 }
 0x3fe   : > { %v2453_v39 = vadd.f32 %v2452_v25, %v8649_v61  ;;  %v2576_v18 = vmax.f32 %v2450_v2, 0.0  ;;  %v8672_v2 = vpop.xlane.xlu1 %1836 }
 0x3ff   : > { %v2614_v15 = vmul.f32 %v8659_v4, %v2578_v9  ;;  %v2579_v8 = vmax.f32 %v2461_v12, 0.0 }
 0x400   : > { %v2577_v49 = vmax.f32 %v2453_v39, 0.0  ;;  %v2612_v20 = vmul.f32 %v8659_v4, %v2576_v18 }
 0x401   : > { %2648 = vadd.xlane.f32.xlu1 %v2614_v15  ;;  %v2615_v34 = vmul.f32 %v8659_v4, %v2579_v8 }
 0x402   : > { %v2613_v24 = vmul.f32 %v8659_v4, %v2577_v49  ;;  %v6693_v33 = vpop.f32.mrb[28].mxu1 }
 0x403   : > { %v2474_v17 = vadd.f32 %v6693_v33, %v8649_v61  ;;  %v2465_v28 = vpop.f32.mrb[29].mxu1 }
 0x404   : > { %v6694_v21 = vpop.f32.mrb[30].mxu1  ;;  %2646 = vadd.xlane.f32.xlu0 %v2613_v24  ;;  %v2466_v25 = vadd.f32 %v2465_v28, %v8649_v61  ;;  %v8679_v24 = vpop.xlane.xlu1 %1840 }
 0x405   : > { %v2468_v56 = vpop.f32.mrb[31].mxu1  ;;  %2644 = vadd.xlane.f32.xlu1 %v2612_v20  ;;  %v2582_v9 = vmax.f32 %v2474_v17, 0.0  ;;  %v2477_v12 = vadd.f32 %v6694_v21, %v8649_v61 }
 0x406   : > { %v2580_v18 = vmax.f32 %v2466_v25, 0.0  ;;  %v2469_v17 = vadd.f32 %v2468_v56, %v8649_v61 }
 0x407   : > { %v2618_v15 = vmul.f32 %v8659_v4, %v2582_v9 }
 0x408   : > { %v2616_v28 = vmul.f32 %v8659_v4, %v2580_v18  ;;  %v8685_v21 = vpop.xlane.xlu1 %1844 }
 0x409   : > { %2650 = vadd.xlane.f32.xlu1 %v2615_v34  ;;  %v2583_v34 = vmax.f32 %v2477_v12, 0.0  ;;  %10443 = vst [vmem:[#allocation19_spill] sm:$0xff] %v8685_v21 }
 0x40a   : > { %v6697_v39 = vpop.f32.mrb[32].mxu1 }
 0x40b   : > { %v2490_v49 = vadd.f32 %v6697_v39, %v8649_v61  ;;  %v2481_v33 = vpop.f32.mrb[33].mxu1  ;;  %v2619_v3 = vmul.f32 %v8659_v4, %v2583_v34 }
 0x40c   : > { %v2482_v20 = vadd.f32 %v2481_v33, %v8649_v61  ;;  %v6698_v29 = vpop.f32.mrb[34].mxu1  ;;  %v2581_v33 = vmax.f32 %v2469_v17, 0.0 }
 0x40d   : > { %v2586_v62 = vmax.f32 %v2490_v49, 0.0  ;;  %v2484_v8 = vpop.f32.mrb[35].mxu1  ;;  %2656 = vadd.xlane.f32.xlu1 %v2618_v15  ;;  %v2493_v15 = vadd.f32 %v6698_v29, %v8649_v61 }
 0x40e   : > { %v2584_v25 = vmax.f32 %v2482_v20, 0.0  ;;  %v2485_v20 = vadd.f32 %v2484_v8, %v8649_v61  ;;  %v2617_v34 = vmul.f32 %v8659_v4, %v2581_v33 }
 0x40f   : > { %v2622_v9 = vmul.f32 %v8659_v4, %v2586_v62  ;;  %v8693_v62 = vpop.xlane.xlu1 %1848  ;;  %v2587_v17 = vmax.f32 %v2493_v15, 0.0 }
 0x410   : > { %v2620_v49 = vmul.f32 %v8659_v4, %v2584_v25  ;;  %v2585_v25 = vmax.f32 %v2485_v20, 0.0 }
 0x411   : > { %2652 = vadd.xlane.f32.xlu1 %v2616_v28  ;;  %2664 = vadd.xlane.f32.xlu0 %v2622_v9 }
 0x412   : > { %v6701_v39 = vpop.f32.mrb[36].mxu1 }
 0x413   : > { %v2497_v45 = vpop.f32.mrb[37].mxu1  ;;  %v8698_v29 = vpop.xlane.xlu1 %1852 }
 0x414   : > { %v2498_v56 = vadd.f32 %v2497_v45, %v8649_v61  ;;  %v8691_v18 = vpop.f32.mrb[38].mxu1  ;;  %10444 = vst [vmem:[#allocation20_spill] sm:$0xff] %v8698_v29  ;;  %v2506_v45 = vadd.f32 %v6701_v39, %v8649_v61 }
 0x415   : > { %v2500_v12 = vpop.f32.mrb[39].mxu1  ;;  %2658 = vadd.xlane.f32.xlu1 %v2619_v3  ;;  %2660 = vadd.xlane.f32.xlu0 %v2620_v49  ;;  %v2623_v3 = vmul.f32 %v8659_v4, %v2587_v17 }
 0x416   : > { %v2588_v28 = vmax.f32 %v2498_v56, 0.0  ;;  %v2501_v20 = vadd.f32 %v2500_v12, %v8649_v61 }
 0x417   : > { %v8708_v17 = vpop.xlane.xlu1 %1856 }
 0x418   : > { %v2624_v9 = vmul.f32 %v8659_v4, %v2588_v28  ;;  %v2621_v28 = vmul.f32 %v8659_v4, %v2585_v25  ;;  %10445 = vst [vmem:[#allocation21_spill] sm:$0xff] %v8708_v17 }
 0x419   : > { %2654 = vadd.xlane.f32.xlu1 %v2617_v34  ;;  %v2590_v34 = vmax.f32 %v2506_v45, 0.0 }
 0x41a   : > { %v6705_v54 = vpop.f32.mrb[40].mxu1  ;;  %2668 = vadd.xlane.f32.xlu0 %v2624_v9 }
 0x41b   : > { %v2522_v49 = vadd.f32 %v6705_v54, %v8649_v61  ;;  %v2513_v23 = vpop.f32.mrb[41].mxu1  ;;  %v2626_v54 = vmul.f32 %v8659_v4, %v2590_v34 }
 0x41c   : > { %v6706_v8 = vpop.f32.mrb[42].mxu1 }
 0x41d   : > { %v2594_v56 = vmax.f32 %v2522_v49, 0.0  ;;  %v2525_v33 = vadd.f32 %v6706_v8, %v8649_v61  ;;  %v2516_v15 = vpop.f32.mrb[43].mxu1  ;;  %2666 = vadd.xlane.f32.xlu1 %v2623_v3  ;;  %v2514_v49 = vadd.f32 %v2513_v23, %v8649_v61  ;;  %v2589_v3 = vmax.f32 %v2501_v20, 0.0 }
 0x41e   : > { %v2517_v9 = vadd.f32 %v2516_v15, %v8649_v61 }
 0x41f   : > { %v2630_v39 = vmul.f32 %v8659_v4, %v2594_v56  ;;  %v2595_v58 = vmax.f32 %v2525_v33, 0.0  ;;  %v8714_v56 = vpop.xlane.xlu1 %1860 }
 0x420   : > { %v2593_v45 = vmax.f32 %v2517_v9, 0.0  ;;  %10446 = vst [vmem:[#allocation38_spill] sm:$0xff] %v8714_v56 }
 0x421   : > { %2662 = vadd.xlane.f32.xlu1 %v2621_v28  ;;  %2680 = vadd.xlane.f32.xlu0 %v2630_v39  ;;  %v2631_v25 = vmul.f32 %v8659_v4, %v2595_v58  ;;  %v2592_v28 = vmax.f32 %v2514_v49, 0.0  ;;  %v2625_v39 = vmul.f32 %v8659_v4, %v2589_v3 }
 0x422   : > { %v6709_v8 = vpop.f32.mrb[44].mxu1  ;;  %v2629_v34 = vmul.f32 %v8659_v4, %v2593_v45 }
 0x423   : > { %v2538_v12 = vadd.f32 %v6709_v8, %v8649_v61  ;;  %v2529_v22 = vpop.f32.mrb[45].mxu1  ;;  %v8719_v58 = vpop.xlane.xlu1 %1864  ;;  %v2628_v9 = vmul.f32 %v8659_v4, %v2592_v28 }
 0x424   : > { %v6710_v33 = vpop.f32.mrb[46].mxu1  ;;  %v2530_v20 = vadd.f32 %v2529_v22, %v8649_v61  ;;  %10447 = vst [vmem:[#allocation46_spill] sm:$0xff] %v8719_v58 }
 0x425   : > { %v2532_v15 = vpop.f32.mrb[47].mxu1  ;;  %2672 = vadd.xlane.f32.xlu1 %v2626_v54  ;;  %2682 = vadd.xlane.f32.xlu0 %v2631_v25  ;;  %v2598_v23 = vmax.f32 %v2538_v12, 0.0  ;;  %v2541_v54 = vadd.f32 %v6710_v33, %v8649_v61 }
 0x426   : > { %v2596_v7 = vmax.f32 %v2530_v20, 0.0 }
 0x427   : > { %v2634_v44 = vmul.f32 %v8659_v4, %v2598_v23  ;;  %v2599_v51 = vmax.f32 %v2541_v54, 0.0  ;;  %v2533_v23 = vadd.f32 %v2532_v15, %v8649_v61  ;;  %v8730_v20 = vpop.xlane.xlu1 %1904 }
 0x428   : > { %v2632_v28 = vmul.f32 %v8659_v4, %v2596_v7 }
 0x429   : > { %2670 = vadd.xlane.f32.xlu1 %v2625_v39  ;;  %2678 = vadd.xlane.f32.xlu0 %v2629_v34 }
 0x42a   : > { %v6713_v8 = vpop.f32.mrb[48].mxu1 }
 0x42b   : > { %v2554_v49 = vadd.f32 %v6713_v8, %v8649_v61  ;;  %v2545_v3 = vpop.f32.mrb[49].mxu1 }
 0x42c   : > { %v2546_v25 = vadd.f32 %v2545_v3, %v8649_v61  ;;  %v6714_v45 = vpop.f32.mrb[50].mxu1 }
 0x42d   : > { %v2602_v12 = vmax.f32 %v2554_v49, 0.0  ;;  %2676 = vadd.xlane.f32.xlu1 %v2628_v9  ;;  %2688 = vadd.xlane.f32.xlu0 %v2634_v44  ;;  %v2548_v22 = vpop.f32.mrb[51].mxu1  ;;  %v2635_v49 = vmul.f32 %v8659_v4, %v2599_v51  ;;  %v2557_v7 = vadd.f32 %v6714_v45, %v8649_v61 }
 0x42e   : > { %v2600_v39 = vmax.f32 %v2546_v25, 0.0  ;;  %v2549_v34 = vadd.f32 %v2548_v22, %v8649_v61  ;;  %v2597_v25 = vmax.f32 %v2533_v23, 0.0 }
 0x42f   : > { %v2638_v33 = vmul.f32 %v8659_v4, %v2602_v12  ;;  %v2509_v12 = vadd.f32 %v8691_v18, %v8649_v61 }
 0x430   : > { %v2601_v8 = vmax.f32 %v2549_v34, 0.0  ;;  %v2636_v3 = vmul.f32 %v8659_v4, %v2600_v39  ;;  %v2633_v45 = vmul.f32 %v8659_v4, %v2597_v25 }
 0x431   : > { %2696 = vadd.xlane.f32.xlu1 %v2638_v33  ;;  %2684 = vadd.xlane.f32.xlu0 %v2632_v28  ;;  %v2591_v18 = vmax.f32 %v2509_v12, 0.0 }
 0x432   : > { %v2637_v44 = vmul.f32 %v8659_v4, %v2601_v8  ;;  %v6717_v9 = vpop.f32.mrb[52].mxu1  ;;  %v1909_v8 = vpop.xlane.xlu1 %1908 }
 0x433   : > { %v2570_v54 = vadd.f32 %v6717_v9, %v8649_v61  ;;  %v2561_v15 = vpop.f32.mrb[53].mxu1  ;;  %v2603_v9 = vmax.f32 %v2557_v7, 0.0 }
 0x434   : > { %v2562_v22 = vadd.f32 %v2561_v15, %v8649_v61  ;;  %v6718_v34 = vpop.f32.mrb[54].mxu1 }
 0x435   : > { %v2606_v39 = vmax.f32 %v2570_v54, 0.0  ;;  %2692 = vadd.xlane.f32.xlu1 %v2636_v3  ;;  %2690 = vadd.xlane.f32.xlu0 %v2635_v49  ;;  %v2573_v28 = vadd.f32 %v6718_v34, %v8649_v61  ;;  %v2564_v33 = vpop.f32.mrb[55].mxu1  ;;  %v2639_v54 = vmul.f32 %v8659_v4, %v2603_v9  ;;  %v8776_v9 = vstv %s2772_s16 }
 0x436   : > { %v2604_v51 = vmax.f32 %v2562_v22, 0.0  ;;  %v2565_v23 = vadd.f32 %v2564_v33, %v8649_v61  ;;  %v8748_v22 = vpop.xlane.xlu1 %1912  ;;  %v2627_v61 = vmul.f32 %v8659_v4, %v2591_v18 }
 0x437   : > { %v2642_v58 = vmul.f32 %v8659_v4, %v2606_v39  ;;  %v2607_v56 = vmax.f32 %v2573_v28, 0.0 }
 0x438   : > { %v2640_v15 = vmul.f32 %v8659_v4, %v2604_v51  ;;  %v2605_v17 = vmax.f32 %v2565_v23, 0.0  ;;  %v2710_v23 = vsub.f32 %v8570_v5, %v1909_v8 }
 0x439   : > { %2686 = vadd.xlane.f32.xlu0 %v2633_v45  ;;  %v2643_v3 = vmul.f32 %v8659_v4, %v2607_v56  ;;  %v8774_v45 = vpop.xlane.xlu0 %1966 }
 0x43a   : > { %2700 = vadd.xlane.f32.xlu1 %v2640_v15  ;;  %v2641_v49 = vmul.f32 %v8659_v4, %v2605_v17  ;;  %v1917_v25 = vpop.xlane.xlu1 %1916  ;;  %10452 = vst [vmem:[#allocation24_spill] sm:$0xff] %v8774_v45 }
 0x43d   : > { %2698 = vadd.xlane.f32.xlu0 %v2639_v54 }
 0x43e   : > { %2674 = vadd.xlane.f32.xlu1 %v2627_v61  ;;  %v8751_v7 = vpop.xlane.xlu1 %1920 }
 0x441   : > { %2694 = vadd.xlane.f32.xlu0 %v2637_v44 }
 0x442   : > { %v1925_v12 = vpop.xlane.xlu1 %1924 }
 0x445   : > { %2704 = vadd.xlane.f32.xlu0 %v2642_v58 }
 0x446   : > { %v8753_v56 = vpop.xlane.xlu1 %1928 }
 0x449   : > { %2702 = vadd.xlane.f32.xlu0 %v2641_v49  ;;  %v2708_v49 = vsub.f32 %v8561_v52, %v8730_v20 }
 0x44a   : > { %v8755_v34 = vpop.xlane.xlu1 %1932 }
 0x44d   : > { %2706 = vadd.xlane.f32.xlu0 %v2643_v3  ;;  %v2709_v3 = vsub.f32 %v8626_v63, %v8602_v40 }
 0x44e   : > { %v8757_v17 = vpop.xlane.xlu1 %1936 }
 0x452   : > { %v8759_v39 = vpop.xlane.xlu1 %1940 }
 0x456   : > { %v8761_v28 = vpop.xlane.xlu1 %1944 }
 0x457   : > { %10448 = vst [vmem:[#allocation39_spill] sm:$0xff] %v8761_v28 }
 0x45a   : > { %v8763_v4 = vpop.xlane.xlu1 %1948 }
 0x45e   : > { %v8765_v44 = vpop.xlane.xlu1 %1952 }
 0x45f   : > { %10449 = vst [vmem:[#allocation22_spill] sm:$0xff] %v8765_v44 }
 0x462   : > { %v8767_v58 = vpop.xlane.xlu1 %1956 }
 0x466   : > { %v8769_v33 = vpop.xlane.xlu1 %1960 }
 0x467   : > { %10450 = vst [vmem:[#allocation31_spill] sm:$0xff] %v8769_v33 }
 0x46a   : > { %v8771_v51 = vpop.xlane.xlu1 %1964 }
 0x46b   : > { %10451 = vst [vmem:[#allocation23_spill] sm:$0xff] %v8771_v51 }
 0x48e   : > { %v2649_v18 = vpop.xlane.xlu1 %2648 }
 0x48f   : > { %v2742_v15 = vadd.f32 %v2710_v23, %v2649_v18  ;;  %v2711_v23 = vsub.f32 %v8572_v27, %v8604_v59 }
 0x491   : > { %v8783_v54 = vadd.f32 %v8776_v9, %v2742_v15  ;;  %v2647_v61 = vpop.xlane.xlu0 %2646 }
 0x492   : > { %v2741_v33 = vadd.f32 %v2709_v3, %v2647_v61  ;;  %v2645_v51 = vpop.xlane.xlu1 %2644 }
 0x493   : > { %10453 = vst [vmem:[#allocation25_spill] sm:$0xff] %v8783_v54  ;;  %v2808_v5 = vand.u32 2147483647, %v8783_v54  ;;  %v2740_v8 = vadd.f32 %v2708_v49, %v2645_v51  ;;  %v2714_v51 = vsub.f32 %v8638_v43, %v1917_v25  ;;  %v2718_v43 = vsub.f32 %v8654_v50, %v1925_v12 }
 0x494   : > { %v8787_v45 = vadd.f32 %v8776_v9, %v2741_v33 }
 0x495   : > { %v2840_v18 = vsub.f32 0.0, %v2808_v5  ;;  %v8792_v40 = vadd.f32 %v8776_v9, %v2740_v8 }
 0x496   : > { %v2807_v52 = vand.u32 2147483647, %v8787_v45  ;;  %v2651_v63 = vpop.xlane.xlu1 %2650  ;;  %vm3191_vm5 = vcmp.ge.f32.partialorder %v8787_v45, 0.0 }
 0x497   : > { %v2874_v20 = vmul.f32 1.442695, %v2840_v18  ;;  %v2806_v15 = vand.u32 2147483647, %v8792_v40  ;;  %v2743_v3 = vadd.f32 %v2711_v23, %v2651_v63  ;;  %v2712_v18 = vsub.f32 %v8630_v6, %v8748_v22 }
 0x498   : > { %v2839_v61 = vsub.f32 0.0, %v2807_v52  ;;  %v2716_v22 = vsub.f32 %v8642_v37, %v8751_v7  ;;  %v2713_v7 = vsub.f32 %v8574_v57, %v8606_v14  ;;  %vm3190_vm6 = vcmp.ge.f32.partialorder %v8792_v40, 0.0 }
 0x499   : > { %6842 = vpow2.f32 %v2874_v20  ;;  %v2838_v33 = vsub.f32 0.0, %v2806_v15  ;;  %v8798_v49 = vadd.f32 %v8776_v9, %v2743_v3 }
 0x49a   : > { %v2872_v27 = vmul.f32 1.442695, %v2839_v61  ;;  %v2657_v59 = vpop.xlane.xlu1 %2656 }
 0x49b   : > { %v2870_v5 = vmul.f32 1.442695, %v2838_v33  ;;  %v2809_v8 = vand.u32 2147483647, %v8798_v49  ;;  %v2746_v54 = vadd.f32 %v2714_v51, %v2657_v59  ;;  %v2715_v51 = vsub.f32 %v8576_v36, %v8608_v0 }
 0x49c   : > { %6844 = vpow2.f32 %v2872_v27  ;;  %vm3193_vm7 = vcmp.ge.f32.partialorder %v8798_v49, 0.0 }
 0x49d   : > { %6846 = vpow2.f32 %v2870_v5  ;;  %v2841_v23 = vsub.f32 0.0, %v2809_v8  ;;  %v8804_v52 = vadd.f32 %v8776_v9, %v2746_v54 }
 0x49e   : > { %v2653_v25 = vpop.xlane.xlu1 %2652  ;;  %v2665_v63 = vpop.xlane.xlu0 %2664 }
 0x49f   : > { %v2876_v20 = vmul.f32 1.442695, %v2841_v23  ;;  %v2812_v15 = vand.u32 2147483647, %v8804_v52  ;;  %v2744_v3 = vadd.f32 %v2712_v18, %v2653_v25  ;;  %v2750_v61 = vadd.f32 %v2718_v43, %v2665_v63 }
 0x4a0   : > { %vm3196_vm8 = vcmp.ge.f32.partialorder %v8804_v52, 0.0 }
 0x4a1   : > { %6848 = vpow2.f32 %v2876_v20  ;;  %v2844_v33 = vsub.f32 0.0, %v2812_v15  ;;  %v8811_v6 = vadd.f32 %v8776_v9, %v2744_v3  ;;  %v8816_v50 = vadd.f32 %v8776_v9, %v2750_v61 }
 0x4a2   : > { %v2659_v12 = vpop.xlane.xlu1 %2658  ;;  %v2661_v54 = vpop.xlane.xlu0 %2660  ;;  %v2720_v3 = vsub.f32 %v8661_v55, %v8753_v56 }
 0x4a3   : > { %v6843_v27 = vpop.eup %6842  ;;  %v2882_v59 = vmul.f32 1.442695, %v2844_v33  ;;  %v2810_v5 = vand.u32 2147483647, %v8811_v6  ;;  %v2747_v8 = vadd.f32 %v2715_v51, %v2659_v12  ;;  %v2816_v36 = vand.u32 2147483647, %v8816_v50 }
 0x4a4   : > { %v8819_v18 = vadd.f32 1.0, %v6843_v27  ;;  %v2748_v0 = vadd.f32 %v2716_v22, %v2661_v54  ;;  %vm3194_vm9 = vcmp.ge.f32.partialorder %v8811_v6, 0.0  ;;  %vm3200_vm10 = vcmp.ge.f32.partialorder %v8816_v50, 0.0 }
 0x4a5   : > { %6850 = vpow2.f32 %v2882_v59  ;;  %v2842_v23 = vsub.f32 0.0, %v2810_v5  ;;  %v8823_v43 = vadd.f32 %v8776_v9, %v2747_v8  ;;  %v2848_v25 = vsub.f32 0.0, %v2816_v36 }
 0x4a6   : > { %v6845_v37 = vpop.eup %6844  ;;  %6852 = vrcp.f32 %v8819_v18  ;;  %v8829_v63 = vadd.f32 %v8776_v9, %v2748_v0  ;;  %v2655_v20 = vpop.xlane.xlu1 %2654  ;;  %v2719_v5 = vsub.f32 %v8580_v47, %v8612_v31  ;;  %v2717_v47 = vsub.f32 %v8578_v26, %v8610_v30 }
 0x4a7   : > { %v6847_v15 = vpop.eup %6846  ;;  %v8833_v61 = vadd.f32 1.0, %v6845_v37  ;;  %v2878_v51 = vmul.f32 1.442695, %v2842_v23  ;;  %v2813_v33 = vand.u32 2147483647, %v8823_v43  ;;  %v2669_v22 = vpop.xlane.xlu0 %2668  ;;  %v2745_v27 = vadd.f32 %v2713_v7, %v2655_v20 }
 0x4a8   : > { %v8836_v12 = vadd.f32 1.0, %v6847_v15  ;;  %v2890_v57 = vmul.f32 1.442695, %v2848_v25  ;;  %v2814_v14 = vand.u32 2147483647, %v8829_v63  ;;  %v2752_v59 = vadd.f32 %v2720_v3, %v2669_v22 }
 0x4a9   : > { %6854 = vrcp.f32 %v8833_v61  ;;  %v2845_v54 = vsub.f32 0.0, %v2813_v33  ;;  %v8844_v0 = vadd.f32 %v8776_v9, %v2745_v27  ;;  %v2726_v3 = vsub.f32 %v8679_v24, %v8759_v39 }
 0x4aa   : > { %6856 = vrcp.f32 %v8836_v12  ;;  %v2846_v55 = vsub.f32 0.0, %v2814_v14  ;;  %v2667_v56 = vpop.xlane.xlu1 %2666  ;;  %v8847_v23 = vadd.f32 %v8776_v9, %v2752_v59  ;;  %v2722_v27 = vsub.f32 %v8667_v53, %v8755_v34 }
 0x4ab   : > { %v6849_v8 = vpop.eup %6848  ;;  %6858 = vpow2.f32 %v2878_v51  ;;  %v2884_v36 = vmul.f32 1.442695, %v2845_v54  ;;  %v2751_v25 = vadd.f32 %v2719_v5, %v2667_v56  ;;  %v2811_v31 = vand.u32 2147483647, %v8844_v0 }
 0x4ac   : > { %v8849_v37 = vadd.f32 1.0, %v6849_v8  ;;  %6860 = vpow2.f32 %v2890_v57  ;;  %v2886_v7 = vmul.f32 1.442695, %v2846_v55  ;;  %v2818_v20 = vand.u32 2147483647, %v8847_v23 }
 0x4ad   : > { %6862 = vpow2.f32 %v2884_v36  ;;  %v8861_v51 = vadd.f32 %v8776_v9, %v2751_v25  ;;  %v2843_v26 = vsub.f32 0.0, %v2811_v31  ;;  %vm3197_vm11 = vcmp.ge.f32.partialorder %v8823_v43, 0.0 }
 0x4ae   : > { %6864 = vrcp.f32 %v8849_v37  ;;  %v2663_v33 = vpop.xlane.xlu1 %2662  ;;  %v2681_v22 = vpop.xlane.xlu0 %2680  ;;  %v2850_v30 = vsub.f32 0.0, %v2818_v20  ;;  %vm3198_vm13 = vcmp.ge.f32.partialorder %v8829_v63, 0.0  ;;  %vm3195_vm14 = vcmp.ge.f32.partialorder %v8844_v0, 0.0 }
 0x4af   : > { %10454 = vst [vmem:[#allocation40_spill] sm:$0xff] %v8861_v51  ;;  %v6851_v57 = vpop.eup %6850  ;;  %6866 = vpow2.f32 %v2886_v7  ;;  %v2749_v14 = vadd.f32 %v2717_v47, %v2663_v33  ;;  %v2817_v24 = vand.u32 2147483647, %v8861_v51  ;;  %v2758_v39 = vadd.f32 %v2726_v3, %v2681_v22 }
 0x4b0   : > { %v6853_v54 = vpop.eup %6852  ;;  %v8865_v59 = vadd.f32 1.0, %v6851_v57  ;;  %v2880_v55 = vmul.f32 1.442695, %v2843_v26  ;;  %v2894_v56 = vmul.f32 1.442695, %v2850_v30  ;;  %v2727_v26 = vsub.f32 %v8588_v35, %v8620_v32 }
 0x4b1   : > { %v8871_v8 = vadd.f32 %v8776_v9, %v2749_v14  ;;  %v2849_v7 = vsub.f32 0.0, %v2817_v24  ;;  %v8877_v53 = vadd.f32 %v8776_v9, %v2758_v39  ;;  %v3000_v47 = vmul.f32 %v6853_v54, %v8819_v18 }
 0x4b2   : > { %6868 = vrcp.f32 %v8865_v59  ;;  %vm3202_vm15 = vcmp.ge.f32.partialorder %v8847_v23, 0.0 }
 0x4b3   : > { %10455 = vst [vmem:[#allocation41_spill] sm:$0xff] %v8871_v8  ;;  %10456 = vst [vmem:[#allocation26_spill] sm:$0xff] %v8877_v53  ;;  %v6855_v34 = vpop.eup %6854  ;;  %6870 = vpow2.f32 %v2880_v55  ;;  %v2815_v31 = vand.u32 2147483647, %v8871_v8  ;;  %v2892_v33 = vmul.f32 1.442695, %v2849_v7 }
 0x4b4   : > { %v6857_v20 = vpop.eup %6856  ;;  %v2999_v3 = vmul.f32 %v6855_v34, %v8833_v61  ;;  %6872 = vpow2.f32 %v2894_v56  ;;  %v2824_v22 = vand.u32 2147483647, %v8877_v53  ;;  %v3032_v56 = vsub.f32 2.0, %v3000_v47  ;;  %v2673_v53 = vpop.xlane.xlu1 %2672 }
 0x4b5   : > { %v6859_v57 = vpop.eup %6858  ;;  %v2998_v14 = vmul.f32 %v6857_v20, %v8836_v12  ;;  %v2847_v24 = vsub.f32 0.0, %v2815_v31  ;;  %6874 = vpow2.f32 %v2892_v33  ;;  %v2754_v35 = vadd.f32 %v2722_v27, %v2673_v53  ;;  %v2683_v47 = vpop.xlane.xlu0 %2682 }
 0x4b6   : > { %v6861_v39 = vpop.eup %6860  ;;  %v8890_v55 = vadd.f32 1.0, %v6859_v57  ;;  %v2856_v5 = vsub.f32 0.0, %v2824_v22  ;;  %v3031_v7 = vsub.f32 2.0, %v2999_v3  ;;  %v7047_v22 = vmov 1966171168  }
 0x4b7   : > { %v6863_v36 = vpop.eup %6862  ;;  %v8892_v25 = vadd.f32 1.0, %v6861_v39  ;;  %v2888_v15 = vmul.f32 1.442695, %v2847_v24  ;;  %v3030_v3 = vsub.f32 2.0, %v2998_v14  ;;  %v4347_v57 = vunpack.c.l.s4 %v7047_v22 }
 0x4b8   : > { %v6865_v19 = vpop.eup %6864  ;;  %6876 = vrcp.f32 %v8890_v55  ;;  %v8899_v31 = vadd.f32 1.0, %v6863_v36  ;;  %v2906_v39 = vmul.f32 1.442695, %v2856_v5  ;;  %v8907_v30 = vmul.f32 %v6853_v54, %v3032_v56  ;;  %v10458_v54 = vld [vmem:[#allocation21_spill] sm:$0xff]  ;;  %v2671_v8 = vpop.xlane.xlu1 %2670 }
 0x4b9   : > { %v6867_v33 = vpop.eup %6866  ;;  %6878 = vrcp.f32 %v8892_v25  ;;  %v8909_v32 = vmul.f32 %v6855_v34, %v3031_v7  ;;  %v3001_v36 = vmul.f32 %v6865_v19, %v8849_v37  ;;  %v2759_v11 = vadd.f32 %v2727_v26, %v2683_v47 }
 0x4ba   : > { %6880 = vrcp.f32 %v8899_v31  ;;  %v8905_v24 = vadd.f32 1.0, %v6867_v33  ;;  %v8918_v33 = vadd.f32 %v8776_v9, %v2754_v35  ;;  %v3096_v5 = vmul.f32 %v8907_v30, %v8819_v18 }
 0x4bb   : > { %6882 = vpow2.f32 %v2888_v15  ;;  %v8924_v15 = vmul.f32 %v6857_v20, %v3030_v3  ;;  %v3095_v56 = vmul.f32 %v8909_v32, %v8833_v61  ;;  %v3033_v20 = vsub.f32 2.0, %v3001_v36 }
 0x4bc   : > { %v6869_v16 = vpop.eup %6868  ;;  %6884 = vrcp.f32 %v8905_v24  ;;  %10457 = vst [vmem:[#allocation27_spill] sm:$0xff] %v8918_v33  ;;  %v2820_v35 = vand.u32 2147483647, %v8918_v33  ;;  %v4348_v3 = vunpack.c.0.s8 %v4347_v57  ;;  %v10465_v57 = vld [vmem:[#allocation9_spill] sm:$0xff]  ;;  %v3128_v47 = vsub.f32 2.0, %v3096_v5 }
 0x4bd   : > { %v6871_v27 = vpop.eup %6870  ;;  %v3004_v7 = vmul.f32 %v6869_v16, %v8865_v59  ;;  %6886 = vpow2.f32 %v2906_v39  ;;  %v3094_v22 = vmul.f32 %v8924_v15, %v8836_v12  ;;  %v8947_v36 = vsub.s32 6, %v10465_v57 }
 0x4be   : > { %v6873_v14 = vpop.eup %6872  ;;  %v8929_v42 = vadd.f32 1.0, %v6871_v27  ;;  %v2852_v51 = vsub.f32 0.0, %v2820_v35  ;;  %v3065_v35 = vmul.f32 %v6865_v19, %v3033_v20  ;;  %v8954_v12 = vsub.s32 %v4348_v3, %v10465_v57 }
 0x4bf   : > { %v6875_v53 = vpop.eup %6874  ;;  %v8937_v34 = vadd.f32 1.0, %v6873_v14  ;;  %v3036_v33 = vsub.f32 2.0, %v3004_v7  ;;  %10466 = vst [vmem:[#allocation8_spill] sm:$0xff] %v8947_v36  ;;  %v8950_v14 = vsub.s32 7, %v10465_v57  ;;  %v3127_v7 = vsub.f32 2.0, %v3095_v56 }
 0x4c0   : > { %6888 = vrcp.f32 %v8929_v42  ;;  %v8943_v18 = vadd.f32 1.0, %v6875_v53  ;;  %v2898_v61 = vmul.f32 1.442695, %v2852_v51  ;;  %10468 = vst [vmem:[#allocation7_spill] sm:$0xff] %v8954_v12  ;;  %v8959_v51 = vadd.f32 %v8776_v9, %v2759_v11 }
 0x4c1   : > { %6890 = vrcp.f32 %v8937_v34  ;;  %10467 = vst [vmem:[#allocation6_spill] sm:$0xff] %v8950_v14  ;;  %v3126_v14 = vsub.f32 2.0, %v3094_v22  ;;  %v3068_v60 = vmul.f32 %v6869_v16, %v3036_v33  ;;  %v3097_v57 = vmul.f32 %v3065_v35, %v8849_v37 }
 0x4c2   : > { %v6877_v46 = vpop.eup %6876  ;;  %6892 = vrcp.f32 %v8943_v18  ;;  %10469 = vst [vmem:[#allocation10_spill] sm:$0xff] %v8959_v51  ;;  %v2825_v56 = vand.u32 2147483647, %v8959_v51  ;;  %v10470_v11 = vsub.f32 %v8582_v1, %v8614_v41  ;;  %v3160_v1 = vmul.f32 %v3128_v47, %v8907_v30  ;;  %v2679_v47 = vpop.xlane.xlu0 %2678 }
 0x4c3   : > { %v6879_v26 = vpop.eup %6878  ;;  %v3002_v39 = vmul.f32 %v6877_v46, %v8890_v55  ;;  %6894 = vpow2.f32 %v2898_v61  ;;  %v3100_v61 = vmul.f32 %v3068_v60, %v8865_v59  ;;  %v3159_v41 = vmul.f32 %v3127_v7, %v8909_v32 }
 0x4c4   : > { %v6881_v53 = vpop.eup %6880  ;;  %v3008_v27 = vmul.f32 %v6879_v26, %v8892_v25  ;;  %v2753_v44 = vadd.f32 %v10470_v11, %v2671_v8 }
 0x4c5   : > { %v6883_v36 = vpop.eup %6882  ;;  %v3034_v5 = vsub.f32 2.0, %v3002_v39  ;;  %v3005_v19 = vmul.f32 %v6881_v53, %v8899_v31  ;;  %v10471_v39 = vld [vmem:[#allocation25_spill] sm:$0xff]  ;;  %v3132_v7 = vsub.f32 2.0, %v3100_v61  ;;  %v3223_v61 = vsub.f32 1.0, %v3159_v41 }
 0x4c6   : > { %v6885_v20 = vpop.eup %6884  ;;  %v3040_v38 = vsub.f32 2.0, %v3008_v27  ;;  %v8962_v3 = vadd.f32 1.0, %v6883_v36  ;;  %v2857_v27 = vsub.f32 0.0, %v2825_v56  ;;  %vm3192_vm12 = vcmp.ge.f32.partialorder %v10471_v39, 0.0 }
 0x4c7   : > { %v3066_v12 = vmul.f32 %v6877_v46, %v3034_v5  ;;  %v3037_v48 = vsub.f32 2.0, %v3005_v19  ;;  %v6887_v22 = vpop.eup %6886  ;;  %v3006_v33 = vmul.f32 %v6885_v20, %v8905_v24  ;;  %v3129_v5 = vsub.f32 2.0, %v3097_v57 }
 0x4c8   : > { %v8969_v16 = vmul.f32 %v6879_v26, %v3040_v38  ;;  %6896 = vrcp.f32 %v8962_v3  ;;  %v8977_v46 = vadd.f32 1.0, %v6887_v22  ;;  %v2908_v8 = vmul.f32 1.442695, %v2857_v27 }
 0x4c9   : > { %v8975_v36 = vmul.f32 %v6881_v53, %v3037_v48  ;;  %v3038_v38 = vsub.f32 2.0, %v3006_v33  ;;  %v3158_v26 = vmul.f32 %v3126_v14, %v8924_v15  ;;  %v3098_v19 = vmul.f32 %v3066_v12, %v8890_v55 }
 0x4ca   : > { %v6889_v37 = vpop.eup %6888  ;;  %v3104_v53 = vmul.f32 %v8969_v16, %v8892_v25  ;;  %6898 = vrcp.f32 %v8977_v46  ;;  %v8990_v32 = vadd.f32 %v8776_v9, %v2753_v44  ;;  %v3224_v56 = vsub.f32 1.0, %v3160_v1 }
 0x4cb   : > { %v3003_v59 = vmul.f32 %v6889_v37, %v8929_v42  ;;  %v6891_v48 = vpop.eup %6890  ;;  %v3070_v30 = vmul.f32 %v6885_v20, %v3038_v38  ;;  %v3101_v15 = vmul.f32 %v8975_v36, %v8899_v31  ;;  %6900 = vpow2.f32 %v2908_v8 }
 0x4cc   : > { %v3010_v57 = vmul.f32 %v6891_v48, %v8937_v34  ;;  %v6893_v14 = vpop.eup %6892  ;;  %v2819_v20 = vand.u32 2147483647, %v8990_v32  ;;  %v3161_v11 = vmul.f32 %v3129_v5, %v3065_v35  ;;  %v3130_v44 = vsub.f32 2.0, %v3098_v19  ;;  %v2689_v19 = vpop.xlane.xlu0 %2688 }
 0x4cd   : > { %v3035_v55 = vsub.f32 2.0, %v3003_v59  ;;  %v3102_v25 = vmul.f32 %v3070_v30, %v8905_v24  ;;  %v6895_v27 = vpop.eup %6894  ;;  %v3136_v31 = vsub.f32 2.0, %v3104_v53  ;;  %v3009_v38 = vmul.f32 %v6893_v14, %v8943_v18 }
 0x4ce   : > { %v3042_v33 = vsub.f32 2.0, %v3010_v57  ;;  %v2851_v59 = vsub.f32 0.0, %v2819_v20  ;;  %v3222_v51 = vsub.f32 1.0, %v3158_v26  ;;  %v3164_v29 = vmul.f32 %v3132_v7, %v3068_v60  ;;  %v2677_v7 = vpop.xlane.xlu1 %2676 }
 0x4cf   : > { %v3067_v22 = vmul.f32 %v6889_v37, %v3035_v55  ;;  %v3133_v28 = vsub.f32 2.0, %v3101_v15  ;;  %v9002_v8 = vsel %vm3192_vm12, %v3160_v1, %v3224_v56  ;;  %v3134_v35 = vsub.f32 2.0, %v3102_v25 }
 0x4d0   : > { %v3074_v21 = vmul.f32 %v6891_v48, %v3042_v33  ;;  %v9006_v5 = vadd.f32 1.0, %v6895_v27  ;;  %v3225_v53 = vsub.f32 1.0, %v3161_v11  ;;  %v3162_v55 = vmul.f32 %v3130_v44, %v3066_v12  ;;  %v2685_v49 = vpop.xlane.xlu0 %2684 }
 0x4d1   : > { %v3099_v37 = vmul.f32 %v3067_v22, %v8929_v42  ;;  %v3041_v60 = vsub.f32 2.0, %v3009_v38  ;;  %v9012_v39 = vsel %vm3191_vm5, %v3159_v41, %v3223_v61  ;;  %v3168_v1 = vmul.f32 %v3136_v31, %v8969_v16 }
 0x4d2   : > { %v6897_v24 = vpop.eup %6896  ;;  %6902 = vrcp.f32 %v9006_v5  ;;  %v2896_v42 = vmul.f32 1.442695, %v2851_v59  ;;  %v9019_v12 = vsel %vm3190_vm6, %v3158_v26, %v3222_v51  ;;  %v3228_v15 = vsub.f32 1.0, %v3164_v29 }
 0x4d3   : > { %v3007_v48 = vmul.f32 %v6897_v24, %v8962_v3  ;;  %10472 = vst [vmem:[#allocation28_spill] sm:$0xff] %v9019_v12  ;;  %v3165_v57 = vmul.f32 %v3133_v28, %v8975_v36  ;;  %v3106_v45 = vmul.f32 %v3074_v21, %v8937_v34  ;;  %v3166_v56 = vmul.f32 %v3134_v35, %v3070_v30 }
 0x4d4   : > { %v6899_v41 = vpop.eup %6898  ;;  %v3131_v16 = vsub.f32 2.0, %v3099_v37  ;;  %6904 = vpow2.f32 %v2896_v42  ;;  %v10473_v25 = vsub.f32 %v8586_v13, %v8618_v10  ;;  %v9029_v40 = vsel %vm3193_vm7, %v3161_v11, %v3225_v53 }
 0x4d5   : > { %10474 = vst [vmem:[#allocation21_spill] sm:$0xff] %v9029_v40  ;;  %v3226_v51 = vsub.f32 1.0, %v3162_v55  ;;  %v9031_v26 = vmul.f32 %v6893_v14, %v3041_v60  ;;  %v3039_v28 = vsub.f32 2.0, %v3007_v48  ;;  %v6901_v36 = vpop.eup %6900  ;;  %v3232_v44 = vsub.f32 1.0, %v3168_v1  ;;  %v2691_v48 = vpop.xlane.xlu0 %2690 }
 0x4d6   : > { %v2757_v20 = vadd.f32 %v10473_v25, %v2679_v47  ;;  %v10475_v30 = vsub.f32 %v8672_v2, %v8757_v17  ;;  %v10476_v13 = vsub.f32 %v8693_v62, %v8763_v4  ;;  %v9044_v47 = vsel %vm3196_vm8, %v3164_v29, %v3228_v15  ;;  %v2697_v17 = vpop.xlane.xlu1 %2696 }
 0x4d7   : > { %10477 = vst [vmem:[#allocation25_spill] sm:$0xff] %v9044_v47  ;;  %v3229_v14 = vsub.f32 1.0, %v3165_v57  ;;  %v3138_v11 = vsub.f32 2.0, %v3106_v45  ;;  %v3016_v27 = vmul.f32 %v6899_v41, %v8977_v46  ;;  %v3230_v61 = vsub.f32 1.0, %v3166_v56  ;;  %v10483_v45 = vld [vmem:[#allocation19_spill] sm:$0xff] }
 0x4d8   : > { %v9034_v34 = vadd.f32 %v8776_v9, %v2757_v20  ;;  %v2756_v33 = vadd.f32 %v10475_v30, %v2677_v7  ;;  %v2762_v10 = vadd.f32 %v10476_v13, %v2689_v19  ;;  %v3163_v31 = vmul.f32 %v3131_v16, %v3067_v22 }
 0x4d9   : > { %v9047_v38 = vadd.f32 1.0, %v6901_v36  ;;  %v9052_v62 = vsel %vm3194_vm9, %v3162_v55, %v3226_v51  ;;  %v3105_v29 = vmul.f32 %v9031_v26, %v8943_v18  ;;  %v3071_v4 = vmul.f32 %v6897_v24, %v3039_v28 }
 0x4da   : > { %v2823_v2 = vand.u32 2147483647, %v9034_v34  ;;  %10478 = vst [vmem:[#allocation47_spill] sm:$0xff] %v9052_v62  ;;  %v9058_v52 = vadd.f32 %v8776_v9, %v2756_v33  ;;  %v9062_v22 = vsel %vm3200_vm10, %v3168_v1, %v3232_v44  ;;  %v9067_v59 = vadd.f32 %v8776_v9, %v2762_v10  ;;  %v2693_v20 = vpop.xlane.xlu1 %2692  ;;  %v10486_v10 = vld [vmem:[#allocation20_spill] sm:$0xff] }
 0x4db   : > { %10479 = vst [vmem:[#allocation48_spill] sm:$0xff] %v9062_v22  ;;  %6906 = vrcp.f32 %v9047_v38  ;;  %v9071_v35 = vsel %vm3197_vm11, %v3165_v57, %v3229_v14  ;;  %v3170_v18 = vmul.f32 %v3138_v11, %v3074_v21  ;;  %v3048_v24 = vsub.f32 2.0, %v3016_v27 }
 0x4dc   : > { %v2855_v6 = vsub.f32 0.0, %v2823_v2  ;;  %10480 = vst [vmem:[#allocation49_spill] sm:$0xff] %v9071_v35  ;;  %v2822_v37 = vand.u32 2147483647, %v9058_v52  ;;  %v6903_v19 = vpop.eup %6902  ;;  %v9076_v50 = vsel %vm3198_vm13, %v3166_v56, %v3230_v61  ;;  %v3227_v53 = vsub.f32 1.0, %v3163_v31  ;;  %v10484_v56 = vld [vmem:[#allocation39_spill] sm:$0xff]  ;;  %v2687_v2 = vpop.xlane.xlu0 %2686 }
 0x4dd   : > { %10481 = vst [vmem:[#allocation50_spill] sm:$0xff] %v9076_v50  ;;  %v2828_v60 = vand.u32 2147483647, %v9067_v59  ;;  %v3137_v1 = vsub.f32 2.0, %v3105_v29  ;;  %v3103_v42 = vmul.f32 %v3071_v4, %v8962_v3  ;;  %v3012_v43 = vmul.f32 %v6903_v19, %v9006_v5  ;;  %v10522_v50 = vld [vmem:[#allocation10_spill] sm:$0xff] }
 0x4de   : > { %v2904_v55 = vmul.f32 1.442695, %v2855_v6  ;;  %v2854_v7 = vsub.f32 0.0, %v2822_v37  ;;  %v6905_v21 = vpop.eup %6904  ;;  %v10482_v57 = vsub.f32 %v10458_v54, %v8767_v58  ;;  %v10485_v16 = vsub.f32 %v10483_v45, %v10484_v56 }
 0x4df   : > { %v2860_v15 = vsub.f32 0.0, %v2828_v60  ;;  %v3234_v51 = vsub.f32 1.0, %v3170_v18  ;;  %v3080_v28 = vmul.f32 %v6899_v41, %v3048_v24  ;;  %v3044_v36 = vsub.f32 2.0, %v3012_v43 }
 0x4e0   : > { %6908 = vpow2.f32 %v2904_v55  ;;  %v2766_v63 = vadd.f32 %v10482_v57, %v2697_v17  ;;  %v2760_v25 = vadd.f32 %v10485_v16, %v2685_v49  ;;  %v9087_v44 = vadd.f32 1.0, %v6905_v21  ;;  %v10487_v49 = vld [vmem:[#allocation22_spill] sm:$0xff]  ;;  %v10497_v21 = vld [vmem:[#allocation40_spill] sm:$0xff] }
 0x4e1   : > { %v2902_v3 = vmul.f32 1.442695, %v2854_v7  ;;  %v2914_v30 = vmul.f32 1.442695, %v2860_v15  ;;  %v3135_v58 = vsub.f32 2.0, %v3103_v42  ;;  %v3076_v54 = vmul.f32 %v6903_v19, %v3044_v36  ;;  %v10491_v19 = vld [vmem:[#allocation34_spill] sm:$0xff]  ;;  %v2701_v42 = vpop.xlane.xlu1 %2700 }
 0x4e2   : > { %v9090_v33 = vadd.f32 %v8776_v9, %v2766_v63  ;;  %v9093_v13 = vadd.f32 %v8776_v9, %v2760_v25  ;;  %6910 = vrcp.f32 %v9087_v44  ;;  %v10488_v14 = vsub.f32 %v10486_v10, %v10487_v49  ;;  %v10499_v16 = vld [vmem:[#allocation38_spill] sm:$0xff]  ;;  %v10500_v25 = vld [vmem:[#allocation31_spill] sm:$0xff] }
 0x4e3   : > { %v9101_v41 = vsel %vm3195_vm14, %v3163_v31, %v3227_v53  ;;  %6912 = vpow2.f32 %v2902_v3  ;;  %v9107_v17 = vsel %vm3202_vm15, %v3170_v18, %v3234_v51  ;;  %v3169_v29 = vmul.f32 %v3137_v1, %v9031_v26  ;;  %v10492_v53 = vld [vmem:[#allocation17_spill] sm:$0xff]  ;;  %v10495_v1 = vld [vmem:[#allocation16_spill] sm:$0xff] }
 0x4e4   : > { %v2764_v11 = vadd.f32 %v10488_v14, %v2693_v20  ;;  %10489 = vst [vmem:[#allocation19_spill] sm:$0xff] %v9101_v41  ;;  %v2832_v27 = vand.u32 2147483647, %v9090_v33  ;;  %v2826_v61 = vand.u32 2147483647, %v9093_v13  ;;  %10490 = vst [vmem:[#allocation39_spill] sm:$0xff] %v9107_v17  ;;  %v3112_v6 = vmul.f32 %v3080_v28, %v8977_v46 }
 0x4e5   : > { %6914 = vpow2.f32 %v2914_v30  ;;  %v6907_v24 = vpop.eup %6906  ;;  %v10493_v55 = vsub.f32 %v10491_v19, %v10492_v53  ;;  %v3167_v43 = vmul.f32 %v3135_v58, %v3071_v4  ;;  %v3108_v23 = vmul.f32 %v3076_v54, %v9006_v5  ;;  %v10494_v26 = vld [vmem:[#allocation13_spill] sm:$0xff] }
 0x4e6   : > { %v2864_v37 = vsub.f32 0.0, %v2832_v27  ;;  %v2858_v0 = vsub.f32 0.0, %v2826_v61  ;;  %v9112_v31 = vadd.f32 %v8776_v9, %v2764_v11  ;;  %v3017_v18 = vmul.f32 %v6907_v24, %v9047_v38 }
 0x4e7   : > { %v2763_v60 = vadd.f32 %v10493_v55, %v2691_v48  ;;  %v10496_v46 = vsub.f32 %v10494_v26, %v10495_v1  ;;  %vm3201_vm0 = vcmp.ge.f32.partialorder %v10497_v21, 0.0  ;;  %v10498_v48 = vld [vmem:[#allocation41_spill] sm:$0xff]  ;;  %v3144_v4 = vsub.f32 2.0, %v3112_v6  ;;  %v2675_v1 = vpop.xlane.xlu1 %2674 }
 0x4e8   : > { %v2922_v15 = vmul.f32 1.442695, %v2864_v37  ;;  %v2910_v57 = vmul.f32 1.442695, %v2858_v0  ;;  %v2830_v63 = vand.u32 2147483647, %v9112_v31  ;;  %v10501_v20 = vsub.f32 %v10499_v16, %v10500_v25 }
 0x4e9   : > { %v2761_v7 = vadd.f32 %v10496_v46, %v2687_v2  ;;  %v9125_v45 = vadd.f32 %v8776_v9, %v2763_v60  ;;  %vm3199_vm1 = vcmp.ge.f32.partialorder %v10498_v48, 0.0  ;;  %v3049_v56 = vsub.f32 2.0, %v3017_v18 }
 0x4ea   : > { %v2768_v51 = vadd.f32 %v10501_v20, %v2701_v42  ;;  %v6909_v36 = vpop.eup %6908  ;;  %v3233_v3 = vsub.f32 1.0, %v3169_v29  ;;  %6916 = vpow2.f32 %v2922_v15  ;;  %v2862_v30 = vsub.f32 0.0, %v2830_v63  ;;  %v2699_v42 = vpop.xlane.xlu0 %2698 }
 0x4eb   : > { %v9129_v5 = vadd.f32 %v8776_v9, %v2761_v7  ;;  %v2829_v58 = vand.u32 2147483647, %v9125_v45  ;;  %v3140_v10 = vsub.f32 2.0, %v3108_v23  ;;  %v3081_v49 = vmul.f32 %v6907_v24, %v3049_v56 }
 0x4ec   : > { %v9135_v14 = vadd.f32 1.0, %v6909_v36  ;;  %6918 = vpow2.f32 %v2910_v57  ;;  %v3231_v11 = vsub.f32 1.0, %v3167_v43  ;;  %v2918_v27 = vmul.f32 1.442695, %v2862_v30  ;;  %v6911_v6 = vpop.eup %6910  ;;  %v10508_v36 = vld [vmem:[#allocation15_spill] sm:$0xff] }
 0x4ed   : > { %v2861_v61 = vsub.f32 0.0, %v2829_v58  ;;  %v2827_v2 = vand.u32 2147483647, %v9129_v5  ;;  %v9138_v37 = vmul.f32 %v3144_v4, %v3080_v28  ;;  %v3113_v0 = vmul.f32 %v3081_v49, %v9047_v38  ;;  %v6913_v53 = vpop.eup %6912  ;;  %v10504_v4 = vld [vmem:[#allocation45_spill] sm:$0xff] }
 0x4ee   : > { %6920 = vrcp.f32 %v9135_v14  ;;  %v9143_v19 = vadd.f32 %v8776_v9, %v2768_v51  ;;  %v3011_v24 = vmul.f32 %v6911_v6, %v9087_v44  ;;  %v9146_v18 = vmul.f32 %v3140_v10, %v3076_v54  ;;  %v10503_v54 = vld [vmem:[#allocation35_spill] sm:$0xff]  ;;  %v10507_v51 = vld [vmem:[#allocation12_spill] sm:$0xff] }
 0x4ef   : > { %6922 = vpow2.f32 %v2918_v27  ;;  %v2916_v55 = vmul.f32 1.442695, %v2861_v61  ;;  %v2859_v60 = vsub.f32 0.0, %v2827_v2  ;;  %v6915_v23 = vpop.eup %6914  ;;  %v3145_v26 = vsub.f32 2.0, %v3113_v0  ;;  %v10512_v0 = vld [vmem:[#allocation11_spill] sm:$0xff]  ;;  %v10519_v27 = vld [vmem:[#allocation26_spill] sm:$0xff] }
 0x4f0   : > { %v9148_v28 = vadd.f32 1.0, %v6913_v53  ;;  %v2834_v38 = vand.u32 2147483647, %v9143_v19  ;;  %v3043_v46 = vsub.f32 2.0, %v3011_v24  ;;  %v9151_v7 = vadd.f32 1.0, %v6915_v23 }
 0x4f1   : > { %6924 = vpow2.f32 %v2916_v55  ;;  %v2912_v15 = vmul.f32 1.442695, %v2859_v60  ;;  %v9155_v57 = vsel %vm3201_vm0, %v3169_v29, %v3233_v3  ;;  %v10505_v56 = vsub.f32 %v10503_v54, %v10504_v4  ;;  %v10513_v60 = vld [vmem:[#allocation32_spill] sm:$0xff] }
 0x4f2   : > { %10502 = vst [vmem:[#allocation20_spill] sm:$0xff] %v9155_v57  ;;  %6926 = vrcp.f32 %v9148_v28  ;;  %v2866_v63 = vsub.f32 0.0, %v2834_v38  ;;  %v9163_v25 = vsel %vm3199_vm1, %v3167_v43, %v3231_v11  ;;  %v3075_v20 = vmul.f32 %v6911_v6, %v3043_v46 }
 0x4f3   : > { %v2767_v16 = vadd.f32 %v10505_v56, %v2699_v42  ;;  %10506 = vst [vmem:[#allocation22_spill] sm:$0xff] %v9163_v25  ;;  %6928 = vrcp.f32 %v9151_v7  ;;  %v10509_v30 = vsub.f32 %v10507_v51, %v10508_v36  ;;  %v9174_v48 = vmul.f32 %v3145_v26, %v3081_v49  ;;  %v10514_v26 = vld [vmem:[#allocation43_spill] sm:$0xff]  ;;  %v10516_v51 = vld [vmem:[#allocation18_spill] sm:$0xff] }
 0x4f4   : > { %6930 = vpow2.f32 %v2912_v15  ;;  %v2926_v3 = vmul.f32 1.442695, %v2866_v63  ;;  %v6917_v10 = vpop.eup %6916  ;;  %v3107_v43 = vmul.f32 %v3075_v20, %v9087_v44  ;;  %v3385_v53 = vrot.slane %v9002_v8, %v10512_v0 }
 0x4f5   : > { %v2755_v21 = vadd.f32 %v10509_v30, %v2675_v1  ;;  %v9171_v58 = vadd.f32 %v8776_v9, %v2767_v16  ;;  %v9180_v2 = vadd.f32 1.0, %v6917_v10  ;;  %v3389_v44 = vrot.slane %v9002_v8, %v10513_v60  ;;  %v10515_v1 = vld [vmem:[#allocation33_spill] sm:$0xff]  ;;  %v10517_v30 = vld [vmem:[#allocation30_spill] sm:$0xff] }
 0x4f6   : > { %v6919_v61 = vpop.eup %6918  ;;  %6932 = vpow2.f32 %v2926_v3  ;;  %v3139_v24 = vsub.f32 2.0, %v3107_v43  ;;  %v3393_v38 = vrot.slane %v9002_v8, %v10514_v26  ;;  %v3397_v46 = vrot.slane %v9002_v8, %v10515_v1 }
 0x4f7   : > { %10510 = vst [vmem:[#allocation34_spill] sm:$0xff] %v9171_v58  ;;  %v9178_v11 = vadd.f32 %v8776_v9, %v2755_v21  ;;  %v2833_v6 = vand.u32 2147483647, %v9171_v58  ;;  %v9185_v55 = vadd.f32 1.0, %v6919_v61  ;;  %6934 = vrcp.f32 %v9180_v2  ;;  %v10518_v61 = vld [vmem:[#allocation8_spill] sm:$0xff] }
 0x4f8   : > { %v6921_v42 = vpop.eup %6920  ;;  %v9195_v63 = vmul.f32 %v3139_v24, %v3075_v20  ;;  %v3401_v36 = vrot.slane %v9002_v8, %v10516_v51  ;;  %v3405_v21 = vrot.slane %v9002_v8, %v10517_v30  ;;  %v3241_v10 = vsub.f32 1.0, %v9174_v48 }
 0x4f9   : > { %10511 = vst [vmem:[#allocation17_spill] sm:$0xff] %v9178_v11  ;;  %v2821_v49 = vand.u32 2147483647, %v9178_v11  ;;  %v2865_v23 = vsub.f32 0.0, %v2833_v6  ;;  %v6923_v15 = vpop.eup %6922  ;;  %v3015_v54 = vmul.f32 %v6921_v42, %v9135_v14  ;;  %6936 = vrcp.f32 %v9185_v55 }
 0x4fa   : > { %v9199_v56 = vadd.f32 1.0, %v6923_v15  ;;  %v3409_v6 = vrot.slane %v9002_v8, %v10518_v61  ;;  %vm3208_vm2 = vcmp.ge.f32.partialorder %v10519_v27, 0.0  ;;  %v10521_v15 = vld [vmem:[#allocation6_spill] sm:$0xff]  ;;  %v4440_v17 = vcombine.low %v3385_v53, %v3389_v44 }
 0x4fb   : > { %v2853_v4 = vsub.f32 0.0, %v2821_v49  ;;  %v2924_v16 = vmul.f32 1.442695, %v2865_v23  ;;  %v6925_v3 = vpop.eup %6924  ;;  %v3047_v43 = vsub.f32 2.0, %v3015_v54  ;;  %v10520_v49 = vld [vmem:[#allocation27_spill] sm:$0xff]  ;;  %v3413_v29 = vrot.slane %v9002_v8, %v10521_v15 }
 0x4fc   : > { %v6927_v24 = vpop.eup %6926  ;;  %vm3204_vm3 = vcmp.ge.f32.partialorder %v10520_v49, 0.0  ;;  %6938 = vrcp.f32 %v9199_v56  ;;  %v9211_v23 = vadd.f32 1.0, %v6925_v3  ;;  %vm3209_vm4 = vcmp.ge.f32.partialorder %v10522_v50, 0.0 }
 0x4fd   : > { %v2900_v20 = vmul.f32 1.442695, %v2853_v4  ;;  %v6929_v25 = vpop.eup %6928  ;;  %vm3203_vm12 = vcmp.ge.f32.partialorder %v8990_v32, 0.0  ;;  %v3235_v54 = vsub.f32 1.0, %v9195_v63  ;;  %v3079_v4 = vmul.f32 %v6921_v42, %v3047_v43  ;;  %v10523_v42 = vld [vmem:[#allocation7_spill] sm:$0xff] }
 0x4fe   : > { %v3014_v57 = vmul.f32 %v6927_v24, %v9148_v28  ;;  %6940 = vpow2.f32 %v2924_v16  ;;  %v6931_v41 = vpop.eup %6930  ;;  %v3020_v35 = vmul.f32 %v6929_v25, %v9151_v7  ;;  %v4441_v3 = vcombine.low %v3393_v38, %v3397_v46 }
 0x4ff   : > { %6942 = vrcp.f32 %v9211_v23  ;;  %v4442_v22 = vcombine.low %v3401_v36, %v3405_v21  ;;  %v3111_v8 = vmul.f32 %v3079_v4, %v9135_v14  ;;  %v9222_v44 = vadd.f32 1.0, %v6931_v41 }
 0x500   : > { %v3046_v53 = vsub.f32 2.0, %v3014_v57  ;;  %6944 = vpow2.f32 %v2900_v20  ;;  %v6933_v62 = vpop.eup %6932  ;;  %v3052_v47 = vsub.f32 2.0, %v3020_v35  ;;  %v4443_v11 = vcombine.low %v3409_v6, %v3413_v29 }
 0x501   : > { %v4450_v43 = vrot.slane %v4440_v17, %v10523_v42  ;;  %v4457_v16 = vrot.slane %v4441_v3, %v10523_v42  ;;  %v3143_v40 = vsub.f32 2.0, %v3111_v8  ;;  %6946 = vrcp.f32 %v9222_v44  ;;  %v6935_v38 = vpop.eup %6934 }
 0x502   : > { %v3078_v58 = vmul.f32 %v6927_v24, %v3046_v53  ;;  %v9227_v12 = vadd.f32 1.0, %v6933_v62  ;;  %v3084_v46 = vmul.f32 %v6929_v25, %v3052_v47  ;;  %v4464_v14 = vrot.slane %v4442_v22, %v10523_v42 }
 0x503   : > { %v4471_v41 = vrot.slane %v4443_v11, %v10523_v42  ;;  %v4472_v57 = vcombine.low %v4450_v43, %v4457_v16  ;;  %v6937_v36 = vpop.eup %6936  ;;  %v3175_v35 = vmul.f32 %v3143_v40, %v3079_v4  ;;  %v3024_v17 = vmul.f32 %v6935_v38, %v9180_v2 }
 0x504   : > { %v3110_v29 = vmul.f32 %v3078_v58, %v9148_v28  ;;  %6948 = vrcp.f32 %v9227_v12  ;;  %v3116_v21 = vmul.f32 %v3084_v46, %v9151_v7  ;;  %v3018_v62 = vmul.f32 %v6937_v36, %v9185_v55 }
 0x505   : > { %v4473_v20 = vcombine.low %v4464_v14, %v4471_v41  ;;  %v4480_v47 = vrot.slane %v4472_v57, %v10523_v42  ;;  %v10524_v22 = vsub.f32 1.0, %v9138_v37  ;;  %v10525_v40 = vsub.f32 1.0, %v9146_v18  ;;  %v10526_v57 = vld [vmem:[#allocation44_spill] sm:$0xff] }
 0x506   : > { %vm3207_vm5 = vcmp.ge.f32.partialorder %v9034_v34, 0.0  ;;  %v3142_v7 = vsub.f32 2.0, %v3110_v29  ;;  %v3056_v11 = vsub.f32 2.0, %v3024_v17  ;;  %v6939_v6 = vpop.eup %6938  ;;  %v9255_v24 = vsel %vm3209_vm4, %v9174_v48, %v3241_v10  ;;  %v10527_v29 = vld [vmem:[#allocation36_spill] sm:$0xff] }
 0x507   : > { %v9242_v25 = vsel %vm3208_vm2, %v9138_v37, %v10524_v22  ;;  %v9249_v28 = vsel %vm3204_vm3, %v9146_v18, %v10525_v40  ;;  %v9260_v37 = vsel %vm3203_vm12, %v9195_v63, %v3235_v54  ;;  %v3050_v27 = vsub.f32 2.0, %v3018_v62  ;;  %v2695_v18 = vpop.xlane.xlu0 %2694 }
 0x508   : > { %v4487_v49 = vrot.slane %v4473_v20, %v10523_v42  ;;  %v6941_v4 = vpop.eup %6940  ;;  %v3239_v3 = vsub.f32 1.0, %v3175_v35  ;;  %vm3206_vm6 = vcmp.ge.f32.partialorder %v9058_v52, 0.0  ;;  %v3148_v8 = vsub.f32 2.0, %v3116_v21 }
 0x509   : > { %v3088_v53 = vmul.f32 %v6935_v38, %v3056_v11  ;;  %v3022_v43 = vmul.f32 %v6939_v6, %v9199_v56  ;;  %v6943_v50 = vpop.eup %6942  ;;  %v3174_v48 = vmul.f32 %v3142_v7, %v3078_v58  ;;  %v3082_v10 = vmul.f32 %v6937_v36, %v3050_v27 }
 0x50a   : > { %v9265_v16 = vadd.f32 1.0, %v6941_v4  ;;  %v4488_v32 = vcombine.low %v4480_v47, %v4487_v49  ;;  %v6945_v63 = vpop.eup %6944  ;;  %v3021_v41 = vmul.f32 %v6943_v50, %v9211_v23  ;;  %v10528_v17 = vsub.f32 %v10526_v57, %v10527_v29 }
 0x50b   : > { %v3120_v54 = vmul.f32 %v3088_v53, %v9180_v2  ;;  %v3054_v14 = vsub.f32 2.0, %v3022_v43  ;;  %v3114_v38 = vmul.f32 %v3082_v10, %v9185_v55  ;;  %v9274_v21 = vadd.f32 1.0, %v6945_v63  ;;  %v6947_v36 = vpop.eup %6946 }
 0x50c   : > { %v2765_v62 = vadd.f32 %v10528_v17, %v2695_v18  ;;  %6950 = vrcp.f32 %v9265_v16  ;;  %5917 = vperm.xlu1 %6808, %v4488_v32   ;;  %v3353_v58 = vrot.slane %v9012_v39, %v10512_v0  ;;  %v3180_v20 = vmul.f32 %v3148_v8, %v3084_v46 }
 0x50d   : > { %v3152_v2 = vsub.f32 2.0, %v3120_v54  ;;  %v3086_v47 = vmul.f32 %v6939_v6, %v3054_v14  ;;  %v3053_v22 = vsub.f32 2.0, %v3021_v41  ;;  %v3238_v40 = vsub.f32 1.0, %v3174_v48 }
 0x50e   : > { %vm3212_vm7 = vcmp.ge.f32.partialorder %v9067_v59, 0.0  ;;  %vm3216_vm8 = vcmp.ge.f32.partialorder %v9090_v33, 0.0  ;;  %v3146_v7 = vsub.f32 2.0, %v3114_v38  ;;  %v3019_v55 = vmul.f32 %v6947_v36, %v9222_v44  ;;  %v6949_v11 = vpop.eup %6948 }
 0x50f   : > { %6952 = vrcp.f32 %v9274_v21  ;;  %v3184_v27 = vmul.f32 %v3152_v2, %v3088_v53  ;;  %v3118_v49 = vmul.f32 %v3086_v47, %v9199_v56  ;;  %v3085_v18 = vmul.f32 %v6943_v50, %v3053_v22 }
 0x510   : > { %v9284_v46 = vadd.f32 %v8776_v9, %v2765_v62  ;;  %v9288_v6 = vsel %vm3207_vm5, %v3175_v35, %v3239_v3  ;;  %v3178_v4 = vmul.f32 %v3146_v7, %v3082_v10  ;;  %v3051_v8 = vsub.f32 2.0, %v3019_v55 }
 0x511   : > { %v3026_v43 = vmul.f32 %v6949_v11, %v9227_v12  ;;  %v3244_v32 = vsub.f32 1.0, %v3180_v20  ;;  %vm3210_vm9 = vcmp.ge.f32.partialorder %v9093_v13, 0.0  ;;  %v3150_v63 = vsub.f32 2.0, %v3118_v49 }
 0x512   : > { %vm3214_vm10 = vcmp.ge.f32.partialorder %v9112_v31, 0.0  ;;  %v3117_v56 = vmul.f32 %v3085_v18, %v9211_v23  ;;  %v2831_v53 = vand.u32 2147483647, %v9284_v46  ;;  %v9297_v50 = vsel %vm3206_vm6, %v3174_v48, %v3238_v40 }
 0x513   : > { %v3083_v34 = vmul.f32 %v6947_v36, %v3051_v8  ;;  %v3058_v35 = vsub.f32 2.0, %v3026_v43  ;;  %v3357_v3 = vrot.slane %v9012_v39, %v10513_v60  ;;  %v3248_v10 = vsub.f32 1.0, %v3184_v27 }
 0x514   : > { %v3182_v54 = vmul.f32 %v3150_v63, %v3086_v47  ;;  %v3149_v14 = vsub.f32 2.0, %v3117_v56  ;;  %vm3213_vm11 = vcmp.ge.f32.partialorder %v9125_v45, 0.0  ;;  %v2863_v41 = vsub.f32 0.0, %v2831_v53 }
 0x515   : > { %v3242_v57 = vsub.f32 1.0, %v3178_v4  ;;  %v3115_v23 = vmul.f32 %v3083_v34, %v9222_v44  ;;  %v3090_v29 = vmul.f32 %v6949_v11, %v3058_v35  ;;  %v3361_v52 = vrot.slane %v9012_v39, %v10514_v26 }
 0x516   : > { %v3246_v48 = vsub.f32 1.0, %v3182_v54  ;;  %v3181_v17 = vmul.f32 %v3149_v14, %v3085_v18  ;;  %v2920_v62 = vmul.f32 1.442695, %v2863_v41  ;;  %v3365_v38 = vrot.slane %v9012_v39, %v10515_v1  ;;  %v6951_v36 = vpop.eup %6950 }
 0x517   : > { %v3147_v2 = vsub.f32 2.0, %v3115_v23  ;;  %v3122_v47 = vmul.f32 %v3090_v29, %v9227_v12  ;;  %v3369_v22 = vrot.slane %v9012_v39, %v10516_v51  ;;  %v3373_v44 = vrot.slane %v9012_v39, %v10517_v30 }
 0x518   : > { %v9314_v40 = vsel %vm3212_vm7, %v3180_v20, %v3244_v32  ;;  %v9318_v7 = vsel %vm3216_vm8, %v3184_v27, %v3248_v10  ;;  %v3025_v55 = vmul.f32 %v6951_v36, %v9265_v16  ;;  %6954 = vpow2.f32 %v2920_v62 }
 0x519   : > { %v6953_v11 = vpop.eup %6952  ;;  %v3245_v49 = vsub.f32 1.0, %v3181_v17  ;;  %v3179_v12 = vmul.f32 %v3147_v2, %v3083_v34  ;;  %v3377_v18 = vrot.slane %v9012_v39, %v10518_v61  ;;  %v3381_v8 = vrot.slane %v9012_v39, %v10521_v15 }
 0x51a   : > { %v3154_v43 = vsub.f32 2.0, %v3122_v47  ;;  %v3057_v59 = vsub.f32 2.0, %v3025_v55  ;;  %v3013_v20 = vmul.f32 %v6953_v11, %v9274_v21  ;;  %v4391_v32 = vcombine.low %v3353_v58, %v3357_v3 }
 0x51b   : > { %v9328_v33 = vsel %vm3210_vm9, %v3178_v4, %v3242_v57  ;;  %v9332_v27 = vsel %vm3214_vm10, %v3182_v54, %v3246_v48  ;;  %vm3211_vm13 = vcmp.ge.f32.partialorder %v9129_v5, 0.0  ;;  %v4392_v63 = vcombine.low %v3361_v52, %v3365_v38  ;;  %v10529_v57 = vld [vmem:[#allocation28_spill] sm:$0xff] }
 0x51c   : > { %v4393_v56 = vcombine.low %v3369_v22, %v3373_v44  ;;  %v3089_v53 = vmul.f32 %v6951_v36, %v3057_v59  ;;  %v3045_v34 = vsub.f32 2.0, %v3013_v20  ;;  %v4394_v39 = vcombine.low %v3377_v18, %v3381_v8 }
 0x51d   : > { %v4401_v35 = vrot.slane %v4391_v32, %v10523_v42  ;;  %v9338_v58 = vsel %vm3213_vm11, %v3181_v17, %v3245_v49  ;;  %v3243_v13 = vsub.f32 1.0, %v3179_v12  ;;  %vm3218_vm14 = vcmp.ge.f32.partialorder %v9143_v19, 0.0  ;;  %v2705_v49 = vpop.xlane.xlu0 %2704 }
 0x51e   : > { %v4408_v31 = vrot.slane %v4392_v63, %v10523_v42  ;;  %v4415_v4 = vrot.slane %v4393_v56, %v10523_v42  ;;  %v3186_v3 = vmul.f32 %v3154_v43, %v3090_v29  ;;  %v3121_v10 = vmul.f32 %v3089_v53, %v9265_v16  ;;  %v10530_v29 = vld [vmem:[#allocation34_spill] sm:$0xff] }
 0x51f   : > { %v3077_v54 = vmul.f32 %v6953_v11, %v3045_v34  ;;  %v4422_v14 = vrot.slane %v4394_v39, %v10523_v42  ;;  %v3321_v23 = vrot.slane %v10529_v57, %v10512_v0  ;;  %v3325_v45 = vrot.slane %v10529_v57, %v10513_v60 }
 0x520   : > { %v4423_v41 = vcombine.low %v4401_v35, %v4408_v31  ;;  %v3329_v52 = vrot.slane %v10529_v57, %v10514_v26  ;;  %v3153_v48 = vsub.f32 2.0, %v3121_v10  ;;  %v3333_v16 = vrot.slane %v10529_v57, %v10515_v1 }
 0x521   : > { %v3109_v17 = vmul.f32 %v3077_v54, %v9274_v21  ;;  %v4424_v62 = vcombine.low %v4415_v4, %v4422_v14  ;;  %vm3217_vm15 = vcmp.ge.f32.partialorder %v10530_v29, 0.0  ;;  %v3337_v36 = vrot.slane %v10529_v57, %v10516_v51 }
 0x522   : > { %v4431_v38 = vrot.slane %v4423_v41, %v10523_v42  ;;  %v3341_v2 = vrot.slane %v10529_v57, %v10517_v30  ;;  %v3345_v47 = vrot.slane %v10529_v57, %v10518_v61  ;;  %v6955_v22 = vpop.eup %6954  ;;  %v3250_v44 = vsub.f32 1.0, %v3186_v3  ;;  %v10534_v41 = vld [vmem:[#allocation21_spill] sm:$0xff] }
 0x523   : > { %v3185_v21 = vmul.f32 %v3153_v48, %v3089_v53  ;;  %v4438_v55 = vrot.slane %v4424_v62, %v10523_v42  ;;  %v3349_v11 = vrot.slane %v10529_v57, %v10521_v15  ;;  %v9365_v18 = vadd.f32 1.0, %v6955_v22 }
 0x524   : > { %v4342_v8 = vcombine.low %v3321_v23, %v3325_v45  ;;  %v4343_v43 = vcombine.low %v3329_v52, %v3333_v16  ;;  %v4344_v59 = vcombine.low %v3337_v36, %v3341_v2  ;;  %v9369_v20 = vsel %vm3211_vm13, %v3179_v12, %v3243_v13  ;;  %v10531_v12 = vld [vmem:[#allocation46_spill] sm:$0xff]  ;;  %v10532_v13 = vld [vmem:[#allocation23_spill] sm:$0xff] }
 0x525   : > { %v3141_v32 = vsub.f32 2.0, %v3109_v17  ;;  %v4439_v63 = vcombine.low %v4431_v38, %v4438_v55  ;;  %v4345_v56 = vcombine.low %v3345_v47, %v3349_v11  ;;  %6956 = vrcp.f32 %v9365_v18  ;;  %v2703_v17 = vpop.xlane.xlu0 %2702 }
 0x526   : > { %v4352_v53 = vrot.slane %v4342_v8, %v10523_v42  ;;  %v4359_v34 = vrot.slane %v4343_v43, %v10523_v42  ;;  %v4366_v39 = vrot.slane %v4344_v59, %v10523_v42  ;;  %v9377_v35 = vsel %vm3218_vm14, %v3186_v3, %v3250_v44  ;;  %v10536_v8 = vld [vmem:[#allocation37_spill] sm:$0xff] }
 0x527   : > { %v3249_v31 = vsub.f32 1.0, %v3185_v21  ;;  %5914 = vperm.xlu0 %6809, %v4439_v63   ;;  %v4373_v5 = vrot.slane %v4345_v56, %v10523_v42  ;;  %v10533_v4 = vsub.f32 %v10531_v12, %v10532_v13  ;;  %v3417_v57 = vrot.slane %v10534_v41, %v10512_v0  ;;  %v10539_v13 = vld [vmem:[#allocation25_spill] sm:$0xff] }
 0x528   : > { %v4374_v14 = vcombine.low %v4352_v53, %v4359_v34  ;;  %v3421_v23 = vrot.slane %v10534_v41, %v10513_v60  ;;  %v3425_v19 = vrot.slane %v10534_v41, %v10514_v26  ;;  %v9389_v3 = vmul.f32 %v3141_v32, %v3077_v54 }
 0x529   : > { %v2770_v10 = vadd.f32 %v10533_v4, %v2705_v49  ;;  %v4375_v45 = vcombine.low %v4366_v39, %v4373_v5  ;;  %v3429_v48 = vrot.slane %v10534_v41, %v10515_v1  ;;  %v3433_v16 = vrot.slane %v10534_v41, %v10516_v51  ;;  %v10535_v49 = vld [vmem:[#allocation14_spill] sm:$0xff] }
 0x52a   : > { %v4382_v62 = vrot.slane %v4374_v14, %v10523_v42  ;;  %v3437_v38 = vrot.slane %v10534_v41, %v10517_v30  ;;  %v3441_v54 = vrot.slane %v10534_v41, %v10518_v61  ;;  %v9405_v36 = vsel %vm3217_vm15, %v3185_v21, %v3249_v31  ;;  %v10538_v31 = vld [vmem:[#allocation17_spill] sm:$0xff] }
 0x52b   : > { %v9392_v52 = vadd.f32 %v8776_v9, %v2770_v10  ;;  %v4389_v2 = vrot.slane %v4375_v45, %v10523_v42  ;;  %v3445_v22 = vrot.slane %v10534_v41, %v10521_v15  ;;  %v4489_v44 = vcombine.low %v3417_v57, %v3421_v23 }
 0x52c   : > { %v4490_v55 = vcombine.low %v3425_v19, %v3429_v48  ;;  %v4491_v11 = vcombine.low %v3433_v16, %v3437_v38  ;;  %v10537_v43 = vsub.f32 %v10535_v49, %v10536_v8  ;;  %v3237_v32 = vsub.f32 1.0, %v9389_v3 }
 0x52d   : > { %v2836_v47 = vand.u32 2147483647, %v9392_v52  ;;  %v4390_v63 = vcombine.low %v4382_v62, %v4389_v2  ;;  %v4492_v21 = vcombine.low %v3441_v54, %v3445_v22  ;;  %v4499_v56 = vrot.slane %v4489_v44, %v10523_v42  ;;  %v2707_v62 = vpop.xlane.xlu0 %2706 }
 0x52e   : > { %v2769_v59 = vadd.f32 %v10537_v43, %v2703_v17  ;;  %v4506_v53 = vrot.slane %v4490_v55, %v10523_v42  ;;  %v4513_v34 = vrot.slane %v4491_v11, %v10523_v42  ;;  %vm3205_vm0 = vcmp.ge.f32.partialorder %v10538_v31, 0.0  ;;  %v10540_v43 = vld [vmem:[#allocation29_spill] sm:$0xff] }
 0x52f   : > { %v2868_v29 = vsub.f32 0.0, %v2836_v47  ;;  %5911 = vperm.xlu1 %6808, %v4390_v63   ;;  %v4520_v12 = vrot.slane %v4492_v21, %v10523_v42  ;;  %v3513_v4 = vrot.slane %v10539_v13, %v10512_v0  ;;  %v3517_v10 = vrot.slane %v10539_v13, %v10513_v60  ;;  %v6957_v14 = vpop.eup %6956 }
 0x530   : > { %v9419_v39 = vadd.f32 %v8776_v9, %v2769_v59  ;;  %v4521_v41 = vcombine.low %v4499_v56, %v4506_v53  ;;  %v3521_v23 = vrot.slane %v10539_v13, %v10514_v26  ;;  %v3525_v19 = vrot.slane %v10539_v13, %v10515_v1  ;;  %v10541_v59 = vld [vmem:[#allocation24_spill] sm:$0xff] }
 0x531   : > { %v2930_v5 = vmul.f32 1.442695, %v2868_v29  ;;  %v3023_v45 = vmul.f32 %v6957_v14, %v9365_v18  ;;  %v4522_v48 = vcombine.low %v4513_v34, %v4520_v12  ;;  %v3529_v17 = vrot.slane %v10539_v13, %v10516_v51 }
 0x532   : > { %v2835_v57 = vand.u32 2147483647, %v9419_v39  ;;  %v4529_v16 = vrot.slane %v4521_v41, %v10523_v42  ;;  %v3533_v54 = vrot.slane %v10539_v13, %v10517_v30  ;;  %v3537_v2 = vrot.slane %v10539_v13, %v10518_v61 }
 0x533   : > { %6958 = vpow2.f32 %v2930_v5  ;;  %v3055_v47 = vsub.f32 2.0, %v3023_v45  ;;  %v4536_v22 = vrot.slane %v4522_v48, %v10523_v42  ;;  %v3541_v44 = vrot.slane %v10539_v13, %v10521_v15 }
 0x534   : > { %v2867_v38 = vsub.f32 0.0, %v2835_v57  ;;  %v4636_v55 = vcombine.low %v3513_v4, %v3517_v10  ;;  %v4637_v49 = vcombine.low %v3521_v23, %v3525_v19  ;;  %v4638_v8 = vcombine.low %v3529_v17, %v3533_v54 }
 0x535   : > { %v10542_v63 = vsub.f32 %v10540_v43, %v10541_v59  ;;  %v3087_v21 = vmul.f32 %v6957_v14, %v3055_v47  ;;  %v4537_v56 = vcombine.low %v4529_v16, %v4536_v22  ;;  %v4639_v53 = vcombine.low %v3537_v2, %v3541_v44  ;;  %v10543_v14 = vld [vmem:[#allocation47_spill] sm:$0xff] }
 0x536   : > { %v2928_v11 = vmul.f32 1.442695, %v2867_v38  ;;  %v4646_v34 = vrot.slane %v4636_v55, %v10523_v42  ;;  %vm3215_vm1 = vcmp.ge.f32.partialorder %v9284_v46, 0.0  ;;  %v4653_v5 = vrot.slane %v4637_v49, %v10523_v42 }
 0x537   : > { %v2771_v29 = vadd.f32 %v10542_v63, %v2707_v62  ;;  %v4660_v12 = vrot.slane %v4638_v8, %v10523_v42  ;;  %v3119_v4 = vmul.f32 %v3087_v21, %v9365_v18  ;;  %5920 = vperm.xlu1 %6808, %v4537_v56   ;;  %v4667_v10 = vrot.slane %v4639_v53, %v10523_v42  ;;  %v10544_v56 = vld [vmem:[#allocation48_spill] sm:$0xff] }
 0x538   : > { %6960 = vpow2.f32 %v2928_v11  ;;  %v3449_v41 = vrot.slane %v10543_v14, %v10512_v0  ;;  %v3453_v57 = vrot.slane %v10543_v14, %v10513_v60  ;;  %v9462_v23 = vsel %vm3205_vm0, %v9389_v3, %v3237_v32 }
 0x539   : > { %v9451_v13 = vadd.f32 %v8776_v9, %v2771_v29  ;;  %v4668_v19 = vcombine.low %v4646_v34, %v4653_v5  ;;  %v3457_v18 = vrot.slane %v10543_v14, %v10514_v26  ;;  %v3151_v45 = vsub.f32 2.0, %v3119_v4 }
 0x53a   : > { %v4669_v48 = vcombine.low %v4660_v12, %v4667_v10  ;;  %v3461_v17 = vrot.slane %v10543_v14, %v10515_v1  ;;  %v3465_v62 = vrot.slane %v10543_v14, %v10516_v51  ;;  %v3469_v3 = vrot.slane %v10543_v14, %v10517_v30 }
 0x53b   : > { %v2837_v9 = vand.u32 2147483647, %v9451_v13  ;;  %v4676_v16 = vrot.slane %v4668_v19, %v10523_v42  ;;  %v3473_v32 = vrot.slane %v10543_v14, %v10518_v61  ;;  %v3183_v54 = vmul.f32 %v3151_v45, %v3087_v21 }
 0x53c   : > { %v4683_v2 = vrot.slane %v4669_v48, %v10523_v42  ;;  %v3477_v47 = vrot.slane %v10543_v14, %v10521_v15  ;;  %v4538_v22 = vcombine.low %v3449_v41, %v3453_v57  ;;  %v4539_v11 = vcombine.low %v3457_v18, %v3461_v17 }
 0x53d   : > { %v2869_v38 = vsub.f32 0.0, %v2837_v9  ;;  %v6959_v31 = vpop.eup %6958  ;;  %v4540_v49 = vcombine.low %v3465_v62, %v3469_v3  ;;  %v3247_v8 = vsub.f32 1.0, %v3183_v54  ;;  %v3641_v53 = vrot.slane %v10544_v56, %v10512_v0  ;;  %v10545_v3 = vld [vmem:[#allocation49_spill] sm:$0xff] }
 0x53e   : > { %v9479_v44 = vadd.f32 1.0, %v6959_v31  ;;  %v4684_v43 = vcombine.low %v4676_v16, %v4683_v2  ;;  %v4541_v59 = vcombine.low %v3473_v32, %v3477_v47  ;;  %v4548_v63 = vrot.slane %v4538_v22, %v10523_v42 }
 0x53f   : > { %v2932_v55 = vmul.f32 1.442695, %v2869_v38  ;;  %v4555_v29 = vrot.slane %v4539_v11, %v10523_v42  ;;  %v4562_v21 = vrot.slane %v4540_v49, %v10523_v42  ;;  %v9489_v34 = vsel %vm3215_vm1, %v3183_v54, %v3247_v8 }
 0x540   : > { %6962 = vrcp.f32 %v9479_v44  ;;  %5929 = vperm.xlu1 %6808, %v4684_v43   ;;  %v4569_v5 = vrot.slane %v4541_v59, %v10523_v42  ;;  %v3645_v12 = vrot.slane %v10544_v56, %v10513_v60  ;;  %v3649_v14 = vrot.slane %v10544_v56, %v10514_v26 }
 0x541   : > { %6964 = vpow2.f32 %v2932_v55  ;;  %v4570_v10 = vcombine.low %v4548_v63, %v4555_v29  ;;  %v3653_v41 = vrot.slane %v10544_v56, %v10515_v1  ;;  %v3657_v46 = vrot.slane %v10544_v56, %v10516_v51 }
 0x542   : > { %v6961_v4 = vpop.eup %6960  ;;  %v4571_v19 = vcombine.low %v4562_v21, %v4569_v5  ;;  %v3661_v9 = vrot.slane %v10544_v56, %v10517_v30  ;;  %v3665_v18 = vrot.slane %v10544_v56, %v10518_v61  ;;  %v3669_v48 = vrot.slane %v10544_v56, %v10521_v15 }
 0x543   : > { %v9500_v57 = vadd.f32 1.0, %v6961_v4  ;;  %v4578_v45 = vrot.slane %v4570_v10, %v10523_v42  ;;  %v4832_v17 = vcombine.low %v3641_v53, %v3645_v12  ;;  %v4833_v62 = vcombine.low %v3649_v14, %v3653_v41  ;;  %v10546_v14 = vld [vmem:[#allocation19_spill] sm:$0xff] }
 0x544   : > { %v4585_v16 = vrot.slane %v4571_v19, %v10523_v42  ;;  %v4834_v38 = vcombine.low %v3657_v46, %v3661_v9  ;;  %v3545_v32 = vrot.slane %v10545_v3, %v10512_v0  ;;  %v4835_v31 = vcombine.low %v3665_v18, %v3669_v48 }
 0x545   : > { %6966 = vrcp.f32 %v9500_v57  ;;  %v4842_v54 = vrot.slane %v4832_v17, %v10523_v42  ;;  %v4849_v2 = vrot.slane %v4833_v62, %v10523_v42  ;;  %v3549_v47 = vrot.slane %v10545_v3, %v10513_v60 }
 0x546   : > { %v4586_v22 = vcombine.low %v4578_v45, %v4585_v16  ;;  %v4856_v55 = vrot.slane %v4834_v38, %v10523_v42  ;;  %v3553_v11 = vrot.slane %v10545_v3, %v10514_v26  ;;  %v3557_v49 = vrot.slane %v10545_v3, %v10515_v1 }
 0x547   : > { %v4863_v8 = vrot.slane %v4835_v31, %v10523_v42  ;;  %v4864_v43 = vcombine.low %v4842_v54, %v4849_v2  ;;  %v3561_v59 = vrot.slane %v10545_v3, %v10516_v51  ;;  %v3565_v63 = vrot.slane %v10545_v3, %v10517_v30 }
 0x548   : > { %5923 = vperm.xlu1 %6808, %v4586_v22   ;;  %v3569_v29 = vrot.slane %v10545_v3, %v10518_v61  ;;  %v3573_v21 = vrot.slane %v10545_v3, %v10521_v15  ;;  %v4685_v56 = vcombine.low %v3545_v32, %v3549_v47  ;;  %v4686_v53 = vcombine.low %v3553_v11, %v3557_v49 }
 0x549   : > { %v4865_v12 = vcombine.low %v4856_v55, %v4863_v8  ;;  %v4872_v4 = vrot.slane %v4864_v43, %v10523_v42  ;;  %v4687_v10 = vcombine.low %v3561_v59, %v3565_v63  ;;  %v3481_v41 = vrot.slane %v10546_v14, %v10512_v0 }
 0x54a   : > { %v6963_v5 = vpop.eup %6962  ;;  %v4688_v9 = vcombine.low %v3569_v29, %v3573_v21  ;;  %v4695_v18 = vrot.slane %v4685_v56, %v10523_v42  ;;  %v4702_v45 = vrot.slane %v4686_v53, %v10523_v42  ;;  %v3485_v16 = vrot.slane %v10546_v14, %v10513_v60 }
 0x54b   : > { %v6965_v46 = vpop.eup %6964  ;;  %v3028_v19 = vmul.f32 %v6963_v5, %v9479_v44  ;;  %v4879_v17 = vrot.slane %v4865_v12, %v10523_v42  ;;  %v4709_v62 = vrot.slane %v4687_v10, %v10523_v42  ;;  %v3489_v31 = vrot.slane %v10546_v14, %v10514_v26 }
 0x54c   : > { %v9537_v48 = vadd.f32 1.0, %v6965_v46  ;;  %v4716_v3 = vrot.slane %v4688_v9, %v10523_v42  ;;  %v4717_v32 = vcombine.low %v4695_v18, %v4702_v45  ;;  %v3493_v2 = vrot.slane %v10546_v14, %v10515_v1  ;;  %v10547_v46 = vld [vmem:[#allocation20_spill] sm:$0xff] }
 0x54d   : > { %v3060_v38 = vsub.f32 2.0, %v3028_v19  ;;  %v4880_v54 = vcombine.low %v4872_v4, %v4879_v17  ;;  %v3497_v47 = vrot.slane %v10546_v14, %v10516_v51  ;;  %v3501_v8 = vrot.slane %v10546_v14, %v10517_v30 }
 0x54e   : > { %6968 = vrcp.f32 %v9537_v48  ;;  %v4718_v11 = vcombine.low %v4709_v62, %v4716_v3  ;;  %v4725_v49 = vrot.slane %v4717_v32, %v10523_v42  ;;  %vm3220_vm2 = vcmp.ge.f32.partialorder %v9392_v52, 0.0 }
 0x54f   : > { %v6967_v22 = vpop.eup %6966  ;;  %v3092_v55 = vmul.f32 %v6963_v5, %v3060_v38  ;;  %5941 = vperm.xlu0 %6809, %v4880_v54   ;;  %v3505_v59 = vrot.slane %v10546_v14, %v10518_v61  ;;  %v3509_v63 = vrot.slane %v10546_v14, %v10521_v15  ;;  %v4587_v29 = vcombine.low %v3481_v41, %v3485_v16 }
 0x550   : > { %v3027_v43 = vmul.f32 %v6967_v22, %v9500_v57  ;;  %v4732_v56 = vrot.slane %v4718_v11, %v10523_v42  ;;  %v4588_v53 = vcombine.low %v3489_v31, %v3493_v2  ;;  %v4589_v5 = vcombine.low %v3497_v47, %v3501_v8 }
 0x551   : > { %v3124_v21 = vmul.f32 %v3092_v55, %v9479_v44  ;;  %v4590_v4 = vcombine.low %v3505_v59, %v3509_v63  ;;  %v4597_v10 = vrot.slane %v4587_v29, %v10523_v42  ;;  %v3673_v19 = vrot.slane %v10547_v46, %v10512_v0 }
 0x552   : > { %v3059_v12 = vsub.f32 2.0, %v3027_v43  ;;  %v4733_v18 = vcombine.low %v4725_v49, %v4732_v56  ;;  %v4604_v45 = vrot.slane %v4588_v53, %v10523_v42  ;;  %v4611_v14 = vrot.slane %v4589_v5, %v10523_v42 }
 0x553   : > { %v3156_v9 = vsub.f32 2.0, %v3124_v21  ;;  %v4618_v44 = vrot.slane %v4590_v4, %v10523_v42  ;;  %v3677_v17 = vrot.slane %v10547_v46, %v10513_v60  ;;  %v3681_v62 = vrot.slane %v10547_v46, %v10514_v26 }
 0x554   : > { %v3091_v41 = vmul.f32 %v6967_v22, %v3059_v12  ;;  %vm3219_vm3 = vcmp.ge.f32.partialorder %v9419_v39, 0.0  ;;  %5932 = vperm.xlu1 %6808, %v4733_v18   ;;  %v4619_v38 = vcombine.low %v4597_v10, %v4604_v45  ;;  %v3685_v3 = vrot.slane %v10547_v46, %v10515_v1 }
 0x555   : > { %v3188_v16 = vmul.f32 %v3156_v9, %v3092_v55  ;;  %v3689_v32 = vrot.slane %v10547_v46, %v10516_v51  ;;  %v4620_v54 = vcombine.low %v4611_v14, %v4618_v44  ;;  %v3693_v2 = vrot.slane %v10547_v46, %v10517_v30  ;;  %v10548_v9 = vld [vmem:[#allocation50_spill] sm:$0xff] }
 0x556   : > { %v3123_v31 = vmul.f32 %v3091_v41, %v9500_v57  ;;  %v3697_v47 = vrot.slane %v10547_v46, %v10518_v61  ;;  %v4627_v55 = vrot.slane %v4619_v38, %v10523_v42  ;;  %v3701_v11 = vrot.slane %v10547_v46, %v10521_v15 }
 0x557   : > { %v3252_v22 = vsub.f32 1.0, %v3188_v16  ;;  %v4881_v49 = vcombine.low %v3673_v19, %v3677_v17  ;;  %v4634_v59 = vrot.slane %v4620_v54, %v10523_v42  ;;  %v4882_v63 = vcombine.low %v3681_v62, %v3685_v3 }
 0x558   : > { %v6969_v8 = vpop.eup %6968  ;;  %v3155_v43 = vsub.f32 2.0, %v3123_v31  ;;  %v4883_v57 = vcombine.low %v3689_v32, %v3693_v2  ;;  %v4884_v56 = vcombine.low %v3697_v47, %v3701_v11  ;;  %v3577_v18 = vrot.slane %v10548_v9, %v10512_v0 }
 0x559   : > { %v9588_v29 = vsel %vm3220_vm2, %v3188_v16, %v3252_v22  ;;  %v3029_v21 = vmul.f32 %v6969_v8, %v9537_v48  ;;  %v4891_v53 = vrot.slane %v4881_v49, %v10523_v42  ;;  %v4635_v12 = vcombine.low %v4627_v55, %v4634_v59  ;;  %v10549_v49 = vld [vmem:[#allocation22_spill] sm:$0xff] }
 0x55a   : > { %v3187_v5 = vmul.f32 %v3155_v43, %v3091_v41  ;;  %v4898_v4 = vrot.slane %v4882_v63, %v10523_v42  ;;  %v4905_v10 = vrot.slane %v4883_v57, %v10523_v42  ;;  %v4912_v19 = vrot.slane %v4884_v56, %v10523_v42 }
 0x55b   : > { %v3061_v46 = vsub.f32 2.0, %v3029_v21  ;;  %v3581_v52 = vrot.slane %v10548_v9, %v10513_v60  ;;  %5926 = vperm.xlu1 %6808, %v4635_v12   ;;  %v3585_v41 = vrot.slane %v10548_v9, %v10514_v26  ;;  %v3589_v44 = vrot.slane %v10548_v9, %v10515_v1 }
 0x55c   : > { %v3251_v45 = vsub.f32 1.0, %v3187_v5  ;;  %v4913_v14 = vcombine.low %v4891_v53, %v4898_v4  ;;  %v4914_v62 = vcombine.low %v4905_v10, %v4912_v19  ;;  %v3593_v16 = vrot.slane %v10548_v9, %v10516_v51 }
 0x55d   : > { %v3093_v17 = vmul.f32 %v6969_v8, %v3061_v46  ;;  %v3597_v38 = vrot.slane %v10548_v9, %v10517_v30  ;;  %vm3221_vm4 = vcmp.ge.f32.partialorder %v9451_v13, 0.0  ;;  %v3601_v31 = vrot.slane %v10548_v9, %v10518_v61 }
 0x55e   : > { %v9609_v3 = vsel %vm3219_vm3, %v3187_v5, %v3251_v45  ;;  %v4921_v32 = vrot.slane %v4913_v14, %v10523_v42  ;;  %v3605_v54 = vrot.slane %v10548_v9, %v10521_v15  ;;  %v4928_v47 = vrot.slane %v4914_v62, %v10523_v42 }
 0x55f   : > { %v3125_v2 = vmul.f32 %v3093_v17, %v9537_v48  ;;  %v4734_v22 = vcombine.low %v3577_v18, %v3581_v52  ;;  %v4735_v55 = vcombine.low %v3585_v41, %v3589_v44  ;;  %v4736_v11 = vcombine.low %v3593_v16, %v3597_v38  ;;  %v10550_v38 = vld [vmem:[#allocation39_spill] sm:$0xff] }
 0x560   : > { %v4737_v39 = vcombine.low %v3601_v31, %v3605_v54  ;;  %v3609_v8 = vrot.slane %v10549_v49, %v10512_v0  ;;  %v3613_v43 = vrot.slane %v10549_v49, %v10513_v60  ;;  %v4929_v63 = vcombine.low %v4921_v32, %v4928_v47 }
 0x561   : > { %v3157_v59 = vsub.f32 2.0, %v3125_v2  ;;  %v4744_v57 = vrot.slane %v4734_v22, %v10523_v42  ;;  %v4751_v21 = vrot.slane %v4735_v55, %v10523_v42  ;;  %v4758_v48 = vrot.slane %v4736_v11, %v10523_v42 }
 0x562   : > { %v4765_v56 = vrot.slane %v4737_v39, %v10523_v42  ;;  %v3617_v53 = vrot.slane %v10549_v49, %v10514_v26  ;;  %v3621_v5 = vrot.slane %v10549_v49, %v10515_v1  ;;  %5944 = vperm.xlu0 %6809, %v4929_v63   ;;  %v3625_v10 = vrot.slane %v10549_v49, %v10516_v51 }
 0x563   : > { %v3189_v12 = vmul.f32 %v3157_v59, %v3093_v17  ;;  %v4766_v4 = vcombine.low %v4744_v57, %v4751_v21  ;;  %v3629_v46 = vrot.slane %v10549_v49, %v10517_v30  ;;  %v3633_v9 = vrot.slane %v10549_v49, %v10518_v61 }
 0x564   : > { %v4767_v19 = vcombine.low %v4758_v48, %v4765_v56  ;;  %v3637_v18 = vrot.slane %v10549_v49, %v10521_v15  ;;  %v4783_v52 = vcombine.low %v3609_v8, %v3613_v43  ;;  %v4784_v41 = vcombine.low %v3617_v53, %v3621_v5 }
 0x565   : > { %v3253_v45 = vsub.f32 1.0, %v3189_v12  ;;  %v4774_v14 = vrot.slane %v4766_v4, %v10523_v42  ;;  %v4785_v44 = vcombine.low %v3625_v10, %v3629_v46  ;;  %v3705_v32 = vrot.slane %v10550_v38, %v10512_v0 }
 0x566   : > { %v4781_v17 = vrot.slane %v4767_v19, %v10523_v42  ;;  %v4786_v62 = vcombine.low %v3633_v9, %v3637_v18  ;;  %v4793_v16 = vrot.slane %v4783_v52, %v10523_v42  ;;  %v4800_v54 = vrot.slane %v4784_v41, %v10523_v42 }
 0x567   : > { %v9646_v31 = vsel %vm3221_vm4, %v3189_v12, %v3253_v45  ;;  %v4807_v2 = vrot.slane %v4785_v44, %v10523_v42  ;;  %v3709_v47 = vrot.slane %v10550_v38, %v10513_v60  ;;  %v3713_v11 = vrot.slane %v10550_v38, %v10514_v26 }
 0x568   : > { %v4782_v22 = vcombine.low %v4774_v14, %v4781_v17  ;;  %v4814_v55 = vrot.slane %v4786_v62, %v10523_v42  ;;  %v3717_v39 = vrot.slane %v10550_v38, %v10515_v1  ;;  %v4815_v49 = vcombine.low %v4793_v16, %v4800_v54 }
 0x569   : > { %v3721_v13 = vrot.slane %v10550_v38, %v10516_v51  ;;  %v3725_v8 = vrot.slane %v10550_v38, %v10517_v30  ;;  %v3729_v43 = vrot.slane %v10550_v38, %v10518_v61  ;;  %v3733_v63 = vrot.slane %v10550_v38, %v10521_v15 }
 0x56a   : > { %5935 = vperm.xlu1 %6808, %v4782_v22   ;;  %v4816_v59 = vcombine.low %v4807_v2, %v4814_v55  ;;  %v4930_v57 = vcombine.low %v3705_v32, %v3709_v47  ;;  %v4931_v21 = vcombine.low %v3713_v11, %v3717_v39  ;;  %v4823_v48 = vrot.slane %v4815_v49, %v10523_v42 }
 0x56b   : > { %v4932_v56 = vcombine.low %v3721_v13, %v3725_v8  ;;  %v3929_v53 = vrot.slane %v9255_v24, %v10512_v0  ;;  %v3933_v5 = vrot.slane %v9255_v24, %v10513_v60  ;;  %v4933_v4 = vcombine.low %v3729_v43, %v3733_v63 }
 0x56c   : > { %v4830_v12 = vrot.slane %v4816_v59, %v10523_v42  ;;  %v4940_v10 = vrot.slane %v4930_v57, %v10523_v42  ;;  %v4947_v46 = vrot.slane %v4931_v21, %v10523_v42  ;;  %v3937_v9 = vrot.slane %v9255_v24, %v10514_v26 }
 0x56d   : > { %v4954_v19 = vrot.slane %v4932_v56, %v10523_v42  ;;  %v3941_v18 = vrot.slane %v9255_v24, %v10515_v1  ;;  %v3945_v52 = vrot.slane %v9255_v24, %v10516_v51  ;;  %v4961_v14 = vrot.slane %v4933_v4, %v10523_v42 }
 0x56e   : > { %v4831_v45 = vcombine.low %v4823_v48, %v4830_v12  ;;  %v4962_v41 = vcombine.low %v4940_v10, %v4947_v46  ;;  %v3949_v44 = vrot.slane %v9255_v24, %v10517_v30  ;;  %v3953_v17 = vrot.slane %v9255_v24, %v10518_v61 }
 0x56f   : > { %v3957_v62 = vrot.slane %v9255_v24, %v10521_v15  ;;  %v5273_v16 = vcombine.low %v3929_v53, %v3933_v5  ;;  %v5274_v38 = vcombine.low %v3937_v9, %v3941_v18  ;;  %v4963_v32 = vcombine.low %v4954_v19, %v4961_v14 }
 0x570   : > { %5938 = vperm.xlu1 %6808, %v4831_v45   ;;  %v4970_v54 = vrot.slane %v4962_v41, %v10523_v42  ;;  %v5275_v2 = vcombine.low %v3945_v52, %v3949_v44  ;;  %v3737_v47 = vrot.slane %v9260_v37, %v10512_v0  ;;  %v3741_v39 = vrot.slane %v9260_v37, %v10513_v60 }
 0x571   : > { %v5276_v22 = vcombine.low %v3953_v17, %v3957_v62  ;;  %v5283_v55 = vrot.slane %v5273_v16, %v10523_v42  ;;  %v5290_v11 = vrot.slane %v5274_v38, %v10523_v42  ;;  %v4977_v24 = vrot.slane %v4963_v32, %v10523_v42 }
 0x572   : > { %v5297_v49 = vrot.slane %v5275_v2, %v10523_v42  ;;  %v3745_v13 = vrot.slane %v9260_v37, %v10514_v26  ;;  %v3749_v8 = vrot.slane %v9260_v37, %v10515_v1  ;;  %v3753_v63 = vrot.slane %v9260_v37, %v10516_v51 }
 0x573   : > { %v5304_v43 = vrot.slane %v5276_v22, %v10523_v42  ;;  %v5305_v59 = vcombine.low %v5283_v55, %v5290_v11  ;;  %v3757_v57 = vrot.slane %v9260_v37, %v10517_v30  ;;  %v4978_v21 = vcombine.low %v4970_v54, %v4977_v24 }
 0x574   : > { %v3761_v48 = vrot.slane %v9260_v37, %v10518_v61  ;;  %v3765_v56 = vrot.slane %v9260_v37, %v10521_v15  ;;  %v4979_v53 = vcombine.low %v3737_v47, %v3741_v39  ;;  %v4980_v4 = vcombine.low %v3745_v13, %v3749_v8 }
 0x575   : > { %v5306_v5 = vcombine.low %v5297_v49, %v5304_v43  ;;  %v5313_v12 = vrot.slane %v5305_v59, %v10523_v42  ;;  %v4981_v10 = vcombine.low %v3753_v63, %v3757_v57  ;;  %5947 = vperm.xlu0 %6809, %v4978_v21   ;;  %v3865_v9 = vrot.slane %v9288_v6, %v10512_v0 }
 0x576   : > { %v4982_v46 = vcombine.low %v3761_v48, %v3765_v56  ;;  %v4989_v19 = vrot.slane %v4979_v53, %v10523_v42  ;;  %v3869_v18 = vrot.slane %v9288_v6, %v10513_v60  ;;  %v4996_v37 = vrot.slane %v4980_v4, %v10523_v42 }
 0x577   : > { %v5320_v52 = vrot.slane %v5306_v5, %v10523_v42  ;;  %v5003_v45 = vrot.slane %v4981_v10, %v10523_v42  ;;  %v3873_v14 = vrot.slane %v9288_v6, %v10514_v26  ;;  %v3877_v44 = vrot.slane %v9288_v6, %v10515_v1 }
 0x578   : > { %v5010_v41 = vrot.slane %v4982_v46, %v10523_v42  ;;  %v3881_v17 = vrot.slane %v9288_v6, %v10516_v51  ;;  %v3885_v62 = vrot.slane %v9288_v6, %v10517_v30  ;;  %v5011_v38 = vcombine.low %v4989_v19, %v4996_v37 }
 0x579   : > { %v5321_v16 = vcombine.low %v5313_v12, %v5320_v52  ;;  %v3889_v32 = vrot.slane %v9288_v6, %v10518_v61  ;;  %v3893_v54 = vrot.slane %v9288_v6, %v10521_v15  ;;  %v5175_v47 = vcombine.low %v3865_v9, %v3869_v18 }
 0x57a   : > { %v5012_v2 = vcombine.low %v5003_v45, %v5010_v41  ;;  %v5176_v22 = vcombine.low %v3873_v14, %v3877_v44  ;;  %v5177_v55 = vcombine.low %v3881_v17, %v3885_v62  ;;  %v5019_v11 = vrot.slane %v5011_v38, %v10523_v42 }
 0x57b   : > { %5968 = vperm.xlu1 %6808, %v5321_v16   ;;  %v5178_v39 = vcombine.low %v3889_v32, %v3893_v54  ;;  %v3897_v24 = vrot.slane %v9242_v25, %v10512_v0  ;;  %v3901_v49 = vrot.slane %v9242_v25, %v10513_v60  ;;  %v5185_v8 = vrot.slane %v5175_v47, %v10523_v42 }
 0x57c   : > { %v5026_v13 = vrot.slane %v5012_v2, %v10523_v42  ;;  %v5192_v6 = vrot.slane %v5176_v22, %v10523_v42  ;;  %v5199_v43 = vrot.slane %v5177_v55, %v10523_v42  ;;  %v3905_v63 = vrot.slane %v9242_v25, %v10514_v26 }
 0x57d   : > { %v5206_v59 = vrot.slane %v5178_v39, %v10523_v42  ;;  %v3909_v57 = vrot.slane %v9242_v25, %v10515_v1  ;;  %v3913_v21 = vrot.slane %v9242_v25, %v10516_v51  ;;  %v3917_v53 = vrot.slane %v9242_v25, %v10517_v30 }
 0x57e   : > { %v5027_v48 = vcombine.low %v5019_v11, %v5026_v13  ;;  %v5207_v56 = vcombine.low %v5185_v8, %v5192_v6  ;;  %v3921_v5 = vrot.slane %v9242_v25, %v10518_v61  ;;  %v3925_v4 = vrot.slane %v9242_v25, %v10521_v15 }
 0x57f   : > { %v5208_v12 = vcombine.low %v5199_v43, %v5206_v59  ;;  %v5224_v10 = vcombine.low %v3897_v24, %v3901_v49  ;;  %v5225_v46 = vcombine.low %v3905_v63, %v3909_v57  ;;  %v5226_v9 = vcombine.low %v3913_v21, %v3917_v53 }
 0x580   : > { %5950 = vperm.xlu0 %6809, %v5027_v48   ;;  %v5215_v19 = vrot.slane %v5207_v56, %v10523_v42  ;;  %v3833_v18 = vrot.slane %v9297_v50, %v10512_v0  ;;  %v3837_v52 = vrot.slane %v9297_v50, %v10513_v60  ;;  %v5227_v45 = vcombine.low %v3921_v5, %v3925_v4 }
 0x581   : > { %v5222_v37 = vrot.slane %v5208_v12, %v10523_v42  ;;  %v5234_v14 = vrot.slane %v5224_v10, %v10523_v42  ;;  %v5241_v41 = vrot.slane %v5225_v46, %v10523_v42  ;;  %v5248_v25 = vrot.slane %v5226_v9, %v10523_v42 }
 0x582   : > { %v3841_v44 = vrot.slane %v9297_v50, %v10514_v26  ;;  %v3845_v17 = vrot.slane %v9297_v50, %v10515_v1  ;;  %v3849_v62 = vrot.slane %v9297_v50, %v10516_v51  ;;  %v5255_v38 = vrot.slane %v5227_v45, %v10523_v42 }
 0x583   : > { %v5223_v16 = vcombine.low %v5215_v19, %v5222_v37  ;;  %v5256_v32 = vcombine.low %v5234_v14, %v5241_v41  ;;  %v3853_v54 = vrot.slane %v9297_v50, %v10517_v30  ;;  %v3857_v2 = vrot.slane %v9297_v50, %v10518_v61 }
 0x584   : > { %v3861_v47 = vrot.slane %v9297_v50, %v10521_v15  ;;  %v5126_v22 = vcombine.low %v3833_v18, %v3837_v52  ;;  %v5127_v55 = vcombine.low %v3841_v44, %v3845_v17  ;;  %v5257_v11 = vcombine.low %v5248_v25, %v5255_v38 }
 0x585   : > { %5962 = vperm.xlu1 %6808, %v5223_v16   ;;  %v5264_v39 = vrot.slane %v5256_v32, %v10523_v42  ;;  %v5128_v24 = vcombine.low %v3849_v62, %v3853_v54  ;;  %v4025_v49 = vrot.slane %v9314_v40, %v10512_v0  ;;  %v4029_v43 = vrot.slane %v9314_v40, %v10513_v60 }
 0x586   : > { %v5129_v13 = vcombine.low %v3857_v2, %v3861_v47  ;;  %v5136_v8 = vrot.slane %v5126_v22, %v10523_v42  ;;  %v5143_v6 = vrot.slane %v5127_v55, %v10523_v42  ;;  %v5271_v50 = vrot.slane %v5257_v11, %v10523_v42 }
 0x587   : > { %v5150_v59 = vrot.slane %v5128_v24, %v10523_v42  ;;  %v4033_v63 = vrot.slane %v9314_v40, %v10514_v26  ;;  %v4037_v57 = vrot.slane %v9314_v40, %v10515_v1  ;;  %v4041_v56 = vrot.slane %v9314_v40, %v10516_v51 }
 0x588   : > { %v5157_v21 = vrot.slane %v5129_v13, %v10523_v42  ;;  %v5158_v48 = vcombine.low %v5136_v8, %v5143_v6  ;;  %v4045_v53 = vrot.slane %v9314_v40, %v10517_v30  ;;  %v5272_v5 = vcombine.low %v5264_v39, %v5271_v50 }
 0x589   : > { %v4049_v12 = vrot.slane %v9314_v40, %v10518_v61  ;;  %v4053_v4 = vrot.slane %v9314_v40, %v10521_v15  ;;  %v5420_v10 = vcombine.low %v4025_v49, %v4029_v43  ;;  %v5421_v9 = vcombine.low %v4033_v63, %v4037_v57 }
 0x58a   : > { %v5159_v46 = vcombine.low %v5150_v59, %v5157_v21  ;;  %v5166_v19 = vrot.slane %v5158_v48, %v10523_v42  ;;  %v5422_v18 = vcombine.low %v4041_v56, %v4045_v53  ;;  %5965 = vperm.xlu0 %6809, %v5272_v5   ;;  %v4057_v45 = vrot.slane %v9338_v58, %v10512_v0 }
 0x58b   : > { %v5423_v52 = vcombine.low %v4049_v12, %v4053_v4  ;;  %v5430_v37 = vrot.slane %v5420_v10, %v10523_v42  ;;  %v4061_v14 = vrot.slane %v9338_v58, %v10513_v60  ;;  %v5437_v40 = vrot.slane %v5421_v9, %v10523_v42 }
 0x58c   : > { %v5173_v41 = vrot.slane %v5159_v46, %v10523_v42  ;;  %v5444_v25 = vrot.slane %v5422_v18, %v10523_v42  ;;  %v4065_v44 = vrot.slane %v9338_v58, %v10514_v26  ;;  %v4069_v62 = vrot.slane %v9338_v58, %v10515_v1 }
 0x58d   : > { %v5451_v17 = vrot.slane %v5423_v52, %v10523_v42  ;;  %v4073_v16 = vrot.slane %v9338_v58, %v10516_v51  ;;  %v4077_v38 = vrot.slane %v9338_v58, %v10517_v30  ;;  %v5452_v54 = vcombine.low %v5430_v37, %v5437_v40 }
 0x58e   : > { %v5174_v32 = vcombine.low %v5166_v19, %v5173_v41  ;;  %v4081_v2 = vrot.slane %v9338_v58, %v10518_v61  ;;  %v4085_v47 = vrot.slane %v9338_v58, %v10521_v15  ;;  %v5469_v55 = vcombine.low %v4057_v45, %v4061_v14 }
 0x58f   : > { %v5453_v22 = vcombine.low %v5444_v25, %v5451_v17  ;;  %v5470_v11 = vcombine.low %v4065_v44, %v4069_v62  ;;  %v5471_v39 = vcombine.low %v4073_v16, %v4077_v38  ;;  %v5460_v24 = vrot.slane %v5452_v54, %v10523_v42 }
 0x590   : > { %5959 = vperm.xlu0 %6809, %v5174_v32   ;;  %v5472_v49 = vcombine.low %v4081_v2, %v4085_v47  ;;  %v3961_v13 = vrot.slane %v9328_v33, %v10512_v0  ;;  %v3965_v8 = vrot.slane %v9328_v33, %v10513_v60  ;;  %v5479_v43 = vrot.slane %v5469_v55, %v10523_v42 }
 0x591   : > { %v5467_v6 = vrot.slane %v5453_v22, %v10523_v42  ;;  %v5486_v58 = vrot.slane %v5470_v11, %v10523_v42  ;;  %v5493_v50 = vrot.slane %v5471_v39, %v10523_v42  ;;  %v3969_v63 = vrot.slane %v9328_v33, %v10514_v26 }
 0x592   : > { %v5500_v59 = vrot.slane %v5472_v49, %v10523_v42  ;;  %v3973_v57 = vrot.slane %v9328_v33, %v10515_v1  ;;  %v3977_v21 = vrot.slane %v9328_v33, %v10516_v51  ;;  %v3981_v53 = vrot.slane %v9328_v33, %v10517_v30 }
 0x593   : > { %v5468_v48 = vcombine.low %v5460_v24, %v5467_v6  ;;  %v5501_v56 = vcombine.low %v5479_v43, %v5486_v58  ;;  %v3985_v5 = vrot.slane %v9328_v33, %v10518_v61  ;;  %v3989_v4 = vrot.slane %v9328_v33, %v10521_v15 }
 0x594   : > { %v5502_v12 = vcombine.low %v5493_v50, %v5500_v59  ;;  %v5322_v10 = vcombine.low %v3961_v13, %v3965_v8  ;;  %v5323_v46 = vcombine.low %v3969_v63, %v3973_v57  ;;  %v5324_v9 = vcombine.low %v3977_v21, %v3981_v53 }
 0x595   : > { %5977 = vperm.xlu0 %6809, %v5468_v48   ;;  %v5509_v19 = vrot.slane %v5501_v56, %v10523_v42  ;;  %v3993_v18 = vrot.slane %v9369_v20, %v10512_v0  ;;  %v3997_v52 = vrot.slane %v9369_v20, %v10513_v60  ;;  %v5325_v45 = vcombine.low %v3985_v5, %v3989_v4 }
 0x596   : > { %v5516_v37 = vrot.slane %v5502_v12, %v10523_v42  ;;  %v5332_v14 = vrot.slane %v5322_v10, %v10523_v42  ;;  %v5339_v41 = vrot.slane %v5323_v46, %v10523_v42  ;;  %v5346_v33 = vrot.slane %v5324_v9, %v10523_v42 }
 0x597   : > { %v4001_v40 = vrot.slane %v9369_v20, %v10514_v26  ;;  %v4005_v25 = vrot.slane %v9369_v20, %v10515_v1  ;;  %v4009_v44 = vrot.slane %v9369_v20, %v10516_v51  ;;  %v5353_v62 = vrot.slane %v5325_v45, %v10523_v42 }
 0x598   : > { %v5517_v17 = vcombine.low %v5509_v19, %v5516_v37  ;;  %v5354_v16 = vcombine.low %v5332_v14, %v5339_v41  ;;  %v4013_v38 = vrot.slane %v9369_v20, %v10517_v30  ;;  %v4017_v32 = vrot.slane %v9369_v20, %v10518_v61 }
 0x599   : > { %v4021_v54 = vrot.slane %v9369_v20, %v10521_v15  ;;  %v5371_v2 = vcombine.low %v3993_v18, %v3997_v52  ;;  %v5372_v47 = vcombine.low %v4001_v40, %v4005_v25  ;;  %v5355_v22 = vcombine.low %v5346_v33, %v5353_v62 }
 0x59a   : > { %5980 = vperm.xlu1 %6808, %v5517_v17   ;;  %v5362_v55 = vrot.slane %v5354_v16, %v10523_v42  ;;  %v5373_v11 = vcombine.low %v4009_v44, %v4013_v38  ;;  %v4089_v39 = vrot.slane %v9332_v27, %v10512_v0  ;;  %v4093_v8 = vrot.slane %v9332_v27, %v10513_v60 }
 0x59b   : > { %v5374_v24 = vcombine.low %v4017_v32, %v4021_v54  ;;  %v5381_v49 = vrot.slane %v5371_v2, %v10523_v42  ;;  %v5388_v13 = vrot.slane %v5372_v47, %v10523_v42  ;;  %v5369_v20 = vrot.slane %v5355_v22, %v10523_v42 }
 0x59c   : > { %v5395_v6 = vrot.slane %v5373_v11, %v10523_v42  ;;  %v4097_v43 = vrot.slane %v9332_v27, %v10514_v26  ;;  %v4101_v58 = vrot.slane %v9332_v27, %v10515_v1  ;;  %v4105_v63 = vrot.slane %v9332_v27, %v10516_v51 }
 0x59d   : > { %v5402_v50 = vrot.slane %v5374_v24, %v10523_v42  ;;  %v5403_v59 = vcombine.low %v5381_v49, %v5388_v13  ;;  %v4109_v57 = vrot.slane %v9332_v27, %v10517_v30  ;;  %v5370_v21 = vcombine.low %v5362_v55, %v5369_v20 }
 0x59e   : > { %v4113_v48 = vrot.slane %v9332_v27, %v10518_v61  ;;  %v4117_v56 = vrot.slane %v9332_v27, %v10521_v15  ;;  %v5518_v53 = vcombine.low %v4089_v39, %v4093_v8  ;;  %v5519_v4 = vcombine.low %v4097_v43, %v4101_v58 }
 0x59f   : > { %v5404_v5 = vcombine.low %v5395_v6, %v5402_v50  ;;  %v5411_v12 = vrot.slane %v5403_v59, %v10523_v42  ;;  %v5520_v10 = vcombine.low %v4105_v63, %v4109_v57  ;;  %5971 = vperm.xlu0 %6809, %v5370_v21   ;;  %v4153_v9 = vrot.slane %v9318_v7, %v10512_v0 }
 0x5a0   : > { %v5521_v46 = vcombine.low %v4113_v48, %v4117_v56  ;;  %v5528_v19 = vrot.slane %v5518_v53, %v10523_v42  ;;  %v4157_v18 = vrot.slane %v9318_v7, %v10513_v60  ;;  %v5535_v27 = vrot.slane %v5519_v4, %v10523_v42 }
 0x5a1   : > { %v5418_v52 = vrot.slane %v5404_v5, %v10523_v42  ;;  %v5542_v37 = vrot.slane %v5520_v10, %v10523_v42  ;;  %v4161_v45 = vrot.slane %v9318_v7, %v10514_v26  ;;  %v4165_v41 = vrot.slane %v9318_v7, %v10515_v1 }
 0x5a2   : > { %v5549_v14 = vrot.slane %v5521_v46, %v10523_v42  ;;  %v4169_v33 = vrot.slane %v9318_v7, %v10516_v51  ;;  %v4173_v40 = vrot.slane %v9318_v7, %v10517_v30  ;;  %v5550_v44 = vcombine.low %v5528_v19, %v5535_v27 }
 0x5a3   : > { %v5419_v25 = vcombine.low %v5411_v12, %v5418_v52  ;;  %v4177_v17 = vrot.slane %v9318_v7, %v10518_v61  ;;  %v4181_v62 = vrot.slane %v9318_v7, %v10521_v15  ;;  %v5616_v38 = vcombine.low %v4153_v9, %v4157_v18 }
 0x5a4   : > { %v5551_v16 = vcombine.low %v5542_v37, %v5549_v14  ;;  %v5617_v32 = vcombine.low %v4161_v45, %v4165_v41  ;;  %v5618_v54 = vcombine.low %v4169_v33, %v4173_v40  ;;  %v5558_v2 = vrot.slane %v5550_v44, %v10523_v42 }
 0x5a5   : > { %5974 = vperm.xlu1 %6808, %v5419_v25   ;;  %v5619_v47 = vcombine.low %v4177_v17, %v4181_v62  ;;  %v3769_v22 = vrot.slane %v9249_v28, %v10512_v0  ;;  %v3773_v55 = vrot.slane %v9249_v28, %v10513_v60  ;;  %v5626_v39 = vrot.slane %v5616_v38, %v10523_v42 }
 0x5a6   : > { %v5565_v11 = vrot.slane %v5551_v16, %v10523_v42  ;;  %v5633_v7 = vrot.slane %v5617_v32, %v10523_v42  ;;  %v5640_v24 = vrot.slane %v5618_v54, %v10523_v42  ;;  %v3777_v13 = vrot.slane %v9249_v28, %v10514_v26 }
 0x5a7   : > { %v5647_v49 = vrot.slane %v5619_v47, %v10523_v42  ;;  %v3781_v8 = vrot.slane %v9249_v28, %v10515_v1  ;;  %v3785_v20 = vrot.slane %v9249_v28, %v10516_v51  ;;  %v3789_v58 = vrot.slane %v9249_v28, %v10517_v30 }
 0x5a8   : > { %v5566_v6 = vcombine.low %v5558_v2, %v5565_v11  ;;  %v5648_v43 = vcombine.low %v5626_v39, %v5633_v7  ;;  %v3793_v50 = vrot.slane %v9249_v28, %v10518_v61  ;;  %v3797_v63 = vrot.slane %v9249_v28, %v10521_v15 }
 0x5a9   : > { %v5649_v59 = vcombine.low %v5640_v24, %v5647_v49  ;;  %v5028_v57 = vcombine.low %v3769_v22, %v3773_v55  ;;  %v5029_v21 = vcombine.low %v3777_v13, %v3781_v8  ;;  %v5030_v56 = vcombine.low %v3785_v20, %v3789_v58 }
 0x5aa   : > { %5983 = vperm.xlu0 %6809, %v5566_v6   ;;  %v5656_v48 = vrot.slane %v5648_v43, %v10523_v42  ;;  %v4185_v53 = vrot.slane %v9405_v36, %v10512_v0  ;;  %v4189_v5 = vrot.slane %v9405_v36, %v10513_v60  ;;  %v5031_v4 = vcombine.low %v3793_v50, %v3797_v63 }
 0x5ab   : > { %v5663_v12 = vrot.slane %v5649_v59, %v10523_v42  ;;  %v5038_v10 = vrot.slane %v5028_v57, %v10523_v42  ;;  %v5045_v46 = vrot.slane %v5029_v21, %v10523_v42  ;;  %v5052_v28 = vrot.slane %v5030_v56, %v10523_v42 }
 0x5ac   : > { %v4193_v19 = vrot.slane %v9405_v36, %v10514_v26  ;;  %v4197_v9 = vrot.slane %v9405_v36, %v10515_v1  ;;  %v4201_v18 = vrot.slane %v9405_v36, %v10516_v51  ;;  %v5059_v27 = vrot.slane %v5031_v4, %v10523_v42 }
 0x5ad   : > { %v5664_v52 = vcombine.low %v5656_v48, %v5663_v12  ;;  %v5060_v37 = vcombine.low %v5038_v10, %v5045_v46  ;;  %v4205_v45 = vrot.slane %v9405_v36, %v10517_v30  ;;  %v4209_v14 = vrot.slane %v9405_v36, %v10518_v61 }
 0x5ae   : > { %v4213_v41 = vrot.slane %v9405_v36, %v10521_v15  ;;  %v5665_v33 = vcombine.low %v4185_v53, %v4189_v5  ;;  %v5666_v40 = vcombine.low %v4193_v19, %v4197_v9  ;;  %v5061_v25 = vcombine.low %v5052_v28, %v5059_v27 }
 0x5af   : > { %5989 = vperm.xlu1 %6808, %v5664_v52   ;;  %v5068_v44 = vrot.slane %v5060_v37, %v10523_v42  ;;  %v5667_v17 = vcombine.low %v4201_v18, %v4205_v45  ;;  %v3801_v62 = vrot.slane %v9462_v23, %v10512_v0  ;;  %v3805_v54 = vrot.slane %v9462_v23, %v10513_v60 }
 0x5b0   : > { %v5668_v16 = vcombine.low %v4209_v14, %v4213_v41  ;;  %v5675_v38 = vrot.slane %v5665_v33, %v10523_v42  ;;  %v5682_v32 = vrot.slane %v5666_v40, %v10523_v42  ;;  %v5075_v36 = vrot.slane %v5061_v25, %v10523_v42 }
 0x5b1   : > { %v5689_v2 = vrot.slane %v5667_v17, %v10523_v42  ;;  %v3809_v47 = vrot.slane %v9462_v23, %v10514_v26  ;;  %v3813_v22 = vrot.slane %v9462_v23, %v10515_v1  ;;  %v3817_v39 = vrot.slane %v9462_v23, %v10516_v51 }
 0x5b2   : > { %v5696_v55 = vrot.slane %v5668_v16, %v10523_v42  ;;  %v5697_v11 = vcombine.low %v5675_v38, %v5682_v32  ;;  %v3821_v7 = vrot.slane %v9462_v23, %v10517_v30  ;;  %v5076_v24 = vcombine.low %v5068_v44, %v5075_v36 }
 0x5b3   : > { %v3825_v49 = vrot.slane %v9462_v23, %v10518_v61  ;;  %v3829_v13 = vrot.slane %v9462_v23, %v10521_v15  ;;  %v5077_v8 = vcombine.low %v3801_v62, %v3805_v54  ;;  %v5078_v43 = vcombine.low %v3809_v47, %v3813_v22 }
 0x5b4   : > { %v5698_v20 = vcombine.low %v5689_v2, %v5696_v55  ;;  %v5705_v6 = vrot.slane %v5697_v11, %v10523_v42  ;;  %v5079_v58 = vcombine.low %v3817_v39, %v3821_v7  ;;  %5953 = vperm.xlu0 %6809, %v5076_v24   ;;  %v4121_v63 = vrot.slane %v9489_v34, %v10512_v0 }
 0x5b5   : > { %v5080_v50 = vcombine.low %v3825_v49, %v3829_v13  ;;  %v5087_v59 = vrot.slane %v5077_v8, %v10523_v42  ;;  %v4125_v57 = vrot.slane %v9489_v34, %v10513_v60  ;;  %v5094_v23 = vrot.slane %v5078_v43, %v10523_v42 }
 0x5b6   : > { %v5712_v21 = vrot.slane %v5698_v20, %v10523_v42  ;;  %v5101_v48 = vrot.slane %v5079_v58, %v10523_v42  ;;  %v4129_v56 = vrot.slane %v9489_v34, %v10514_v26  ;;  %v4133_v5 = vrot.slane %v9489_v34, %v10515_v1 }
 0x5b7   : > { %v5108_v53 = vrot.slane %v5080_v50, %v10523_v42  ;;  %v4137_v12 = vrot.slane %v9489_v34, %v10516_v51  ;;  %v4141_v4 = vrot.slane %v9489_v34, %v10517_v30  ;;  %v5109_v46 = vcombine.low %v5087_v59, %v5094_v23 }
 0x5b8   : > { %v5713_v10 = vcombine.low %v5705_v6, %v5712_v21  ;;  %v4145_v28 = vrot.slane %v9489_v34, %v10518_v61  ;;  %v4149_v19 = vrot.slane %v9489_v34, %v10521_v15  ;;  %v5567_v18 = vcombine.low %v4121_v63, %v4125_v57 }
 0x5b9   : > { %v5110_v9 = vcombine.low %v5101_v48, %v5108_v53  ;;  %v5568_v52 = vcombine.low %v4129_v56, %v4133_v5  ;;  %v5569_v27 = vcombine.low %v4137_v12, %v4141_v4  ;;  %v5117_v37 = vrot.slane %v5109_v46, %v10523_v42 }
 0x5ba   : > { %5992 = vperm.xlu1 %6808, %v5713_v10   ;;  %v5570_v45 = vcombine.low %v4145_v28, %v4149_v19  ;;  %v4281_v14 = vrot.slane %v9588_v29, %v10512_v0  ;;  %v4285_v41 = vrot.slane %v9588_v29, %v10513_v60  ;;  %v5577_v40 = vrot.slane %v5567_v18, %v10523_v42 }
 0x5bb   : > { %v5124_v33 = vrot.slane %v5110_v9, %v10523_v42  ;;  %v5584_v34 = vrot.slane %v5568_v52, %v10523_v42  ;;  %v5591_v25 = vrot.slane %v5569_v27, %v10523_v42  ;;  %v4289_v17 = vrot.slane %v9588_v29, %v10514_v26 }
 0x5bc   : > { %v5598_v44 = vrot.slane %v5570_v45, %v10523_v42  ;;  %v4293_v62 = vrot.slane %v9588_v29, %v10515_v1  ;;  %v4297_v16 = vrot.slane %v9588_v29, %v10516_v51  ;;  %v4301_v54 = vrot.slane %v9588_v29, %v10517_v30 }
 0x5bd   : > { %v5125_v38 = vcombine.low %v5117_v37, %v5124_v33  ;;  %v5599_v32 = vcombine.low %v5577_v40, %v5584_v34  ;;  %v4305_v36 = vrot.slane %v9588_v29, %v10518_v61  ;;  %v4309_v47 = vrot.slane %v9588_v29, %v10521_v15 }
 0x5be   : > { %v5600_v2 = vcombine.low %v5591_v25, %v5598_v44  ;;  %v5812_v22 = vcombine.low %v4281_v14, %v4285_v41  ;;  %v5813_v55 = vcombine.low %v4289_v17, %v4293_v62  ;;  %v5814_v39 = vcombine.low %v4297_v16, %v4301_v54 }
 0x5bf   : > { %5956 = vperm.xlu0 %6809, %v5125_v38   ;;  %v5607_v11 = vrot.slane %v5599_v32, %v10523_v42  ;;  %v4217_v7 = vrot.slane %v9377_v35, %v10512_v0  ;;  %v4221_v24 = vrot.slane %v9377_v35, %v10513_v60  ;;  %v5815_v13 = vcombine.low %v4305_v36, %v4309_v47 }
 0x5c0   : > { %v5614_v49 = vrot.slane %v5600_v2, %v10523_v42  ;;  %v5822_v8 = vrot.slane %v5812_v22, %v10523_v42  ;;  %v5829_v20 = vrot.slane %v5813_v55, %v10523_v42  ;;  %v5836_v29 = vrot.slane %v5814_v39, %v10523_v42 }
 0x5c1   : > { %v4225_v6 = vrot.slane %v9377_v35, %v10514_v26  ;;  %v4229_v43 = vrot.slane %v9377_v35, %v10515_v1  ;;  %v4233_v58 = vrot.slane %v9377_v35, %v10516_v51  ;;  %v5843_v59 = vrot.slane %v5815_v13, %v10523_v42 }
 0x5c2   : > { %v5615_v50 = vcombine.low %v5607_v11, %v5614_v49  ;;  %v5844_v63 = vcombine.low %v5822_v8, %v5829_v20  ;;  %v4237_v57 = vrot.slane %v9377_v35, %v10517_v30  ;;  %v4241_v21 = vrot.slane %v9377_v35, %v10518_v61 }
 0x5c3   : > { %v4245_v23 = vrot.slane %v9377_v35, %v10521_v15  ;;  %v5714_v48 = vcombine.low %v4217_v7, %v4221_v24  ;;  %v5715_v56 = vcombine.low %v4225_v6, %v4229_v43  ;;  %v5845_v53 = vcombine.low %v5836_v29, %v5843_v59 }
 0x5c4   : > { %5986 = vperm.xlu1 %6808, %v5615_v50   ;;  %v5852_v5 = vrot.slane %v5844_v63, %v10523_v42  ;;  %v5716_v12 = vcombine.low %v4233_v58, %v4237_v57  ;;  %v4249_v4 = vrot.slane %v9609_v3, %v10512_v0  ;;  %v4253_v19 = vrot.slane %v9609_v3, %v10513_v60  ;;  %v5918_v63 = vpop.permute.xlu1 %5917 }
 0x5c5   : > { %v5717_v10 = vcombine.low %v4241_v21, %v4245_v23  ;;  %v5724_v46 = vrot.slane %v5714_v48, %v10523_v42  ;;  %v5731_v28 = vrot.slane %v5715_v56, %v10523_v42  ;;  %v5859_v35 = vrot.slane %v5845_v53, %v10523_v42 }
 0x5c6   : > { %v5738_v9 = vrot.slane %v5716_v12, %v10523_v42  ;;  %v4257_v18 = vrot.slane %v9609_v3, %v10514_v26  ;;  %v4261_v52 = vrot.slane %v9609_v3, %v10515_v1  ;;  %v4265_v45 = vrot.slane %v9609_v3, %v10516_v51 }
 0x5c7   : > { %v5745_v27 = vrot.slane %v5717_v10, %v10523_v42  ;;  %v5746_v37 = vcombine.low %v5724_v46, %v5731_v28  ;;  %v4269_v14 = vrot.slane %v9609_v3, %v10517_v30  ;;  %v5860_v41 = vcombine.low %v5852_v5, %v5859_v35  ;;  %v5915_v5 = vpop.permute.xlu0 %5914 }
 0x5c8   : > { %v4273_v33 = vrot.slane %v9609_v3, %v10518_v61  ;;  %v4277_v40 = vrot.slane %v9609_v3, %v10521_v15  ;;  %v5763_v34 = vcombine.low %v4249_v4, %v4253_v19  ;;  %v5764_v17 = vcombine.low %v4257_v18, %v4261_v52  ;;  %v5912_v57 = vpop.permute.xlu1 %5911 }
 0x5c9   : > { %v5747_v25 = vcombine.low %v5738_v9, %v5745_v27  ;;  %v5754_v44 = vrot.slane %v5746_v37, %v10523_v42  ;;  %v5765_v62 = vcombine.low %v4265_v45, %v4269_v14  ;;  %6001 = vperm.xlu1 %6808, %v5860_v41   ;;  %v4313_v32 = vrot.slane %v9646_v31, %v10512_v0  ;;  %v10551_v37 = vld [vmem:[#allocation42_spill] sm:$0xff]  ;;  %v10552_v41 = vld [vmem:[#allocation9_spill] sm:$0xff] }
 0x5ca   : > { %v5766_v16 = vcombine.low %v4273_v33, %v4277_v40  ;;  %v5773_v38 = vrot.slane %v5763_v34, %v10523_v42  ;;  %v4317_v54 = vrot.slane %v9646_v31, %v10513_v60  ;;  %v5780_v3 = vrot.slane %v5764_v17, %v10523_v42 }
 0x5cb   : > { %v5761_v36 = vrot.slane %v5747_v25, %v10523_v42  ;;  %v5787_v2 = vrot.slane %v5765_v62, %v10523_v42  ;;  %v4321_v47 = vrot.slane %v9646_v31, %v10514_v26  ;;  %v4325_v55 = vrot.slane %v9646_v31, %v10515_v1 }
 0x5cc   : > { %v5794_v22 = vrot.slane %v5766_v16, %v10523_v42  ;;  %v4329_v0 = vrot.slane %v9646_v31, %v10516_v51  ;;  %v4333_v60 = vrot.slane %v9646_v31, %v10517_v30  ;;  %v5795_v39 = vcombine.low %v5773_v38, %v5780_v3  ;;  %v5921_v21 = vpop.permute.xlu1 %5920 }
 0x5cd   : > { %v5762_v11 = vcombine.low %v5754_v44, %v5761_v36  ;;  %v4337_v7 = vrot.slane %v9646_v31, %v10518_v61  ;;  %v4341_v24 = vrot.slane %v9646_v31, %v10521_v15  ;;  %v5861_v49 = vcombine.low %v4313_v32, %v4317_v54 }
 0x5ce   : > { %v5796_v26 = vcombine.low %v5787_v2, %v5794_v22  ;;  %v5862_v13 = vcombine.low %v4321_v47, %v4325_v55  ;;  %v5863_v8 = vcombine.low %v4329_v0, %v4333_v60  ;;  %v5803_v1 = vrot.slane %v5795_v39, %v10523_v42  ;;  %v10099_v12 = vpop.permute.xlu0 %5941 }
 0x5cf   : > { %5995 = vperm.xlu1 %6808, %v5762_v11   ;;  %v5864_v20 = vcombine.low %v4337_v7, %v4341_v24  ;;  %v5871_v30 = vrot.slane %v5861_v49, %v10523_v42  ;;  %v6010_v45 = vadd.s32 4294967288, %v10551_v37  ;;  %v6008_v40 = vsub.s32 %v10551_v37, %v10552_v41 }
 0x5d0   : > { %v5810_v51 = vrot.slane %v5796_v26, %v10523_v42  ;;  %v5878_v29 = vrot.slane %v5862_v13, %v10523_v42  ;;  %v5885_v6 = vrot.slane %v5863_v8, %v10523_v42  ;;  %v10091_v23 = vpop.permute.xlu1 %5929  ;;  %v6017_v25 = vadd.s32 4294967280, %v10551_v37 }
 0x5d1   : > { %v5892_v61 = vrot.slane %v5864_v20, %v10523_v42  ;;  %v6013_v33 = vsub.s32 %v6010_v45, %v10552_v41  ;;  %v6024_v44 = vadd.s32 4294967272, %v10551_v37  ;;  %v6031_v16 = vadd.s32 4294967264, %v10551_v37 }
 0x5d2   : > { %v5811_v43 = vcombine.low %v5803_v1, %v5810_v51  ;;  %v5893_v15 = vcombine.low %v5871_v30, %v5878_v29  ;;  %v6009_v32 = vrot.slane %v5912_v57, %v6008_v40  ;;  %v6038_v54 = vadd.s32 4294967256, %v10551_v37 }
 0x5d3   : > { %v5894_v31 = vcombine.low %v5885_v6, %v5892_v61  ;;  %v6014_v38 = vrot.slane %v5915_v5, %v6013_v33  ;;  %v6020_v3 = vsub.s32 %v6017_v25, %v10552_v41  ;;  %vm6015_vm12 = vcmask 130112  }
 0x5d4   : > { %5998 = vperm.xlu1 %6808, %v5811_v43   ;;  %v5901_v58 = vrot.slane %v5893_v15, %v10523_v42  ;;  %v10093_v48 = vpop.permute.xlu1 %5923  ;;  %v6027_v2 = vsub.s32 %v6024_v44, %v10552_v41  ;;  %v6034_v55 = vsub.s32 %v6031_v16, %v10552_v41  ;;  %vm6022_vm5 = vcmask 195712  }
 0x5d5   : > { %v5908_v50 = vrot.slane %v5894_v31, %v10523_v42  ;;  %v6016_v60 = vsel %vm6015_vm12, %v6014_v38, %v6009_v32  ;;  %v6041_v11 = vsub.s32 %v6038_v54, %v10552_v41  ;;  %v6021_v7 = vrot.slane %v5918_v63, %v6020_v3 }
 0x5d6   : > { %v6045_v24 = vadd.s32 4294967248, %v10551_v37  ;;  %v6028_v13 = vrot.slane %v5921_v21, %v6027_v2  ;;  %vm6029_vm6 = vcmask 261312   ;;  %vm6036_vm7 = vcmask 326912  }
 0x5d7   : > { %v5909_v59 = vcombine.low %v5901_v58, %v5908_v50  ;;  %v6023_v1 = vsel %vm6022_vm5, %v6021_v7, %v6016_v60  ;;  %v6035_v20 = vrot.slane %v10093_v48, %v6034_v55  ;;  %v6052_v51 = vadd.s32 4294967240, %v10551_v37 }
 0x5d8   : > { %v10095_v56 = vpop.permute.xlu1 %5932  ;;  %v6048_v61 = vsub.s32 %v6045_v24, %v10552_v41  ;;  %vm6043_vm8 = vcmask 392512   ;;  %v6059_v43 = vadd.s32 4294967232, %v10551_v37  ;;  %v6030_v31 = vsel %vm6029_vm6, %v6028_v13, %v6023_v1 }
 0x5d9   : > { %6004 = vperm.xlu1 %6808, %v5909_v59   ;;  %v6066_v58 = vadd.s32 4294967224, %v10551_v37  ;;  %v6037_v59 = vsel %vm6036_vm7, %v6035_v20, %v6030_v31  ;;  %v6055_v63 = vsub.s32 %v6052_v51, %v10552_v41  ;;  %vm6050_vm9 = vcmask 458112  }
 0x5da   : > { %v6049_v48 = vrot.slane %v10091_v23, %v6048_v61  ;;  %vm6057_vm10 = vcmask 523712   ;;  %vm6064_vm11 = vcmask 589312   ;;  %v6080_v23 = vadd.s32 4294967208, %v10551_v37 }
 0x5db   : > { %vm6071_vm13 = vcmask 654912   ;;  %v6087_v54 = vadd.s32 4294967200, %v10551_v37  ;;  %vm6078_vm14 = vcmask 720512   ;;  %vm6085_vm15 = vcmask 786112  }
 0x5dc   : > { %v10097_v53 = vpop.permute.xlu1 %5926  ;;  %vm6092_vm0 = vcmask 851712   ;;  %vm6099_vm1 = vcmask 917312   ;;  %vm6106_vm2 = vcmask 982912   ;;  %vm6113_vm3 = vcmask 1048512  }
 0x5dd   : > { %v6042_v30 = vrot.slane %v10097_v53, %v6041_v11  ;;  %v6062_v53 = vsub.s32 %v6059_v43, %v10552_v41  ;;  %v6090_v60 = vsub.s32 %v6087_v54, %v10552_v41 }
 0x5df   : > { %v6044_v57 = vsel %vm6043_vm8, %v6042_v30, %v6037_v59 }
 0x5e1   : > { %v10103_v10 = vpop.permute.xlu0 %5944 }
 0x5e9   : > { %v10101_v4 = vpop.permute.xlu1 %5935 }
 0x5ea   : > { %v6063_v25 = vrot.slane %v10101_v4, %v6062_v53  ;;  %v6101_v4 = vadd.s32 4294967184, %v10551_v37 }
 0x5ef   : > { %v10105_v46 = vpop.permute.xlu1 %5938 }
 0x5f4   : > { %v10107_v28 = vpop.permute.xlu0 %5947 }
 0x5fa   : > { %v5969_v19 = vpop.permute.xlu1 %5968 }
 0x5fb   : > { %v6132_v8 = vrot.slane %v5969_v19, %v6027_v2  ;;  %v6069_v19 = vsub.s32 %v6066_v58, %v10552_v41 }
 0x5ff   : > { %v10109_v35 = vpop.permute.xlu0 %5950 }
 0x604   : > { %v5963_v9 = vpop.permute.xlu1 %5962 }
 0x605   : > { %v6122_v36 = vrot.slane %v5963_v9, %v6013_v33 }
 0x609   : > { %v5966_v18 = vpop.permute.xlu0 %5965 }
 0x60a   : > { %v6127_v0 = vrot.slane %v5966_v18, %v6020_v3  ;;  %v6073_v18 = vadd.s32 4294967216, %v10551_v37 }
 0x60c   : > { %v6076_v32 = vsub.s32 %v6073_v18, %v10552_v41 }
 0x60f   : > { %v5960_v27 = vpop.permute.xlu0 %5959 }
 0x610   : > { %v6118_v17 = vrot.slane %v5960_v27, %v6008_v40  ;;  %v6051_v27 = vsel %vm6050_vm9, %v6049_v48, %v6044_v57  ;;  %v10553_v48 = vlaneseq }
 0x612   : > { %v6123_v47 = vsel %vm6015_vm12, %v6122_v36, %v6118_v17  ;;  %v6070_v17 = vrot.slane %v10105_v46, %v6069_v19  ;;  %v6083_v36 = vsub.s32 %v6080_v23, %v10552_v41  ;;  %vm6212_vm4 = vcmp.lt.s32.totalorder %v10553_v48, 256 }
 0x613   : > { %v6128_v26 = vsel %vm6022_vm5, %v6127_v0, %v6123_v47  ;;  %v6077_v0 = vrot.slane %v10099_v12, %v6076_v32 }
 0x614   : > { %v5978_v34 = vpop.permute.xlu0 %5977  ;;  %v6133_v6 = vsel %vm6029_vm6, %v6132_v8, %v6128_v26  ;;  %v6104_v26 = vsub.s32 %v6101_v4, %v10552_v41  ;;  %v6084_v8 = vrot.slane %v10103_v10, %v6083_v36 }
 0x615   : > { %v6147_v5 = vrot.slane %v5978_v34, %v6048_v61 }
 0x619   : > { %v10111_v52 = vpop.permute.xlu1 %5980 }
 0x61a   : > { %v6152_v33 = vrot.slane %v10111_v52, %v6055_v63 }
 0x61e   : > { %v5972_v22 = vpop.permute.xlu0 %5971 }
 0x61f   : > { %v6137_v49 = vrot.slane %v5972_v22, %v6034_v55  ;;  %v6108_v55 = vadd.s32 4294967176, %v10551_v37 }
 0x621   : > { %v6138_v15 = vsel %vm6036_vm7, %v6137_v49, %v6133_v6  ;;  %v6091_v6 = vrot.slane %v10107_v28, %v6090_v60 }
 0x624   : > { %v5975_v14 = vpop.permute.xlu1 %5974 }
 0x625   : > { %v6142_v29 = vrot.slane %v5975_v14, %v6041_v11  ;;  %v6056_v14 = vrot.slane %v10095_v56, %v6055_v63  ;;  %v6094_v56 = vadd.s32 4294967192, %v10551_v37  ;;  %v6111_v37 = vsub.s32 %v6108_v55, %v10552_v41 }
 0x627   : > { %v6143_v21 = vsel %vm6043_vm8, %v6142_v29, %v6138_v15  ;;  %v6058_v34 = vsel %vm6057_vm10, %v6056_v14, %v6051_v27  ;;  %v6097_v7 = vsub.s32 %v6094_v56, %v10552_v41 }
 0x628   : > { %v6148_v45 = vsel %vm6050_vm9, %v6147_v5, %v6143_v21  ;;  %v6065_v52 = vsel %vm6064_vm11, %v6063_v25, %v6058_v34 }
 0x629   : > { %v5984_v9 = vpop.permute.xlu0 %5983  ;;  %v6153_v16 = vsel %vm6057_vm10, %v6152_v33, %v6148_v45  ;;  %v6072_v22 = vsel %vm6071_vm13, %v6070_v17, %v6065_v52  ;;  %v6098_v30 = vrot.slane %v10109_v35, %v6097_v7 }
 0x62a   : > { %v6157_v44 = vrot.slane %v5984_v9, %v6062_v53  ;;  %v6079_v24 = vsel %vm6078_vm14, %v6077_v0, %v6072_v22 }
 0x62c   : > { %v6158_v3 = vsel %vm6064_vm11, %v6157_v44, %v6153_v16 }
 0x62e   : > { %v10119_v62 = vpop.permute.xlu1 %5989 }
 0x62f   : > { %v6167_v11 = vrot.slane %v10119_v62, %v6076_v32  ;;  %v6086_v62 = vsel %vm6085_vm15, %v6084_v8, %v6079_v24 }
 0x630   : > { %v6093_v43 = vsel %vm6092_vm0, %v6091_v6, %v6086_v62 }
 0x631   : > { %v6100_v58 = vsel %vm6099_vm1, %v6098_v30, %v6093_v43 }
 0x633   : > { %v5954_v2 = vpop.permute.xlu0 %5953 }
 0x634   : > { %v6105_v10 = vrot.slane %v5954_v2, %v6104_v26 }
 0x639   : > { %v10127_v39 = vpop.permute.xlu1 %5992 }
 0x63a   : > { %v6172_v1 = vrot.slane %v10127_v39, %v6083_v36 }
 0x63e   : > { %v5957_v20 = vpop.permute.xlu0 %5956 }
 0x63f   : > { %v6112_v39 = vrot.slane %v5957_v20, %v6111_v37 }
 0x643   : > { %v5987_v50 = vpop.permute.xlu1 %5986 }
 0x644   : > { %v6162_v38 = vrot.slane %v5987_v50, %v6069_v19  ;;  %v6107_v50 = vsel %vm6106_vm2, %v6105_v10, %v6100_v58 }
 0x645   : > { %v6114_v28 = vsel %vm6113_vm3, %v6112_v39, %v6107_v50 }
 0x646   : > { %v6163_v46 = vsel %vm6071_vm13, %v6162_v38, %v6158_v3 }
 0x647   : > { %v6168_v49 = vsel %vm6078_vm14, %v6167_v11, %v6163_v46 }
 0x648   : > { %v6002_v40 = vpop.permute.xlu1 %6001  ;;  %v6173_v29 = vsel %vm6085_vm15, %v6172_v1, %v6168_v49 }
 0x649   : > { %v6187_v15 = vrot.slane %v6002_v40, %v6104_v26 }
 0x64e   : > { %v5996_v47 = vpop.permute.xlu1 %5995 }
 0x64f   : > { %v6177_v13 = vrot.slane %v5996_v47, %v6090_v60 }
 0x651   : > { %v6178_v61 = vsel %vm6092_vm0, %v6177_v13, %v6173_v29 }
 0x653   : > { %v5999_v12 = vpop.permute.xlu1 %5998 }
 0x654   : > { %v6182_v51 = vrot.slane %v5999_v12, %v6097_v7 }
 0x656   : > { %v6183_v41 = vsel %vm6099_vm1, %v6182_v51, %v6178_v61 }
 0x657   : > { %v6188_v59 = vsel %vm6106_vm2, %v6187_v15, %v6183_v41 }
 0x658   : > { %v6005_v31 = vpop.permute.xlu1 %6004 }
 0x659   : > { %v6192_v35 = vrot.slane %v6005_v31, %v6111_v37 }
 0x65b   : > { %v6193_v63 = vsel %vm6113_vm3, %v6192_v35, %v6188_v59 }
 0x65c   : > { %v6194_v57 = vcombine.low %v6114_v28, %v6193_v63 }
 0x65e   : > { %v6201_v21 = vrot.slane %v6194_v57, %v10523_v42 }
 0x660   : > { %v6208_v53 = vrot.slane %v6201_v21, %v10523_v42 }
 0x662   : > { %6214 = vst.msk [vmem:[%s289_s20] sm:$0x3] %vm6212_vm4, %v6208_v53 }
 0x663   : > { %6990 = shalt.err (!%p6987_p3)
}
 0x664   : > { %s6991_s14 = scalar_lea.hbm %s10174_s24, 32  ;;  %s6995_s16 = scalar_lea.hbm %s10225_s7, 64 }
 0x665   : > { %p6992_p4 = scmp.ne.s32.totalorder %s10174_s24, %s6991_s14  ;;  %p6996_p9 = scmp.lt.u32.totalorder %s10174_s24, %s10225_s7 }
 0x666   : > { %p6997_p10 = scmp.lt.u32.totalorder %s6995_s16, %s6991_s14  ;;  %p6999_p12 = scmp.lt.u32.totalorder %s6991_s14, %s10174_s24 }
 0x667   : > { %p6993_p7 = pnand %p6992_p4, %p7127_p5 }
 0x668   : > { %p6998_p11 = por %p6997_p10, %p6996_p9 }
 0x669   : > { %p6994_p8 = pneg %p6993_p7 }
 0x66a   : > { %p7000_p13 = por %p6999_p12, %p6998_p11 }
 0x66c   : > { %p7001_p0 = pnand %p7000_p13, %p6994_p8 }
 0x66e   : > { %7004 = shalt.err (!%p7001_p0)
}
 0x66f   : > { %6723 = dma.vmem_to_hbm [thread:$0]  (%p7127_p5), %s10176_s21, 32, %s10174_s24, %s6216_s19  }
 0x670 PF: > { %p6729_p1 = scmp.ge.s32.totalorder %s7039_s29, 2  ;;  %s6242_s20 = sand.u32 1, %s7027_s26  }
 0x671   : > { %s6243_s22 = scalar_lea.sflag [#allocation4], %s6242_s20 }
 0x672   : > { %p6726_p2 = pnand %p6729_p1, %p7131_p6 }
 0x674   : > { %7022 = dma.done.wait (!%p6726_p2), %s6243_s22, 32  }
 0x675   : > { %7024 = vsyncadd (!%p6726_p2), %s6243_s22, 4294967264  ;;  %p18_p3 = scmp.ge.s32.totalorder %s7115_s8, 4   ;;  %s10554_s26 = smov %s7031_s27 }
 0x676   : > { %s10555_s27 = smov %s7035_s28  ;;  %s10556_s28 = smov %s7125_s11 }
 0x677   : > { %s10557_s29 = smov %s7115_s8  ;;  %20 = sbr.rel (!%p18_p3) target bundleno = 5 (0x5), region = 86 }
 0x67e   :  { %6248 = vsyncpa [#allocation4], 1 }
 0x67f   :  { %6250 = vsyncpa [#allocation4 + $0x1], 1 }

</bundles_post_ra>
